<compile_context>
chip_gen: v6e
topology: v6e:2x2x1
jax: 0.10.0
libtpu: 0.0.40
codegen_flags: <defaults>
</compile_context>

<pallas_src>
import functools

import jax
import jax.numpy as jnp
from jax import lax
from jax.experimental import pallas as pl
from jax.experimental.pallas import tpu as pltpu


def _round_up(x, m):
    return ((x + m - 1) // m) * m


def _full_spec(shape):
    n = len(shape)
    return pl.BlockSpec(shape, lambda i: (0,) * n)


# ---------------- Pallas kernels ----------------

def _conv_relu_pool_kernel(x_ref, w_ref, b_ref, o_ref):
    """x_ref: (4, TM, K) bf16 im2col rows (leading dim = 4 pool taps),
    w_ref: (K, O) bf16, b_ref: (1, O) f32, o_ref: (TM, O) f32.
    maxpool(ReLU(conv + bias)) == ReLU(max_t(x_t @ W) + b)."""
    w = w_ref[...]
    m = jnp.dot(x_ref[0], w, preferred_element_type=jnp.float32)
    for t in range(1, 4):  # pairwise maximum -> stays on the VPU (no XLU reduce)
        m = jnp.maximum(m, jnp.dot(x_ref[t], w, preferred_element_type=jnp.float32))
    o_ref[...] = jnp.maximum(m + b_ref[...], 0.0).astype(o_ref.dtype)


def _mlp_tail_kernel(x_ref, w1, b1, w2, b2, w3, b3, g1, be1,
                     fwa, fwb, fb, fg, fbe, aux_ref, out_ref, *, eps):
    """x_ref: (2, B, 800) = (branch, batch, features).
    Per branch: lin1 -> lin2 -> lin3 -> BatchNorm1d(10) (train-mode batch
    stats) -> ReLU.  Then fc: Linear(20,1) on cat(a1, a2) -> BatchNorm1d(1)
    -> Sigmoid."""
    def branch(xb):
        h = jnp.dot(xb, w1[...], preferred_element_type=jnp.float32) + b1[...]
        h = jnp.dot(h, w2[...], preferred_element_type=jnp.float32) + b2[...]
        h = jnp.dot(h, w3[...], preferred_element_type=jnp.float32) + b3[...]
        mu = jnp.mean(h, axis=0, keepdims=True)
        var = jnp.mean(jnp.square(h - mu), axis=0, keepdims=True)  # biased (train)
        h = (h - mu) * lax.rsqrt(var + eps)
        return jnp.maximum(h * g1[...] + be1[...], 0.0)

    a1 = branch(x_ref[0])
    a2 = branch(x_ref[1])
    aux_ref[0] = a1
    aux_ref[1] = a2

    # Linear(20,1) on cat((a1, a2), dim=1) == a1 @ W[:10] + a2 @ W[10:].
    z = (jnp.dot(a1, fwa[...], preferred_element_type=jnp.float32)
         + jnp.dot(a2, fwb[...], preferred_element_type=jnp.float32) + fb[...])
    mu = jnp.mean(z, axis=0, keepdims=True)
    var = jnp.mean(jnp.square(z - mu), axis=0, keepdims=True)
    z = (z - mu) * lax.rsqrt(var + eps) * fg[...] + fbe[...]
    # TODO(synk): nn.Dropout(0.05) is stochastic in train mode; identity here.
    out_ref[...] = pl.reciprocal(1.0 + jnp.exp(-z), approx=True)  # sigmoid on EUP


# ---------------- Wrappers ----------------

def _im2col_pool_taps(x, kh, kw, pad):
    """NHWC input -> im2col rows grouped by the 4 taps of the following 2x2
    max-pool: (4, N*h*w, kh*kw*C), column order (kh, kw, C)."""
    N, H, W, C = x.shape
    Ho = H + 2 * pad - kh + 1
    Wo = W + 2 * pad - kw + 1
    h, w = Ho // 2, Wo // 2                      # MaxPool2d(2) floor mode
    xp = jnp.pad(x, ((0, 0), (pad, pad), (pad, pad), (0, 0)))
    cols = [xp[:, a:a + 2 * h, b:b + 2 * w, :] for a in range(kh) for b in range(kw)]
    p = jnp.stack(cols, axis=3)                  # (N, 2h, 2w, kh*kw, C)
    p = p.reshape(N, h, 2, w, 2, kh * kw, C)
    p = p.transpose(2, 4, 0, 1, 3, 5, 6)         # (di, dj, N, i, j, tap, C)
    return p.reshape(4, N * h * w, kh * kw * C), (N, h, w)


def conv_relu_pool(x_nhwc, w_gemm, b_row, kh, kw, pad, tm_target=256):
    """Conv2d(stride=1, padding=pad) + ReLU + MaxPool2d(2) as one Pallas GEMM."""
    rows, (N, h, w) = _im2col_pool_taps(x_nhwc, kh, kw, pad)
    rows = rows.astype(jnp.bfloat16)             # bf16 MXU inputs, f32 accumulate
    M, K = rows.shape[1], rows.shape[2]
    O = w_gemm.shape[1]
    if M > tm_target:
        tm, Mp = tm_target, _round_up(M, tm_target)
    else:
        Mp = _round_up(M, 8)
        tm = Mp
    if Mp != M:
        rows = jnp.pad(rows, ((0, 0), (0, Mp - M), (0, 0)))
    out = pl.pallas_call(
        _conv_relu_pool_kernel,
        out_shape=jax.ShapeDtypeStruct((Mp, O), jnp.float32),
        grid=(Mp // tm,),
        in_specs=[
            pl.BlockSpec((4, tm, K), lambda i: (0, i, 0)),
            pl.BlockSpec((K, O), lambda i: (0, 0)),
            pl.BlockSpec((1, O), lambda i: (0, 0)),
        ],
        out_specs=pl.BlockSpec((tm, O), lambda i: (i, 0)),
        compiler_params=pltpu.CompilerParams(dimension_semantics=("parallel",)),
    )(rows, w_gemm, b_row)
    if Mp != M:
        out = out[:M]
    return out.reshape(N, h, w, O)               # NHWC, pooled


def mlp_tail(flat_2bf, q, eps=1e-5):
    """flat_2bf: (2, B, 800).  Returns aux (2, B, 10) and out (B, 1)."""
    _, B, _ = flat_2bf.shape
    args = (flat_2bf, q["lin1_w"], q["lin1_b"], q["lin2_w"], q["lin2_b"],
            q["lin3_w"], q["lin3_b"], q["bn1_g"], q["bn1_b"],
            q["fc_w_a"], q["fc_w_b"], q["fc_b"], q["fc_bn_g"], q["fc_bn_b"])
    aux, out = pl.pallas_call(
        functools.partial(_mlp_tail_kernel, eps=eps),
        out_shape=(jax.ShapeDtypeStruct((2, B, 10), jnp.float32),
                   jax.ShapeDtypeStruct((B, 1), jnp.float32)),
        grid=(1,),
        in_specs=[_full_spec(a.shape) for a in args],
        out_specs=(_full_spec((2, B, 10)), _full_spec((B, 1))),
    )(*args)
    return aux, out


# ---------------- Model ----------------

def cnn_forward(x, q):
    """CNN(weight_sharing=True, architecture='deep').forward, x: (B, 2, 14, 14)."""
    B = x.shape[0]
    # Batch the two weight-shared branches: [branch-0 images ; branch-1 images].
    imgs = jnp.concatenate([x[:, 0], x[:, 1]], axis=0)[..., None]   # (2B,14,14,1)
    h = conv_relu_pool(imgs, q["conv1_w"], q["conv1_b"], 3, 3, 1)   # (2B, 7, 7, 35)
    h = conv_relu_pool(h, q["conv2_w"], q["conv2_b"], 5, 5, 4)      # (2B, 5, 5, 32)
    flat = h.reshape(2, B, 5 * 5 * 32)                              # NHWC flatten
    aux, out = mlp_tail(flat, q)
    return (aux[0], aux[1]), out[:, 0]


def init_params(key):
    """Parameters in PyTorch layouts (Conv2d OIHW, Linear (out, in))."""
    ks = jax.random.split(key, 12)

    def u(k, shape, fan_in):  # PyTorch-style uniform(-1/sqrt(fan_in), 1/sqrt(fan_in))
        bound = 1.0 / jnp.sqrt(jnp.float32(fan_in))
        return jax.random.uniform(k, shape, jnp.float32, -bound, bound)

    p = {}
    p["conv1_w"] = u(ks[0], (35, 1, 3, 3), 1 * 3 * 3)
    p["conv1_b"] = u(ks[1], (35,), 1 * 3 * 3)
    p["conv2_w"] = u(ks[2], (32, 35, 5, 5), 35 * 5 * 5)
    p["conv2_b"] = u(ks[3], (32,), 35 * 5 * 5)
    p["lin1_w"] = u(ks[4], (25, 800), 800)
    p["lin1_b"] = u(ks[5], (25,), 800)
    p["lin2_w"] = u(ks[6], (25, 25), 25)
    p["lin2_b"] = u(ks[7], (25,), 25)
    p["lin3_w"] = u(ks[8], (10, 25), 25)
    p["lin3_b"] = u(ks[9], (10,), 25)
    p["bn1_g"] = jnp.ones((10,), jnp.float32)
    p["bn1_b"] = jnp.zeros((10,), jnp.float32)
    p["fc_w"] = u(ks[10], (1, 20), 20)
    p["fc_b"] = u(ks[11], (1,), 20)
    p["fc_bn_g"] = jnp.ones((1,), jnp.float32)
    p["fc_bn_b"] = jnp.zeros((1,), jnp.float32)
    return p


def prepare_params(p):
    """One-time conversion of PyTorch-layout params to kernel layouts."""
    q = {}
    # Conv weights -> GEMM layout (kh*kw*C, O), column order matches im2col.
    q["conv1_w"] = p["conv1_w"].transpose(2, 3, 1, 0).reshape(9, 35).astype(jnp.bfloat16)
    q["conv1_b"] = p["conv1_b"].reshape(1, 35).astype(jnp.float32)
    q["conv2_w"] = p["conv2_w"].transpose(2, 3, 1, 0).reshape(875, 32).astype(jnp.bfloat16)
    q["conv2_b"] = p["conv2_b"].reshape(1, 32).astype(jnp.float32)
    # lin1 expects the PyTorch NCHW flatten order (c, y, x); our activations
    # are NHWC-flattened (y, x, c) -> permute the weight columns once here.
    q["lin1_w"] = (p["lin1_w"].reshape(25, 32, 5, 5)
                   .transpose(0, 2, 3, 1).reshape(25, 800).T)          # (800, 25)
    q["lin1_b"] = p["lin1_b"].reshape(1, 25)
    q["lin2_w"] = p["lin2_w"].T                                        # (25, 25)
    q["lin2_b"] = p["lin2_b"].reshape(1, 25)
    q["lin3_w"] = p["lin3_w"].T                                        # (25, 10)
    q["lin3_b"] = p["lin3_b"].reshape(1, 10)
    q["bn1_g"] = p["bn1_g"].reshape(1, 10)
    q["bn1_b"] = p["bn1_b"].reshape(1, 10)
    fwt = p["fc_w"].T                                                  # (20, 1)
    q["fc_w_a"] = fwt[:10]                                             # (10, 1)
    q["fc_w_b"] = fwt[10:]                                             # (10, 1)
    q["fc_b"] = p["fc_b"].reshape(1, 1)
    q["fc_bn_g"] = p["fc_bn_g"].reshape(1, 1)
    q["fc_bn_b"] = p["fc_bn_b"].reshape(1, 1)
    return q


if __name__ == "__main__":
    key = jax.random.PRNGKey(0)
    pkey, xkey = jax.random.split(key)
    torch_params = init_params(pkey)        # PyTorch-layout parameters
    q = prepare_params(torch_params)        # one-time kernel-layout prep
    x = jax.random.normal(xkey, (2, 2, 14, 14), jnp.float32)  # batch=2, pair of 14x14

    fwd = jax.jit(cnn_forward)
    (x1, x2), out = fwd(x, q)
    jax.block_until_ready((x1, x2, out))

    assert x1.shape == (2, 10) and x2.shape == (2, 10) and out.shape == (2,)
    print("KERNEL_OK")
</pallas_src>

<mosaic_0001>
module attributes {stable_mosaic.version = 11 : i64} {
  func.func @_conv_relu_pool_kernel(%arg0: i32, %arg1: memref<4x200x9xbf16, #tpu.memory_space<vmem>>, %arg2: memref<9x35xbf16, #tpu.memory_space<vmem>>, %arg3: memref<1x35xf32, #tpu.memory_space<vmem>>, %arg4: memref<200x35xf32, #tpu.memory_space<vmem>>) attributes {dimension_semantics = [#tpu.dimension_semantics<parallel>], iteration_bounds = array<i64: 1>, scalar_prefetch = 0 : i64, scratch_operands = 0 : i64, tpu.core_type = #tpu.core_type<tc>, window_params = [{transform_indices = @transform_0, window_bounds = array<i64: 4, 200, 9>}, {pipeline_mode = #tpu.pipeline_mode<synchronous>, transform_indices = @transform_1, window_bounds = array<i64: 9, 35>}, {pipeline_mode = #tpu.pipeline_mode<synchronous>, transform_indices = @transform_2, window_bounds = array<i64: 1, 35>}, {transform_indices = @transform_3, window_bounds = array<i64: 200, 35>}]} {
    %c0 = arith.constant 0 : index
    %c0_0 = arith.constant 0 : index
    %0 = vector.load %arg2[%c0, %c0_0] : memref<9x35xbf16, #tpu.memory_space<vmem>>, vector<9x35xbf16>
    %c0_1 = arith.constant 0 : index
    %c0_2 = arith.constant 0 : index
    %c0_3 = arith.constant 0 : index
    %1 = vector.load %arg1[%c0_1, %c0_2, %c0_3] : memref<4x200x9xbf16, #tpu.memory_space<vmem>>, vector<1x200x9xbf16>
    %2 = vector.shape_cast %1 : vector<1x200x9xbf16> to vector<200x9xbf16>
    %cst = arith.constant dense<0.000000e+00> : vector<200x35xf32>
    %3 = tpu.matmul %2, %0, %cst {dimension_numbers = #tpu.dot_dimension_numbers<[1], [0], [0], [1], [0, 0, 1, 1], [], []>} : vector<200x9xbf16>, vector<9x35xbf16>, vector<200x35xf32> -> vector<200x35xf32>
    %c1 = arith.constant 1 : index
    %c0_4 = arith.constant 0 : index
    %c0_5 = arith.constant 0 : index
    %4 = vector.load %arg1[%c1, %c0_4, %c0_5] : memref<4x200x9xbf16, #tpu.memory_space<vmem>>, vector<1x200x9xbf16>
    %5 = vector.shape_cast %4 : vector<1x200x9xbf16> to vector<200x9xbf16>
    %cst_6 = arith.constant dense<0.000000e+00> : vector<200x35xf32>
    %6 = tpu.matmul %5, %0, %cst_6 {dimension_numbers = #tpu.dot_dimension_numbers<[1], [0], [0], [1], [0, 0, 1, 1], [], []>} : vector<200x9xbf16>, vector<9x35xbf16>, vector<200x35xf32> -> vector<200x35xf32>
    %7 = arith.maximumf %3, %6 : vector<200x35xf32>
    %c2 = arith.constant 2 : index
    %c0_7 = arith.constant 0 : index
    %c0_8 = arith.constant 0 : index
    %8 = vector.load %arg1[%c2, %c0_7, %c0_8] : memref<4x200x9xbf16, #tpu.memory_space<vmem>>, vector<1x200x9xbf16>
    %9 = vector.shape_cast %8 : vector<1x200x9xbf16> to vector<200x9xbf16>
    %cst_9 = arith.constant dense<0.000000e+00> : vector<200x35xf32>
    %10 = tpu.matmul %9, %0, %cst_9 {dimension_numbers = #tpu.dot_dimension_numbers<[1], [0], [0], [1], [0, 0, 1, 1], [], []>} : vector<200x9xbf16>, vector<9x35xbf16>, vector<200x35xf32> -> vector<200x35xf32>
    %11 = arith.maximumf %7, %10 : vector<200x35xf32>
    %c3 = arith.constant 3 : index
    %c0_10 = arith.constant 0 : index
    %c0_11 = arith.constant 0 : index
    %12 = vector.load %arg1[%c3, %c0_10, %c0_11] : memref<4x200x9xbf16, #tpu.memory_space<vmem>>, vector<1x200x9xbf16>
    %13 = vector.shape_cast %12 : vector<1x200x9xbf16> to vector<200x9xbf16>
    %cst_12 = arith.constant dense<0.000000e+00> : vector<200x35xf32>
    %14 = tpu.matmul %13, %0, %cst_12 {dimension_numbers = #tpu.dot_dimension_numbers<[1], [0], [0], [1], [0, 0, 1, 1], [], []>} : vector<200x9xbf16>, vector<9x35xbf16>, vector<200x35xf32> -> vector<200x35xf32>
    %15 = arith.maximumf %11, %14 : vector<200x35xf32>
    %c0_13 = arith.constant 0 : index
    %c0_14 = arith.constant 0 : index
    %16 = vector.load %arg3[%c0_13, %c0_14] : memref<1x35xf32, #tpu.memory_space<vmem>>, vector<1x35xf32>
    %17 = vector.broadcast %16 : vector<1x35xf32> to vector<200x35xf32>
    %18 = arith.addf %15, %17 : vector<200x35xf32>
    %cst_15 = arith.constant 0.000000e+00 : f32
    %19 = vector.broadcast %cst_15 : f32 to vector<200x35xf32>
    %20 = arith.maximumf %18, %19 : vector<200x35xf32>
    %c0_16 = arith.constant 0 : index
    %c0_17 = arith.constant 0 : index
    %21 = vector.load %arg4[%c0_16, %c0_17] : memref<200x35xf32, #tpu.memory_space<vmem>>, vector<200x35xf32>
    tpu.vector_store %arg4[%c0_16, %c0_17], %20 {strides = array<i32>} : memref<200x35xf32, #tpu.memory_space<vmem>>, vector<200x35xf32>,
    return
  }
  func.func @transform_0(%arg0: i32) -> (i32, i32, i32) {
    %c0_i32 = arith.constant 0 : i32
    %c0_i32_0 = arith.constant 0 : i32
    %c0_i32_1 = arith.constant 0 : i32
    return %c0_i32, %arg0, %c0_i32_0 : i32, i32, i32
  }
  func.func @transform_1(%arg0: i32) -> (i32, i32) {
    %c0_i32 = arith.constant 0 : i32
    %c0_i32_0 = arith.constant 0 : i32
    %c0_i32_1 = arith.constant 0 : i32
    return %c0_i32, %c0_i32_0 : i32, i32
  }
  func.func @transform_2(%arg0: i32) -> (i32, i32) {
    %c0_i32 = arith.constant 0 : i32
    %c0_i32_0 = arith.constant 0 : i32
    %c0_i32_1 = arith.constant 0 : i32
    return %c0_i32, %c0_i32_0 : i32, i32
  }
  func.func @transform_3(%arg0: i32) -> (i32, i32) {
    %c0_i32 = arith.constant 0 : i32
    %c0_i32_0 = arith.constant 0 : i32
    return %arg0, %c0_i32 : i32, i32
  }
}

module attributes {stable_mosaic.version = 11 : i64} {
  func.func @_conv_relu_pool_kernel(%arg0: i32, %arg1: memref<4x104x875xbf16, #tpu.memory_space<vmem>>, %arg2: memref<875x32xbf16, #tpu.memory_space<vmem>>, %arg3: memref<1x32xf32, #tpu.memory_space<vmem>>, %arg4: memref<104x32xf32, #tpu.memory_space<vmem>>) attributes {dimension_semantics = [#tpu.dimension_semantics<parallel>], iteration_bounds = array<i64: 1>, scalar_prefetch = 0 : i64, scratch_operands = 0 : i64, tpu.core_type = #tpu.core_type<tc>, window_params = [{transform_indices = @transform_0, window_bounds = array<i64: 4, 104, 875>}, {pipeline_mode = #tpu.pipeline_mode<synchronous>, transform_indices = @transform_1, window_bounds = array<i64: 875, 32>}, {pipeline_mode = #tpu.pipeline_mode<synchronous>, transform_indices = @transform_2, window_bounds = array<i64: 1, 32>}, {transform_indices = @transform_3, window_bounds = array<i64: 104, 32>}]} {
    %c0 = arith.constant 0 : index
    %c0_0 = arith.constant 0 : index
    %0 = vector.load %arg2[%c0, %c0_0] : memref<875x32xbf16, #tpu.memory_space<vmem>>, vector<875x32xbf16>
    %c0_1 = arith.constant 0 : index
    %c0_2 = arith.constant 0 : index
    %c0_3 = arith.constant 0 : index
    %1 = vector.load %arg1[%c0_1, %c0_2, %c0_3] : memref<4x104x875xbf16, #tpu.memory_space<vmem>>, vector<1x104x875xbf16>
    %2 = vector.shape_cast %1 : vector<1x104x875xbf16> to vector<104x875xbf16>
    %cst = arith.constant dense<0.000000e+00> : vector<104x32xf32>
    %3 = tpu.matmul %2, %0, %cst {dimension_numbers = #tpu.dot_dimension_numbers<[1], [0], [0], [1], [0, 0, 1, 1], [], []>} : vector<104x875xbf16>, vector<875x32xbf16>, vector<104x32xf32> -> vector<104x32xf32>
    %c1 = arith.constant 1 : index
    %c0_4 = arith.constant 0 : index
    %c0_5 = arith.constant 0 : index
    %4 = vector.load %arg1[%c1, %c0_4, %c0_5] : memref<4x104x875xbf16, #tpu.memory_space<vmem>>, vector<1x104x875xbf16>
    %5 = vector.shape_cast %4 : vector<1x104x875xbf16> to vector<104x875xbf16>
    %cst_6 = arith.constant dense<0.000000e+00> : vector<104x32xf32>
    %6 = tpu.matmul %5, %0, %cst_6 {dimension_numbers = #tpu.dot_dimension_numbers<[1], [0], [0], [1], [0, 0, 1, 1], [], []>} : vector<104x875xbf16>, vector<875x32xbf16>, vector<104x32xf32> -> vector<104x32xf32>
    %7 = arith.maximumf %3, %6 : vector<104x32xf32>
    %c2 = arith.constant 2 : index
    %c0_7 = arith.constant 0 : index
    %c0_8 = arith.constant 0 : index
    %8 = vector.load %arg1[%c2, %c0_7, %c0_8] : memref<4x104x875xbf16, #tpu.memory_space<vmem>>, vector<1x104x875xbf16>
    %9 = vector.shape_cast %8 : vector<1x104x875xbf16> to vector<104x875xbf16>
    %cst_9 = arith.constant dense<0.000000e+00> : vector<104x32xf32>
    %10 = tpu.matmul %9, %0, %cst_9 {dimension_numbers = #tpu.dot_dimension_numbers<[1], [0], [0], [1], [0, 0, 1, 1], [], []>} : vector<104x875xbf16>, vector<875x32xbf16>, vector<104x32xf32> -> vector<104x32xf32>
    %11 = arith.maximumf %7, %10 : vector<104x32xf32>
    %c3 = arith.constant 3 : index
    %c0_10 = arith.constant 0 : index
    %c0_11 = arith.constant 0 : index
    %12 = vector.load %arg1[%c3, %c0_10, %c0_11] : memref<4x104x875xbf16, #tpu.memory_space<vmem>>, vector<1x104x875xbf16>
    %13 = vector.shape_cast %12 : vector<1x104x875xbf16> to vector<104x875xbf16>
    %cst_12 = arith.constant dense<0.000000e+00> : vector<104x32xf32>
    %14 = tpu.matmul %13, %0, %cst_12 {dimension_numbers = #tpu.dot_dimension_numbers<[1], [0], [0], [1], [0, 0, 1, 1], [], []>} : vector<104x875xbf16>, vector<875x32xbf16>, vector<104x32xf32> -> vector<104x32xf32>
    %15 = arith.maximumf %11, %14 : vector<104x32xf32>
    %c0_13 = arith.constant 0 : index
    %c0_14 = arith.constant 0 : index
    %16 = vector.load %arg3[%c0_13, %c0_14] : memref<1x32xf32, #tpu.memory_space<vmem>>, vector<1x32xf32>
    %17 = vector.broadcast %16 : vector<1x32xf32> to vector<104x32xf32>
    %18 = arith.addf %15, %17 : vector<104x32xf32>
    %cst_15 = arith.constant 0.000000e+00 : f32
    %19 = vector.broadcast %cst_15 : f32 to vector<104x32xf32>
    %20 = arith.maximumf %18, %19 : vector<104x32xf32>
    %c0_16 = arith.constant 0 : index
    %c0_17 = arith.constant 0 : index
    %21 = vector.load %arg4[%c0_16, %c0_17] : memref<104x32xf32, #tpu.memory_space<vmem>>, vector<104x32xf32>
    tpu.vector_store %arg4[%c0_16, %c0_17], %20 {strides = array<i32>} : memref<104x32xf32, #tpu.memory_space<vmem>>, vector<104x32xf32>,
    return
  }
  func.func @transform_0(%arg0: i32) -> (i32, i32, i32) {
    %c0_i32 = arith.constant 0 : i32
    %c0_i32_0 = arith.constant 0 : i32
    %c0_i32_1 = arith.constant 0 : i32
    return %c0_i32, %arg0, %c0_i32_0 : i32, i32, i32
  }
  func.func @transform_1(%arg0: i32) -> (i32, i32) {
    %c0_i32 = arith.constant 0 : i32
    %c0_i32_0 = arith.constant 0 : i32
    %c0_i32_1 = arith.constant 0 : i32
    return %c0_i32, %c0_i32_0 : i32, i32
  }
  func.func @transform_2(%arg0: i32) -> (i32, i32) {
    %c0_i32 = arith.constant 0 : i32
    %c0_i32_0 = arith.constant 0 : i32
    %c0_i32_1 = arith.constant 0 : i32
    return %c0_i32, %c0_i32_0 : i32, i32
  }
  func.func @transform_3(%arg0: i32) -> (i32, i32) {
    %c0_i32 = arith.constant 0 : i32
    %c0_i32_0 = arith.constant 0 : i32
    return %arg0, %c0_i32 : i32, i32
  }
}

module attributes {stable_mosaic.version = 11 : i64} {
  func.func @_mlp_tail_kernel(%arg0: i32, %arg1: memref<2x2x800xf32, #tpu.memory_space<vmem>>, %arg2: memref<800x25xf32, #tpu.memory_space<vmem>>, %arg3: memref<1x25xf32, #tpu.memory_space<vmem>>, %arg4: memref<25x25xf32, #tpu.memory_space<vmem>>, %arg5: memref<1x25xf32, #tpu.memory_space<vmem>>, %arg6: memref<25x10xf32, #tpu.memory_space<vmem>>, %arg7: memref<1x10xf32, #tpu.memory_space<vmem>>, %arg8: memref<1x10xf32, #tpu.memory_space<vmem>>, %arg9: memref<1x10xf32, #tpu.memory_space<vmem>>, %arg10: memref<10x1xf32, #tpu.memory_space<vmem>>, %arg11: memref<10x1xf32, #tpu.memory_space<vmem>>, %arg12: memref<1x1xf32, #tpu.memory_space<vmem>>, %arg13: memref<1x1xf32, #tpu.memory_space<vmem>>, %arg14: memref<1x1xf32, #tpu.memory_space<vmem>>, %arg15: memref<2x2x10xf32, #tpu.memory_space<vmem>>, %arg16: memref<2x1xf32, #tpu.memory_space<vmem>>) attributes {dimension_semantics = [#tpu.dimension_semantics<arbitrary>], iteration_bounds = array<i64: 1>, scalar_prefetch = 0 : i64, scratch_operands = 0 : i64, tpu.core_type = #tpu.core_type<tc>, window_params = [{pipeline_mode = #tpu.pipeline_mode<synchronous>, transform_indices = @transform_0, window_bounds = array<i64: 2, 2, 800>}, {pipeline_mode = #tpu.pipeline_mode<synchronous>, transform_indices = @transform_1, window_bounds = array<i64: 800, 25>}, {pipeline_mode = #tpu.pipeline_mode<synchronous>, transform_indices = @transform_2, window_bounds = array<i64: 1, 25>}, {pipeline_mode = #tpu.pipeline_mode<synchronous>, transform_indices = @transform_3, window_bounds = array<i64: 25, 25>}, {pipeline_mode = #tpu.pipeline_mode<synchronous>, transform_indices = @transform_4, window_bounds = array<i64: 1, 25>}, {pipeline_mode = #tpu.pipeline_mode<synchronous>, transform_indices = @transform_5, window_bounds = array<i64: 25, 10>}, {pipeline_mode = #tpu.pipeline_mode<synchronous>, transform_indices = @transform_6, window_bounds = array<i64: 1, 10>}, {pipeline_mode = #tpu.pipeline_mode<synchronous>, transform_indices = @transform_7, window_bounds = array<i64: 1, 10>}, {pipeline_mode = #tpu.pipeline_mode<synchronous>, transform_indices = @transform_8, window_bounds = array<i64: 1, 10>}, {pipeline_mode = #tpu.pipeline_mode<synchronous>, transform_indices = @transform_9, window_bounds = array<i64: 10, 1>}, {pipeline_mode = #tpu.pipeline_mode<synchronous>, transform_indices = @transform_10, window_bounds = array<i64: 10, 1>}, {pipeline_mode = #tpu.pipeline_mode<synchronous>, transform_indices = @transform_11, window_bounds = array<i64: 1, 1>}, {pipeline_mode = #tpu.pipeline_mode<synchronous>, transform_indices = @transform_12, window_bounds = array<i64: 1, 1>}, {pipeline_mode = #tpu.pipeline_mode<synchronous>, transform_indices = @transform_13, window_bounds = array<i64: 1, 1>}, {pipeline_mode = #tpu.pipeline_mode<synchronous>, transform_indices = @transform_14, window_bounds = array<i64: 2, 2, 10>}, {pipeline_mode = #tpu.pipeline_mode<synchronous>, transform_indices = @transform_15, window_bounds = array<i64: 2, 1>}]} {
    %c0 = arith.constant 0 : index
    %c0_0 = arith.constant 0 : index
    %c0_1 = arith.constant 0 : index
    %0 = vector.load %arg1[%c0, %c0_0, %c0_1] : memref<2x2x800xf32, #tpu.memory_space<vmem>>, vector<1x2x800xf32>
    %1 = vector.shape_cast %0 : vector<1x2x800xf32> to vector<2x800xf32>
    %c0_2 = arith.constant 0 : index
    %c0_3 = arith.constant 0 : index
    %2 = vector.load %arg2[%c0_2, %c0_3] : memref<800x25xf32, #tpu.memory_space<vmem>>, vector<800x25xf32>
    %cst = arith.constant dense<0.000000e+00> : vector<2x25xf32>
    %3 = tpu.matmul %1, %2, %cst {dimension_numbers = #tpu.dot_dimension_numbers<[1], [0], [0], [1], [0, 0, 1, 1], [], []>} : vector<2x800xf32>, vector<800x25xf32>, vector<2x25xf32> -> vector<2x25xf32>
    %c0_4 = arith.constant 0 : index
    %c0_5 = arith.constant 0 : index
    %4 = vector.load %arg3[%c0_4, %c0_5] : memref<1x25xf32, #tpu.memory_space<vmem>>, vector<1x25xf32>
    %5 = vector.broadcast %4 : vector<1x25xf32> to vector<2x25xf32>
    %6 = arith.addf %3, %5 : vector<2x25xf32>
    %c0_6 = arith.constant 0 : index
    %c0_7 = arith.constant 0 : index
    %7 = vector.load %arg4[%c0_6, %c0_7] : memref<25x25xf32, #tpu.memory_space<vmem>>, vector<25x25xf32>
    %cst_8 = arith.constant dense<0.000000e+00> : vector<2x25xf32>
    %8 = tpu.matmul %6, %7, %cst_8 {dimension_numbers = #tpu.dot_dimension_numbers<[1], [0], [0], [1], [0, 0, 1, 1], [], []>} : vector<2x25xf32>, vector<25x25xf32>, vector<2x25xf32> -> vector<2x25xf32>
    %c0_9 = arith.constant 0 : index
    %c0_10 = arith.constant 0 : index
    %9 = vector.load %arg5[%c0_9, %c0_10] : memref<1x25xf32, #tpu.memory_space<vmem>>, vector<1x25xf32>
    %10 = vector.broadcast %9 : vector<1x25xf32> to vector<2x25xf32>
    %11 = arith.addf %8, %10 : vector<2x25xf32>
    %c0_11 = arith.constant 0 : index
    %c0_12 = arith.constant 0 : index
    %12 = vector.load %arg6[%c0_11, %c0_12] : memref<25x10xf32, #tpu.memory_space<vmem>>, vector<25x10xf32>
    %cst_13 = arith.constant dense<0.000000e+00> : vector<2x10xf32>
    %13 = tpu.matmul %11, %12, %cst_13 {dimension_numbers = #tpu.dot_dimension_numbers<[1], [0], [0], [1], [0, 0, 1, 1], [], []>} : vector<2x25xf32>, vector<25x10xf32>, vector<2x10xf32> -> vector<2x10xf32>
    %c0_14 = arith.constant 0 : index
    %c0_15 = arith.constant 0 : index
    %14 = vector.load %arg7[%c0_14, %c0_15] : memref<1x10xf32, #tpu.memory_space<vmem>>, vector<1x10xf32>
    %15 = vector.broadcast %14 : vector<1x10xf32> to vector<2x10xf32>
    %16 = arith.addf %13, %15 : vector<2x10xf32>
    %cst_16 = arith.constant dense<0.000000e+00> : vector<10xf32>
    %17 = vector.multi_reduction <add>, %16, %cst_16 [0] : vector<2x10xf32> to vector<10xf32>
    %18 = vector.shape_cast %17 : vector<10xf32> to vector<1x10xf32>
    %cst_17 = arith.constant 2.000000e+00 : f32
    %19 = vector.broadcast %cst_17 : f32 to vector<1x10xf32>
    %20 = arith.divf %18, %19 : vector<1x10xf32>
    %21 = vector.broadcast %20 : vector<1x10xf32> to vector<2x10xf32>
    %22 = arith.subf %16, %21 : vector<2x10xf32>
    %23 = arith.mulf %22, %22 : vector<2x10xf32>
    %cst_18 = arith.constant dense<0.000000e+00> : vector<10xf32>
    %24 = vector.multi_reduction <add>, %23, %cst_18 [0] : vector<2x10xf32> to vector<10xf32>
    %25 = vector.shape_cast %24 : vector<10xf32> to vector<1x10xf32>
    %cst_19 = arith.constant 2.000000e+00 : f32
    %26 = vector.broadcast %cst_19 : f32 to vector<1x10xf32>
    %27 = arith.divf %25, %26 : vector<1x10xf32>
    %28 = vector.broadcast %20 : vector<1x10xf32> to vector<2x10xf32>
    %29 = arith.subf %16, %28 : vector<2x10xf32>
    %cst_20 = arith.constant 9.99999974E-6 : f32
    %30 = vector.broadcast %cst_20 : f32 to vector<1x10xf32>
    %31 = arith.addf %27, %30 : vector<1x10xf32>
    %32 = math.rsqrt %31 : vector<1x10xf32>
    %33 = vector.broadcast %32 : vector<1x10xf32> to vector<2x10xf32>
    %34 = arith.mulf %29, %33 : vector<2x10xf32>
    %c0_21 = arith.constant 0 : index
    %c0_22 = arith.constant 0 : index
    %35 = vector.load %arg8[%c0_21, %c0_22] : memref<1x10xf32, #tpu.memory_space<vmem>>, vector<1x10xf32>
    %36 = vector.broadcast %35 : vector<1x10xf32> to vector<2x10xf32>
    %37 = arith.mulf %34, %36 : vector<2x10xf32>
    %c0_23 = arith.constant 0 : index
    %c0_24 = arith.constant 0 : index
    %38 = vector.load %arg9[%c0_23, %c0_24] : memref<1x10xf32, #tpu.memory_space<vmem>>, vector<1x10xf32>
    %39 = vector.broadcast %38 : vector<1x10xf32> to vector<2x10xf32>
    %40 = arith.addf %37, %39 : vector<2x10xf32>
    %cst_25 = arith.constant 0.000000e+00 : f32
    %41 = vector.broadcast %cst_25 : f32 to vector<2x10xf32>
    %42 = arith.maximumf %40, %41 : vector<2x10xf32>
    %c1 = arith.constant 1 : index
    %c0_26 = arith.constant 0 : index
    %c0_27 = arith.constant 0 : index
    %43 = vector.load %arg1[%c1, %c0_26, %c0_27] : memref<2x2x800xf32, #tpu.memory_space<vmem>>, vector<1x2x800xf32>
    %44 = vector.shape_cast %43 : vector<1x2x800xf32> to vector<2x800xf32>
    %c0_28 = arith.constant 0 : index
    %c0_29 = arith.constant 0 : index
    %45 = vector.load %arg2[%c0_28, %c0_29] : memref<800x25xf32, #tpu.memory_space<vmem>>, vector<800x25xf32>
    %cst_30 = arith.constant dense<0.000000e+00> : vector<2x25xf32>
    %46 = tpu.matmul %44, %45, %cst_30 {dimension_numbers = #tpu.dot_dimension_numbers<[1], [0], [0], [1], [0, 0, 1, 1], [], []>} : vector<2x800xf32>, vector<800x25xf32>, vector<2x25xf32> -> vector<2x25xf32>
    %c0_31 = arith.constant 0 : index
    %c0_32 = arith.constant 0 : index
    %47 = vector.load %arg3[%c0_31, %c0_32] : memref<1x25xf32, #tpu.memory_space<vmem>>, vector<1x25xf32>
    %48 = vector.broadcast %47 : vector<1x25xf32> to vector<2x25xf32>
    %49 = arith.addf %46, %48 : vector<2x25xf32>
    %c0_33 = arith.constant 0 : index
    %c0_34 = arith.constant 0 : index
    %50 = vector.load %arg4[%c0_33, %c0_34] : memref<25x25xf32, #tpu.memory_space<vmem>>, vector<25x25xf32>
    %cst_35 = arith.constant dense<0.000000e+00> : vector<2x25xf32>
    %51 = tpu.matmul %49, %50, %cst_35 {dimension_numbers = #tpu.dot_dimension_numbers<[1], [0], [0], [1], [0, 0, 1, 1], [], []>} : vector<2x25xf32>, vector<25x25xf32>, vector<2x25xf32> -> vector<2x25xf32>
    %c0_36 = arith.constant 0 : index
    %c0_37 = arith.constant 0 : index
    %52 = vector.load %arg5[%c0_36, %c0_37] : memref<1x25xf32, #tpu.memory_space<vmem>>, vector<1x25xf32>
    %53 = vector.broadcast %52 : vector<1x25xf32> to vector<2x25xf32>
    %54 = arith.addf %51, %53 : vector<2x25xf32>
    %c0_38 = arith.constant 0 : index
    %c0_39 = arith.constant 0 : index
    %55 = vector.load %arg6[%c0_38, %c0_39] : memref<25x10xf32, #tpu.memory_space<vmem>>, vector<25x10xf32>
    %cst_40 = arith.constant dense<0.000000e+00> : vector<2x10xf32>
    %56 = tpu.matmul %54, %55, %cst_40 {dimension_numbers = #tpu.dot_dimension_numbers<[1], [0], [0], [1], [0, 0, 1, 1], [], []>} : vector<2x25xf32>, vector<25x10xf32>, vector<2x10xf32> -> vector<2x10xf32>
    %c0_41 = arith.constant 0 : index
    %c0_42 = arith.constant 0 : index
    %57 = vector.load %arg7[%c0_41, %c0_42] : memref<1x10xf32, #tpu.memory_space<vmem>>, vector<1x10xf32>
    %58 = vector.broadcast %57 : vector<1x10xf32> to vector<2x10xf32>
    %59 = arith.addf %56, %58 : vector<2x10xf32>
    %cst_43 = arith.constant dense<0.000000e+00> : vector<10xf32>
    %60 = vector.multi_reduction <add>, %59, %cst_43 [0] : vector<2x10xf32> to vector<10xf32>
    %61 = vector.shape_cast %60 : vector<10xf32> to vector<1x10xf32>
    %cst_44 = arith.constant 2.000000e+00 : f32
    %62 = vector.broadcast %cst_44 : f32 to vector<1x10xf32>
    %63 = arith.divf %61, %62 : vector<1x10xf32>
    %64 = vector.broadcast %63 : vector<1x10xf32> to vector<2x10xf32>
    %65 = arith.subf %59, %64 : vector<2x10xf32>
    %66 = arith.mulf %65, %65 : vector<2x10xf32>
    %cst_45 = arith.constant dense<0.000000e+00> : vector<10xf32>
    %67 = vector.multi_reduction <add>, %66, %cst_45 [0] : vector<2x10xf32> to vector<10xf32>
    %68 = vector.shape_cast %67 : vector<10xf32> to vector<1x10xf32>
    %cst_46 = arith.constant 2.000000e+00 : f32
    %69 = vector.broadcast %cst_46 : f32 to vector<1x10xf32>
    %70 = arith.divf %68, %69 : vector<1x10xf32>
    %71 = vector.broadcast %63 : vector<1x10xf32> to vector<2x10xf32>
    %72 = arith.subf %59, %71 : vector<2x10xf32>
    %cst_47 = arith.constant 9.99999974E-6 : f32
    %73 = vector.broadcast %cst_47 : f32 to vector<1x10xf32>
    %74 = arith.addf %70, %73 : vector<1x10xf32>
    %75 = math.rsqrt %74 : vector<1x10xf32>
    %76 = vector.broadcast %75 : vector<1x10xf32> to vector<2x10xf32>
    %77 = arith.mulf %72, %76 : vector<2x10xf32>
    %c0_48 = arith.constant 0 : index
    %c0_49 = arith.constant 0 : index
    %78 = vector.load %arg8[%c0_48, %c0_49] : memref<1x10xf32, #tpu.memory_space<vmem>>, vector<1x10xf32>
    %79 = vector.broadcast %78 : vector<1x10xf32> to vector<2x10xf32>
    %80 = arith.mulf %77, %79 : vector<2x10xf32>
    %c0_50 = arith.constant 0 : index
    %c0_51 = arith.constant 0 : index
    %81 = vector.load %arg9[%c0_50, %c0_51] : memref<1x10xf32, #tpu.memory_space<vmem>>, vector<1x10xf32>
    %82 = vector.broadcast %81 : vector<1x10xf32> to vector<2x10xf32>
    %83 = arith.addf %80, %82 : vector<2x10xf32>
    %cst_52 = arith.constant 0.000000e+00 : f32
    %84 = vector.broadcast %cst_52 : f32 to vector<2x10xf32>
    %85 = arith.maximumf %83, %84 : vector<2x10xf32>
    %c0_53 = arith.constant 0 : index
    %c0_54 = arith.constant 0 : index
    %c0_55 = arith.constant 0 : index
    %86 = vector.load %arg15[%c0_53, %c0_54, %c0_55] : memref<2x2x10xf32, #tpu.memory_space<vmem>>, vector<1x2x10xf32>
    %87 = vector.shape_cast %86 : vector<1x2x10xf32> to vector<2x10xf32>
    %88 = vector.shape_cast %42 : vector<2x10xf32> to vector<1x2x10xf32>
    tpu.vector_store %arg15[%c0_53, %c0_54, %c0_55], %88 {strides = array<i32>} : memref<2x2x10xf32, #tpu.memory_space<vmem>>, vector<1x2x10xf32>,
    %c1_56 = arith.constant 1 : index
    %c0_57 = arith.constant 0 : index
    %c0_58 = arith.constant 0 : index
    %89 = vector.load %arg15[%c1_56, %c0_57, %c0_58] : memref<2x2x10xf32, #tpu.memory_space<vmem>>, vector<1x2x10xf32>
    %90 = vector.shape_cast %89 : vector<1x2x10xf32> to vector<2x10xf32>
    %91 = vector.shape_cast %85 : vector<2x10xf32> to vector<1x2x10xf32>
    tpu.vector_store %arg15[%c1_56, %c0_57, %c0_58], %91 {strides = array<i32>} : memref<2x2x10xf32, #tpu.memory_space<vmem>>, vector<1x2x10xf32>,
    %c0_59 = arith.constant 0 : index
    %c0_60 = arith.constant 0 : index
    %92 = vector.load %arg10[%c0_59, %c0_60] : memref<10x1xf32, #tpu.memory_space<vmem>>, vector<10x1xf32>
    %cst_61 = arith.constant dense<0.000000e+00> : vector<2x1xf32>
    %93 = tpu.matmul %42, %92, %cst_61 {dimension_numbers = #tpu.dot_dimension_numbers<[1], [0], [0], [1], [0, 0, 1, 1], [], []>} : vector<2x10xf32>, vector<10x1xf32>, vector<2x1xf32> -> vector<2x1xf32>
    %c0_62 = arith.constant 0 : index
    %c0_63 = arith.constant 0 : index
    %94 = vector.load %arg11[%c0_62, %c0_63] : memref<10x1xf32, #tpu.memory_space<vmem>>, vector<10x1xf32>
    %cst_64 = arith.constant dense<0.000000e+00> : vector<2x1xf32>
    %95 = tpu.matmul %85, %94, %cst_64 {dimension_numbers = #tpu.dot_dimension_numbers<[1], [0], [0], [1], [0, 0, 1, 1], [], []>} : vector<2x10xf32>, vector<10x1xf32>, vector<2x1xf32> -> vector<2x1xf32>
    %96 = arith.addf %93, %95 : vector<2x1xf32>
    %c0_65 = arith.constant 0 : index
    %c0_66 = arith.constant 0 : index
    %97 = vector.load %arg12[%c0_65, %c0_66] : memref<1x1xf32, #tpu.memory_space<vmem>>, vector<1x1xf32>
    %98 = vector.broadcast %97 : vector<1x1xf32> to vector<2x1xf32>
    %99 = arith.addf %96, %98 : vector<2x1xf32>
    %cst_67 = arith.constant dense<0.000000e+00> : vector<1xf32>
    %100 = vector.multi_reduction <add>, %99, %cst_67 [0] : vector<2x1xf32> to vector<1xf32>
    %101 = vector.shape_cast %100 : vector<1xf32> to vector<1x1xf32>
    %cst_68 = arith.constant 2.000000e+00 : f32
    %102 = vector.broadcast %cst_68 : f32 to vector<1x1xf32>
    %103 = arith.divf %101, %102 : vector<1x1xf32>
    %104 = vector.broadcast %103 : vector<1x1xf32> to vector<2x1xf32>
    %105 = arith.subf %99, %104 : vector<2x1xf32>
    %106 = arith.mulf %105, %105 : vector<2x1xf32>
    %cst_69 = arith.constant dense<0.000000e+00> : vector<1xf32>
    %107 = vector.multi_reduction <add>, %106, %cst_69 [0] : vector<2x1xf32> to vector<1xf32>
    %108 = vector.shape_cast %107 : vector<1xf32> to vector<1x1xf32>
    %cst_70 = arith.constant 2.000000e+00 : f32
    %109 = vector.broadcast %cst_70 : f32 to vector<1x1xf32>
    %110 = arith.divf %108, %109 : vector<1x1xf32>
    %111 = vector.broadcast %103 : vector<1x1xf32> to vector<2x1xf32>
    %112 = arith.subf %99, %111 : vector<2x1xf32>
    %cst_71 = arith.constant 9.99999974E-6 : f32
    %113 = vector.broadcast %cst_71 : f32 to vector<1x1xf32>
    %114 = arith.addf %110, %113 : vector<1x1xf32>
    %115 = math.rsqrt %114 : vector<1x1xf32>
    %116 = vector.broadcast %115 : vector<1x1xf32> to vector<2x1xf32>
    %117 = arith.mulf %112, %116 : vector<2x1xf32>
    %c0_72 = arith.constant 0 : index
    %c0_73 = arith.constant 0 : index
    %118 = vector.load %arg13[%c0_72, %c0_73] : memref<1x1xf32, #tpu.memory_space<vmem>>, vector<1x1xf32>
    %119 = vector.broadcast %118 : vector<1x1xf32> to vector<2x1xf32>
    %120 = arith.mulf %117, %119 : vector<2x1xf32>
    %c0_74 = arith.constant 0 : index
    %c0_75 = arith.constant 0 : index
    %121 = vector.load %arg14[%c0_74, %c0_75] : memref<1x1xf32, #tpu.memory_space<vmem>>, vector<1x1xf32>
    %122 = vector.broadcast %121 : vector<1x1xf32> to vector<2x1xf32>
    %123 = arith.addf %120, %122 : vector<2x1xf32>
    %cst_76 = arith.constant 0.000000e+00 : f32
    %124 = vector.broadcast %cst_76 : f32 to vector<2x1xf32>
    %125 = arith.subf %124, %123 : vector<2x1xf32>
    %126 = math.exp %125 : vector<2x1xf32>
    %cst_77 = arith.constant 1.000000e+00 : f32
    %127 = vector.broadcast %cst_77 : f32 to vector<2x1xf32>
    %128 = arith.addf %127, %126 : vector<2x1xf32>
    %129 = tpu.reciprocal %128 {approx = true} : vector<2x1xf32> -> vector<2x1xf32>
    %c0_78 = arith.constant 0 : index
    %c0_79 = arith.constant 0 : index
    %130 = vector.load %arg16[%c0_78, %c0_79] : memref<2x1xf32, #tpu.memory_space<vmem>>, vector<2x1xf32>
    tpu.vector_store %arg16[%c0_78, %c0_79], %129 {strides = array<i32>} : memref<2x1xf32, #tpu.memory_space<vmem>>, vector<2x1xf32>,
    return
  }
  func.func @transform_0(%arg0: i32) -> (i32, i32, i32) {
    %c0_i32 = arith.constant 0 : i32
    %c0_i32_0 = arith.constant 0 : i32
    %c0_i32_1 = arith.constant 0 : i32
    %c0_i32_2 = arith.constant 0 : i32
    return %c0_i32, %c0_i32_0, %c0_i32_1 : i32, i32, i32
  }
  func.func @transform_1(%arg0: i32) -> (i32, i32) {
    %c0_i32 = arith.constant 0 : i32
    %c0_i32_0 = arith.constant 0 : i32
    %c0_i32_1 = arith.constant 0 : i32
    return %c0_i32, %c0_i32_0 : i32, i32
  }
  func.func @transform_2(%arg0: i32) -> (i32, i32) {
    %c0_i32 = arith.constant 0 : i32
    %c0_i32_0 = arith.constant 0 : i32
    %c0_i32_1 = arith.constant 0 : i32
    return %c0_i32, %c0_i32_0 : i32, i32
  }
  func.func @transform_3(%arg0: i32) -> (i32, i32) {
    %c0_i32 = arith.constant 0 : i32
    %c0_i32_0 = arith.constant 0 : i32
    %c0_i32_1 = arith.constant 0 : i32
    return %c0_i32, %c0_i32_0 : i32, i32
  }
  func.func @transform_4(%arg0: i32) -> (i32, i32) {
    %c0_i32 = arith.constant 0 : i32
    %c0_i32_0 = arith.constant 0 : i32
    %c0_i32_1 = arith.constant 0 : i32
    return %c0_i32, %c0_i32_0 : i32, i32
  }
  func.func @transform_5(%arg0: i32) -> (i32, i32) {
    %c0_i32 = arith.constant 0 : i32
    %c0_i32_0 = arith.constant 0 : i32
    %c0_i32_1 = arith.constant 0 : i32
    return %c0_i32, %c0_i32_0 : i32, i32
  }
  func.func @transform_6(%arg0: i32) -> (i32, i32) {
    %c0_i32 = arith.constant 0 : i32
    %c0_i32_0 = arith.constant 0 : i32
    %c0_i32_1 = arith.constant 0 : i32
    return %c0_i32, %c0_i32_0 : i32, i32
  }
  func.func @transform_7(%arg0: i32) -> (i32, i32) {
    %c0_i32 = arith.constant 0 : i32
    %c0_i32_0 = arith.constant 0 : i32
    %c0_i32_1 = arith.constant 0 : i32
    return %c0_i32, %c0_i32_0 : i32, i32
  }
  func.func @transform_8(%arg0: i32) -> (i32, i32) {
    %c0_i32 = arith.constant 0 : i32
    %c0_i32_0 = arith.constant 0 : i32
    %c0_i32_1 = arith.constant 0 : i32
    return %c0_i32, %c0_i32_0 : i32, i32
  }
  func.func @transform_9(%arg0: i32) -> (i32, i32) {
    %c0_i32 = arith.constant 0 : i32
    %c0_i32_0 = arith.constant 0 : i32
    %c0_i32_1 = arith.constant 0 : i32
    return %c0_i32, %c0_i32_0 : i32, i32
  }
  func.func @transform_10(%arg0: i32) -> (i32, i32) {
    %c0_i32 = arith.constant 0 : i32
    %c0_i32_0 = arith.constant 0 : i32
    %c0_i32_1 = arith.constant 0 : i32
    return %c0_i32, %c0_i32_0 : i32, i32
  }
  func.func @transform_11(%arg0: i32) -> (i32, i32) {
    %c0_i32 = arith.constant 0 : i32
    %c0_i32_0 = arith.constant 0 : i32
    %c0_i32_1 = arith.constant 0 : i32
    return %c0_i32, %c0_i32_0 : i32, i32
  }
  func.func @transform_12(%arg0: i32) -> (i32, i32) {
    %c0_i32 = arith.constant 0 : i32
    %c0_i32_0 = arith.constant 0 : i32
    %c0_i32_1 = arith.constant 0 : i32
    return %c0_i32, %c0_i32_0 : i32, i32
  }
  func.func @transform_13(%arg0: i32) -> (i32, i32) {
    %c0_i32 = arith.constant 0 : i32
    %c0_i32_0 = arith.constant 0 : i32
    %c0_i32_1 = arith.constant 0 : i32
    return %c0_i32, %c0_i32_0 : i32, i32
  }
  func.func @transform_14(%arg0: i32) -> (i32, i32, i32) {
    %c0_i32 = arith.constant 0 : i32
    %c0_i32_0 = arith.constant 0 : i32
    %c0_i32_1 = arith.constant 0 : i32
    %c0_i32_2 = arith.constant 0 : i32
    return %c0_i32, %c0_i32_0, %c0_i32_1 : i32, i32, i32
  }
  func.func @transform_15(%arg0: i32) -> (i32, i32) {
    %c0_i32 = arith.constant 0 : i32
    %c0_i32_0 = arith.constant 0 : i32
    %c0_i32_1 = arith.constant 0 : i32
    return %c0_i32, %c0_i32_0 : i32, i32
  }
}

</mosaic_0001>

<bundles_post_ra>
// kernel: cnn_forward.3
= control target key start
LH: loop header
LB: loop body
LE: loop exit
PB: predicated region body
PF: predicated region fallthrough
CT: control target
= control target key end

     0   :  { %vm150_vm0 = vcmask 1043456   ;;  %vm151_vm1 = vcmask 1044480   ;;  %v1756_v0 = vmov 0.0   ;;  %v1757_v2 = vmov 65535   ;;  %s2453_s1 = inlined_call_operand.vmem [shape: bf16[9,35], index: 1, kind: input, shape index: {}]   ;;  %s2454_s0 = inlined_call_operand.vmem [shape: bf16[4,200,9], index: 0, kind: input, shape index: {}]   ;;  %s2455_s2 = inlined_call_operand.vmem [shape: f32[1,35], index: 2, kind: input, shape index: {}]   ;;  %s2456_s3 = inlined_call_operand.vmem [shape: f32[200,35], index: 3, kind: output, shape index: {}]  }
   0x1   :  { %1484 = vmatprep.subr.bf16.mxu0 %v1756_v0  ;;  %1538 = vmatprep.subr.bf16.mxu1 %v1756_v0  ;;  %v1703_v1 = vld [vmem:[%s2453_s1] sm:$0x1f]   ;;  %v152_v3 = vsel %vm150_vm0, 4294967295, %v1757_v2  ;;  %vm1758_vm2 = vmmov 0   ;;  %vm110_vm3 = vcmask 72704   ;;  %v1706_v8 = vld [vmem:[%s2454_s0 + $0x8] sm:$0xff]  }
   0x2   :  { %v153_v4 = vsel %vm151_vm1, %v152_v3, 0  ;;  %1486 = vmatprep.mubr.msk.bf16.mxu0 %vm1758_vm2, %v1756_v0  ;;  %1540 = vmatprep.mubr.msk.bf16.mxu1 %vm1758_vm2, %v1756_v0  ;;  %v1704_v5 = vld [vmem:[%s2454_s0] sm:$0xff]   ;;  %v1707_v9 = vld [vmem:[%s2454_s0 + $0x6c] sm:$0xff]   ;;  %v1709_v11 = vld [vmem:[%s2454_s0 + $0x74] sm:$0xff]   ;;  %vm1217_vm4 = vcmask 285696  }
   0x3   :  { %v155_v6 = vand.u32 %v1703_v1, %v153_v4  ;;  %v1705_v7 = vld [vmem:[%s2454_s0 + $0x64] sm:$0xff]   ;;  %v1708_v10 = vld [vmem:[%s2454_s0 + $0x10] sm:$0xff]   ;;  %v1710_v12 = vld [vmem:[%s2454_s0 + $0x18] sm:$0xff]  }
   0x4   :  { %v1711_v13 = vld [vmem:[%s2454_s0 + $0x7c] sm:$0xff]   ;;  %v1713_v15 = vld [vmem:[%s2454_s0 + $0x84] sm:$0xff]   ;;  %v1715_v17 = vld [vmem:[%s2454_s0 + $0x8c] sm:$0xff]  }
   0x5   :  { %1485 = vmatpush3.bf16.msra.mxu0 %v155_v6  ;;  %1539 = vmatpush3.bf16.msra.mxu1 %v155_v6  ;;  %v1712_v14 = vld [vmem:[%s2454_s0 + $0x20] sm:$0xff]   ;;  %v1714_v16 = vld [vmem:[%s2454_s0 + $0x28] sm:$0xff]   ;;  %v1716_v18 = vld [vmem:[%s2454_s0 + $0x30] sm:$0xff]  }
   0x6   :  { %1592 = vmatprep.subr.bf16.mxu0 %v1756_v0  ;;  %1646 = vmatprep.subr.bf16.mxu1 %v1756_v0  ;;  %v1717_v19 = vld [vmem:[%s2454_s0 + $0x94] sm:$0xff]   ;;  %v1719_v21 = vld [vmem:[%s2454_s0 + $0x9c] sm:$0xff]   ;;  %v1721_v23 = vld [vmem:[%s2454_s0 + $0xa4] sm:$0xff]  }
   0x7   :  { %v1718_v20 = vld [vmem:[%s2454_s0 + $0x38] sm:$0xff]   ;;  %v1720_v22 = vld [vmem:[%s2454_s0 + $0x40] sm:$0xff]   ;;  %v1722_v24 = vld [vmem:[%s2454_s0 + $0x48] sm:$0xff]  }
   0x8   :  { %1487 = vmatmul.mubr.msk.bf16.vlgmr.msra.gmra.mxu0 %vm110_vm3, %v1704_v5  ;;  %1541 = vmatmul.mubr.msk.bf16.vlgmr.msra.gmra.mxu1 %vm110_vm3, %v1705_v7  ;;  %v1723_v25 = vld [vmem:[%s2454_s0 + $0xac] sm:$0xff]   ;;  %v1725_v27 = vld [vmem:[%s2454_s0 + $0xb4] sm:$0xff]   ;;  %v1727_v29 = vld [vmem:[%s2454_s0 + $0xbc] sm:$0xff]  }
   0x9   :  { %1593 = vmatpush3.bf16.msra.mxu0 %v155_v6  ;;  %1647 = vmatpush3.bf16.msra.mxu1 %v155_v6  ;;  %v1724_v26 = vld [vmem:[%s2454_s0 + $0x50] sm:$0xff]   ;;  %v1726_v28 = vld [vmem:[%s2454_s0 + $0x58] sm:$0xff]   ;;  %v1728_v30 = vld [vmem:[%s2454_s0 + $0x60] ss:$0 sps:$4 sm:$0xff]  }
   0xa   :  { %1490 = vmatprep.mubr.msk.bf16.mxu0 %vm1758_vm2, %v1756_v0  ;;  %1544 = vmatprep.mubr.msk.bf16.mxu1 %vm1758_vm2, %v1756_v0  ;;  %v1729_v31 = vld [vmem:[%s2454_s0 + $0xc4] ss:$0 sps:$4 sm:$0xff]   ;;  %v1730_v32 = vld [vmem:[%s2454_s0 + $0xc8] sm:$0xff]   ;;  %v1732_v34 = vld [vmem:[%s2454_s0 + $0xd0] sm:$0xff]  }
   0xb   :  { %v1731_v33 = vld [vmem:[%s2454_s0 + $0x12c] sm:$0xff]   ;;  %v1733_v35 = vld [vmem:[%s2454_s0 + $0x134] sm:$0xff]   ;;  %v1735_v37 = vld [vmem:[%s2454_s0 + $0x13c] sm:$0xff]  }
   0xc   :  { %v1734_v36 = vld [vmem:[%s2454_s0 + $0xd8] sm:$0xff]   ;;  %v1736_v38 = vld [vmem:[%s2454_s0 + $0xe0] sm:$0xff]   ;;  %v1738_v40 = vld [vmem:[%s2454_s0 + $0xe8] sm:$0xff]  }
   0xd   :  { %v1737_v39 = vld [vmem:[%s2454_s0 + $0x144] sm:$0xff]   ;;  %v1739_v41 = vld [vmem:[%s2454_s0 + $0x14c] sm:$0xff]   ;;  %v1741_v43 = vld [vmem:[%s2454_s0 + $0x154] sm:$0xff]  }
   0xe   :  { %v1740_v42 = vld [vmem:[%s2454_s0 + $0xf0] sm:$0xff]   ;;  %v1742_v44 = vld [vmem:[%s2454_s0 + $0xf8] sm:$0xff]   ;;  %v1744_v46 = vld [vmem:[%s2454_s0 + $0x100] sm:$0xff]  }
   0xf   :  { %v1743_v45 = vld [vmem:[%s2454_s0 + $0x15c] sm:$0xff]   ;;  %v1745_v47 = vld [vmem:[%s2454_s0 + $0x164] sm:$0xff]   ;;  %v1747_v49 = vld [vmem:[%s2454_s0 + $0x16c] sm:$0xff]  }
  0x10   :  { %1491 = vmatmul.mubr.msk.bf16.gmra.mxu0 %vm110_vm3, %v1706_v8  ;;  %1545 = vmatmul.mubr.msk.bf16.gmra.mxu1 %vm110_vm3, %v1707_v9  ;;  %v1746_v48 = vld [vmem:[%s2454_s0 + $0x108] sm:$0xff]   ;;  %v1748_v50 = vld [vmem:[%s2454_s0 + $0x110] sm:$0xff]   ;;  %v1750_v52 = vld [vmem:[%s2454_s0 + $0x118] sm:$0xff]  }
  0x11   :  { %1494 = vmatprep.mubr.msk.bf16.mxu0 %vm1758_vm2, %v1756_v0  ;;  %1548 = vmatprep.mubr.msk.bf16.mxu1 %vm1758_vm2, %v1756_v0  ;;  %v1749_v51 = vld [vmem:[%s2454_s0 + $0x174] sm:$0xff]   ;;  %v1751_v53 = vld [vmem:[%s2454_s0 + $0x17c] sm:$0xff]   ;;  %v1753_v55 = vld [vmem:[%s2454_s0 + $0x184] sm:$0xff]  }
  0x12   :  { %v1752_v54 = vld [vmem:[%s2454_s0 + $0x120] sm:$0xff]   ;;  %v1754_v63 = vld [vmem:[%s2454_s0 + $0x128] ss:$0 sps:$4 sm:$0xff]   ;;  %v1755_v1 = vld [vmem:[%s2454_s0 + $0x18c] ss:$0 sps:$4 sm:$0xff]  }
  0x18   :  { %1495 = vmatmul.mubr.msk.bf16.gmra.mxu0 %vm110_vm3, %v1708_v10  ;;  %1549 = vmatmul.mubr.msk.bf16.gmra.mxu1 %vm110_vm3, %v1709_v11 }
  0x19   :  { %1498 = vmatprep.mubr.msk.bf16.mxu0 %vm1758_vm2, %v1756_v0  ;;  %1552 = vmatprep.mubr.msk.bf16.mxu1 %vm1758_vm2, %v1756_v0 }
  0x20   :  { %1499 = vmatmul.mubr.msk.bf16.gmra.mxu0 %vm110_vm3, %v1710_v12  ;;  %1553 = vmatmul.mubr.msk.bf16.gmra.mxu1 %vm110_vm3, %v1711_v13 }
  0x21   :  { %1502 = vmatprep.mubr.msk.bf16.mxu0 %vm1758_vm2, %v1756_v0  ;;  %1556 = vmatprep.mubr.msk.bf16.mxu1 %vm1758_vm2, %v1756_v0 }
  0x28   :  { %1503 = vmatmul.mubr.msk.bf16.gmra.mxu0 %vm110_vm3, %v1712_v14  ;;  %1557 = vmatmul.mubr.msk.bf16.gmra.mxu1 %vm110_vm3, %v1713_v15 }
  0x29   :  { %1506 = vmatprep.mubr.msk.bf16.mxu0 %vm1758_vm2, %v1756_v0  ;;  %1560 = vmatprep.mubr.msk.bf16.mxu1 %vm1758_vm2, %v1756_v0 }
  0x30   :  { %1507 = vmatmul.mubr.msk.bf16.gmra.mxu0 %vm110_vm3, %v1714_v16  ;;  %1561 = vmatmul.mubr.msk.bf16.gmra.mxu1 %vm110_vm3, %v1715_v17 }
  0x31   :  { %1510 = vmatprep.mubr.msk.bf16.mxu0 %vm1758_vm2, %v1756_v0  ;;  %1564 = vmatprep.mubr.msk.bf16.mxu1 %vm1758_vm2, %v1756_v0 }
  0x38   :  { %1511 = vmatmul.mubr.msk.bf16.gmra.mxu0 %vm110_vm3, %v1716_v18  ;;  %1565 = vmatmul.mubr.msk.bf16.gmra.mxu1 %vm110_vm3, %v1717_v19 }
  0x39   :  { %1514 = vmatprep.mubr.msk.bf16.mxu0 %vm1758_vm2, %v1756_v0  ;;  %1568 = vmatprep.mubr.msk.bf16.mxu1 %vm1758_vm2, %v1756_v0 }
  0x40   :  { %1515 = vmatmul.mubr.msk.bf16.gmra.mxu0 %vm110_vm3, %v1718_v20  ;;  %1569 = vmatmul.mubr.msk.bf16.gmra.mxu1 %vm110_vm3, %v1719_v21 }
  0x41   :  { %1518 = vmatprep.mubr.msk.bf16.mxu0 %vm1758_vm2, %v1756_v0  ;;  %1572 = vmatprep.mubr.msk.bf16.mxu1 %vm1758_vm2, %v1756_v0 }
  0x48   :  { %1519 = vmatmul.mubr.msk.bf16.gmra.mxu0 %vm110_vm3, %v1720_v22  ;;  %1573 = vmatmul.mubr.msk.bf16.gmra.mxu1 %vm110_vm3, %v1721_v23 }
  0x49   :  { %1522 = vmatprep.mubr.msk.bf16.mxu0 %vm1758_vm2, %v1756_v0  ;;  %1576 = vmatprep.mubr.msk.bf16.mxu1 %vm1758_vm2, %v1756_v0 }
  0x50   :  { %1523 = vmatmul.mubr.msk.bf16.gmra.mxu0 %vm110_vm3, %v1722_v24  ;;  %1577 = vmatmul.mubr.msk.bf16.gmra.mxu1 %vm110_vm3, %v1723_v25 }
  0x51   :  { %1526 = vmatprep.mubr.msk.bf16.mxu0 %vm1758_vm2, %v1756_v0  ;;  %1580 = vmatprep.mubr.msk.bf16.mxu1 %vm1758_vm2, %v1756_v0 }
  0x58   :  { %1527 = vmatmul.mubr.msk.bf16.gmra.mxu0 %vm110_vm3, %v1724_v26  ;;  %1581 = vmatmul.mubr.msk.bf16.gmra.mxu1 %vm110_vm3, %v1725_v27 }
  0x59   :  { %1530 = vmatprep.mubr.msk.bf16.mxu0 %vm1758_vm2, %v1756_v0  ;;  %1584 = vmatprep.mubr.msk.bf16.mxu1 %vm1758_vm2, %v1756_v0 }
  0x60   :  { %1531 = vmatmul.mubr.msk.bf16.gmra.mxu0 %vm110_vm3, %v1726_v28  ;;  %1585 = vmatmul.mubr.msk.bf16.gmra.mxu1 %vm110_vm3, %v1727_v29 }
  0x61   :  { %1534 = vmatprep.mubr.msk.bf16.mxu0 %vm1758_vm2, %v1756_v0  ;;  %1588 = vmatprep.mubr.msk.bf16.mxu1 %vm1758_vm2, %v1756_v0 }
  0x68   :  { %1535 = vmatmul.mubr.msk.bf16.gmra.mxu0 %vm110_vm3, %v1728_v30  ;;  %1589 = vmatmul.mubr.msk.bf16.gmra.mxu1 %vm110_vm3, %v1729_v31 }
  0x69   :  { %1594 = vmatprep.mubr.msk.bf16.mxu0 %vm1758_vm2, %v1756_v0  ;;  %1648 = vmatprep.mubr.msk.bf16.mxu1 %vm1758_vm2, %v1756_v0 }
  0x70   :  { %1595 = vmatmul.mubr.msk.bf16.vlgmr.msra.gmra.mxu0 %vm110_vm3, %v1730_v32  ;;  %1649 = vmatmul.mubr.msk.bf16.vlgmr.msra.gmra.mxu1 %vm110_vm3, %v1731_v33 }
  0x71   :  { %1598 = vmatprep.mubr.msk.bf16.mxu0 %vm1758_vm2, %v1756_v0  ;;  %1652 = vmatprep.mubr.msk.bf16.mxu1 %vm1758_vm2, %v1756_v0 }
  0x78   :  { %1599 = vmatmul.mubr.msk.bf16.gmra.mxu0 %vm110_vm3, %v1732_v34  ;;  %1653 = vmatmul.mubr.msk.bf16.gmra.mxu1 %vm110_vm3, %v1733_v35 }
  0x79   :  { %1602 = vmatprep.mubr.msk.bf16.mxu0 %vm1758_vm2, %v1756_v0  ;;  %1656 = vmatprep.mubr.msk.bf16.mxu1 %vm1758_vm2, %v1756_v0 }
  0x80   :  { %1603 = vmatmul.mubr.msk.bf16.gmra.mxu0 %vm110_vm3, %v1734_v36  ;;  %1657 = vmatmul.mubr.msk.bf16.gmra.mxu1 %vm110_vm3, %v1735_v37 }
  0x81   :  { %1606 = vmatprep.mubr.msk.bf16.mxu0 %vm1758_vm2, %v1756_v0  ;;  %1660 = vmatprep.mubr.msk.bf16.mxu1 %vm1758_vm2, %v1756_v0 }
  0x88   :  { %1607 = vmatmul.mubr.msk.bf16.gmra.mxu0 %vm110_vm3, %v1736_v38  ;;  %1661 = vmatmul.mubr.msk.bf16.gmra.mxu1 %vm110_vm3, %v1737_v39 }
  0x89   :  { %1610 = vmatprep.mubr.msk.bf16.mxu0 %vm1758_vm2, %v1756_v0  ;;  %1664 = vmatprep.mubr.msk.bf16.mxu1 %vm1758_vm2, %v1756_v0 }
  0x90   :  { %1611 = vmatmul.mubr.msk.bf16.gmra.mxu0 %vm110_vm3, %v1738_v40  ;;  %1665 = vmatmul.mubr.msk.bf16.gmra.mxu1 %vm110_vm3, %v1739_v41 }
  0x91   :  { %1614 = vmatprep.mubr.msk.bf16.mxu0 %vm1758_vm2, %v1756_v0  ;;  %1668 = vmatprep.mubr.msk.bf16.mxu1 %vm1758_vm2, %v1756_v0 }
  0x98   :  { %1615 = vmatmul.mubr.msk.bf16.gmra.mxu0 %vm110_vm3, %v1740_v42  ;;  %1669 = vmatmul.mubr.msk.bf16.gmra.mxu1 %vm110_vm3, %v1741_v43 }
  0x99   :  { %1618 = vmatprep.mubr.msk.bf16.mxu0 %vm1758_vm2, %v1756_v0  ;;  %1672 = vmatprep.mubr.msk.bf16.mxu1 %vm1758_vm2, %v1756_v0 }
  0xa0   :  { %1619 = vmatmul.mubr.msk.bf16.gmra.mxu0 %vm110_vm3, %v1742_v44  ;;  %1673 = vmatmul.mubr.msk.bf16.gmra.mxu1 %vm110_vm3, %v1743_v45 }
  0xa1   :  { %1622 = vmatprep.mubr.msk.bf16.mxu0 %vm1758_vm2, %v1756_v0  ;;  %1676 = vmatprep.mubr.msk.bf16.mxu1 %vm1758_vm2, %v1756_v0 }
  0xa8   :  { %1623 = vmatmul.mubr.msk.bf16.gmra.mxu0 %vm110_vm3, %v1744_v46  ;;  %1677 = vmatmul.mubr.msk.bf16.gmra.mxu1 %vm110_vm3, %v1745_v47 }
  0xa9   :  { %1626 = vmatprep.mubr.msk.bf16.mxu0 %vm1758_vm2, %v1756_v0  ;;  %1680 = vmatprep.mubr.msk.bf16.mxu1 %vm1758_vm2, %v1756_v0 }
  0xb0   :  { %1627 = vmatmul.mubr.msk.bf16.gmra.mxu0 %vm110_vm3, %v1746_v48  ;;  %1681 = vmatmul.mubr.msk.bf16.gmra.mxu1 %vm110_vm3, %v1747_v49 }
  0xb1   :  { %1630 = vmatprep.mubr.msk.bf16.mxu0 %vm1758_vm2, %v1756_v0  ;;  %1684 = vmatprep.mubr.msk.bf16.mxu1 %vm1758_vm2, %v1756_v0 }
  0xb8   :  { %1631 = vmatmul.mubr.msk.bf16.gmra.mxu0 %vm110_vm3, %v1748_v50  ;;  %1685 = vmatmul.mubr.msk.bf16.gmra.mxu1 %vm110_vm3, %v1749_v51 }
  0xb9   :  { %1634 = vmatprep.mubr.msk.bf16.mxu0 %vm1758_vm2, %v1756_v0  ;;  %1688 = vmatprep.mubr.msk.bf16.mxu1 %vm1758_vm2, %v1756_v0 }
  0xc0   :  { %1635 = vmatmul.mubr.msk.bf16.gmra.mxu0 %vm110_vm3, %v1750_v52  ;;  %1689 = vmatmul.mubr.msk.bf16.gmra.mxu1 %vm110_vm3, %v1751_v53 }
  0xc1   :  { %1638 = vmatprep.mubr.msk.bf16.mxu0 %vm1758_vm2, %v1756_v0  ;;  %1692 = vmatprep.mubr.msk.bf16.mxu1 %vm1758_vm2, %v1756_v0 }
  0xc8   :  { %v2084_v56 = vpop.f32.mrf.mxu0  ;;  %v2086_v57 = vpop.f32.mrf.mxu1  ;;  %1639 = vmatmul.mubr.msk.bf16.gmra.mxu0 %vm110_vm3, %v1752_v54  ;;  %1693 = vmatmul.mubr.msk.bf16.gmra.mxu1 %vm110_vm3, %v1753_v55 }
  0xc9   :  { %v557_v58 = vmax.f32 %v2084_v56, %v2086_v57  ;;  %1642 = vmatprep.mubr.msk.bf16.mxu0 %vm1758_vm2, %v1756_v0  ;;  %1696 = vmatprep.mubr.msk.bf16.mxu1 %vm1758_vm2, %v1756_v0 }
  0xca   :  { %v1488_v59 = vpop.f32.mrf.mxu0  ;;  %v1542_v60 = vpop.f32.mrf.mxu1 }
  0xcc   :  { %v2096_v61 = vpop.f32.mrf.mxu0  ;;  %v2098_v62 = vpop.f32.mrf.mxu1 }
  0xce   :  { %v1489_v3 = vpop.f32.mrf.mxu0  ;;  %v1543_v4 = vpop.f32.mrf.mxu1 }
  0xd0   :  { %v2108_v0 = vpop.f32.mrf.mxu0  ;;  %v2110_v5 = vpop.f32.mrf.mxu1  ;;  %1643 = vmatmul.mubr.msk.bf16.gmra.mxu0 %vm110_vm3, %v1754_v63  ;;  %1697 = vmatmul.mubr.msk.bf16.gmra.mxu1 %vm110_vm3, %v1755_v1 }
  0xd2   :  { %v1492_v7 = vpop.f32.mrf.mxu0  ;;  %v1546_v8 = vpop.f32.mrf.mxu1 }
  0xd4   :  { %v2116_v9 = vpop.f32.mrf.mxu0  ;;  %v2118_v10 = vpop.f32.mrf.mxu1 }
  0xd6   :  { %v1493_v12 = vpop.f32.mrf.mxu0  ;;  %v1547_v13 = vpop.f32.mrf.mxu1 }
  0xd8   :  { %v2122_v14 = vpop.f32.mrf.mxu0  ;;  %v2124_v15 = vpop.f32.mrf.mxu1 }
  0xda   :  { %v1496_v17 = vpop.f32.mrf.mxu0  ;;  %v1550_v18 = vpop.f32.mrf.mxu1 }
  0xdc   :  { %v2128_v19 = vpop.f32.mrf.mxu0  ;;  %v2130_v20 = vpop.f32.mrf.mxu1 }
  0xde   :  { %v1497_v22 = vpop.f32.mrf.mxu0  ;;  %v1551_v23 = vpop.f32.mrf.mxu1 }
  0xe0   :  { %v2134_v24 = vpop.f32.mrf.mxu0  ;;  %v2136_v25 = vpop.f32.mrf.mxu1 }
  0xe2   :  { %v1500_v27 = vpop.f32.mrf.mxu0  ;;  %v1554_v28 = vpop.f32.mrf.mxu1 }
  0xe4   :  { %v2140_v29 = vpop.f32.mrf.mxu0  ;;  %v2142_v30 = vpop.f32.mrf.mxu1 }
  0xe6   :  { %v1501_v32 = vpop.f32.mrf.mxu0  ;;  %v1555_v33 = vpop.f32.mrf.mxu1 }
  0xe8   :  { %v2146_v34 = vpop.f32.mrf.mxu0  ;;  %v2148_v35 = vpop.f32.mrf.mxu1 }
  0xea   :  { %v1504_v37 = vpop.f32.mrf.mxu0  ;;  %v1558_v38 = vpop.f32.mrf.mxu1 }
  0xec   :  { %v2152_v39 = vpop.f32.mrf.mxu0  ;;  %v2154_v40 = vpop.f32.mrf.mxu1 }
  0xee   :  { %v1505_v42 = vpop.f32.mrf.mxu0  ;;  %v1559_v43 = vpop.f32.mrf.mxu1 }
  0xf0   :  { %v2158_v44 = vpop.f32.mrf.mxu0  ;;  %v2160_v45 = vpop.f32.mrf.mxu1 }
  0xf2   :  { %v1508_v47 = vpop.f32.mrf.mxu0  ;;  %v1562_v48 = vpop.f32.mrf.mxu1 }
  0xf4   :  { %v2164_v49 = vpop.f32.mrf.mxu0  ;;  %v2166_v50 = vpop.f32.mrf.mxu1 }
  0xf6   :  { %v1509_v52 = vpop.f32.mrf.mxu0  ;;  %v1563_v53 = vpop.f32.mrf.mxu1 }
  0xf8   :  { %v2170_v54 = vpop.f32.mrf.mxu0  ;;  %v2172_v55 = vpop.f32.mrf.mxu1 }
  0xfa   :  { %v1512_v60 = vpop.f32.mrf.mxu0  ;;  %v1566_v63 = vpop.f32.mrf.mxu1 }
  0xfc   :  { %v2176_v1 = vpop.f32.mrf.mxu0  ;;  %v2178_v3 = vpop.f32.mrf.mxu1 }
  0xfe   :  { %v1513_v7 = vpop.f32.mrf.mxu0  ;;  %v1567_v8 = vpop.f32.mrf.mxu1 }
 0x100   :  { %v2182_v12 = vpop.f32.mrf.mxu0  ;;  %v2184_v13 = vpop.f32.mrf.mxu1 }
 0x102   :  { %v1516_v18 = vpop.f32.mrf.mxu0  ;;  %v1570_v22 = vpop.f32.mrf.mxu1 }
 0x104   :  { %v2188_v23 = vpop.f32.mrf.mxu0  ;;  %v2190_v27 = vpop.f32.mrf.mxu1 }
 0x106   :  { %v1517_v32 = vpop.f32.mrf.mxu0  ;;  %v1571_v33 = vpop.f32.mrf.mxu1 }
 0x108   :  { %v2194_v37 = vpop.f32.mrf.mxu0  ;;  %v2196_v38 = vpop.f32.mrf.mxu1 }
 0x10a   :  { %v1520_v43 = vpop.f32.mrf.mxu0  ;;  %v1574_v47 = vpop.f32.mrf.mxu1 }
 0x10c   :  { %v2200_v48 = vpop.f32.mrf.mxu0  ;;  %v2202_v52 = vpop.f32.mrf.mxu1 }
 0x10e   :  { %v1521_v60 = vpop.f32.mrf.mxu0  ;;  %v1575_v63 = vpop.f32.mrf.mxu1 }
 0x110   :  { %v2206_v7 = vpop.f32.mrf.mxu0  ;;  %v2208_v8 = vpop.f32.mrf.mxu1 }
 0x112   :  { %v1524_v22 = vpop.f32.mrf.mxu0  ;;  %v1578_v32 = vpop.f32.mrf.mxu1 }
 0x114   :  { %v2212_v33 = vpop.f32.mrf.mxu0  ;;  %v2214_v43 = vpop.f32.mrf.mxu1 }
 0x116   :  { %v1525_v42 = vpop.f32.mrf.mxu0  ;;  %v1579_v53 = vpop.f32.mrf.mxu1 }
 0x118   :  { %v2218_v60 = vpop.f32.mrf.mxu0  ;;  %v2220_v63 = vpop.f32.mrf.mxu1 }
 0x11a   :  { %v1528_v17 = vpop.f32.mrf.mxu0  ;;  %v1582_v18 = vpop.f32.mrf.mxu1 }
 0x11c   :  { %v2224_v22 = vpop.f32.mrf.mxu0  ;;  %v2226_v32 = vpop.f32.mrf.mxu1 }
 0x11e   :  { %v1529_v59 = vpop.f32.mrf.mxu0  ;;  %v1583_v47 = vpop.f32.mrf.mxu1 }
 0x120   :  { %v2230_v42 = vpop.f32.mrf.mxu0  ;;  %v2232_v53 = vpop.f32.mrf.mxu1 }
 0x122   :  { %v1532_v46 = vpop.f32.mrf.mxu0  ;;  %v1586_v28 = vpop.f32.mrf.mxu1 }
 0x124   :  { %v2236_v17 = vpop.f32.mrf.mxu0  ;;  %v2238_v18 = vpop.f32.mrf.mxu1 }
 0x126   :  { %v1533_v36 = vpop.f32.mrf.mxu0  ;;  %v1587_v4 = vpop.f32.mrf.mxu1 }
 0x127   :  { %v2254_v4 = vld [vmem:[%s2455_s2] ss:$0 sm:$0xff] }
 0x128   :  { %v2242_v59 = vpop.f32.mrf.mxu0  ;;  %v2244_v47 = vpop.f32.mrf.mxu1 }
 0x129   :  { %2458 = vst [vmem:[#allocation2_spill] sm:$0xff] %v2244_v47 }
 0x12a   :  { %v1536_v26 = vpop.f32.mrf.mxu0  ;;  %v1590_v51 = vpop.f32.mrf.mxu1 }
 0x12c   :  { %v290_v46 = vpop.f32.mrf.mxu0  ;;  %v554_v28 = vpop.f32.mrf.mxu1 }
 0x12e   :  { %v1537_v21 = vpop.f32.mrf.mxu0  ;;  %v1591_v16 = vpop.f32.mrf.mxu1 }
 0x12f   :  { %v2459_v16 = vmax.f32 %v2096_v61, %v2098_v62 }
 0x130   :  { %v744_v11 = vpop.f32.mrf.mxu0  ;;  %v1033_v6 = vpop.f32.mrf.mxu1 }
 0x131   :  { %v846_v36 = vmax.f32 %v557_v58, %v744_v11 }
 0x132   :  { %v1596_v41 = vpop.f32.mrf.mxu0  ;;  %v1650_v2 = vpop.f32.mrf.mxu1 }
 0x133   :  { %v1135_v31 = vmax.f32 %v846_v36, %v1033_v6  ;;  %v2460_v6 = vmax.f32 %v2108_v0, %v2110_v5 }
 0x134   :  { %v747_v26 = vpop.f32.mrf.mxu0  ;;  %v1036_v51 = vpop.f32.mrf.mxu1 }
 0x135   :  { %v1167_v46 = vadd.f32 %v2254_v4, %v1135_v31  ;;  %v847_v21 = vmax.f32 %v2459_v16, %v747_v26  ;;  %v2461_v16 = vmax.f32 %v2116_v9, %v2118_v10 }
 0x136   :  { %v1597_v28 = vpop.f32.mrf.mxu0  ;;  %v1651_v56 = vpop.f32.mrf.mxu1 }
 0x137   :  { %v1192_v57 = vmax.f32 %v1167_v46, 0.0  ;;  %v1136_v58 = vmax.f32 %v847_v21, %v1036_v51 }
 0x138   :  { %v752_v11 = vpop.f32.mrf.mxu0  ;;  %v1041_v47 = vpop.f32.mrf.mxu1 }
 0x139   :  { %1218 = vst.msk [vmem:[%s2456_s3] sm:$0xff] %vm1217_vm4, %v1192_v57  ;;  %v1168_v2 = vadd.f32 %v2254_v4, %v1136_v58  ;;  %v848_v31 = vmax.f32 %v2460_v6, %v752_v11  ;;  %v2462_v11 = vmax.f32 %v2122_v14, %v2124_v15 }
 0x13a   :  { %v1600_v61 = vpop.f32.mrf.mxu0  ;;  %v1654_v62 = vpop.f32.mrf.mxu1 }
 0x13b   :  { %v1193_v41 = vmax.f32 %v1168_v2, 0.0  ;;  %v1137_v36 = vmax.f32 %v848_v31, %v1041_v47 }
 0x13c   :  { %v755_v26 = vpop.f32.mrf.mxu0  ;;  %v1044_v46 = vpop.f32.mrf.mxu1 }
 0x13d   :  { %1219 = vst.msk [vmem:[%s2456_s3 + $0x8] sm:$0xff] %vm1217_vm4, %v1193_v41  ;;  %v1169_v51 = vadd.f32 %v2254_v4, %v1137_v36  ;;  %v849_v21 = vmax.f32 %v2461_v16, %v755_v26  ;;  %v2463_v36 = vmax.f32 %v2128_v19, %v2130_v20 }
 0x13e   :  { %v1601_v28 = vpop.f32.mrf.mxu0  ;;  %v1655_v0 = vpop.f32.mrf.mxu1 }
 0x13f   :  { %v1194_v5 = vmax.f32 %v1169_v51, 0.0  ;;  %v1138_v56 = vmax.f32 %v849_v21, %v1044_v46  ;;  %v2464_v0 = vmax.f32 %v2134_v24, %v2136_v25 }
 0x140   :  { %v760_v57 = vpop.f32.mrf.mxu0  ;;  %v1049_v58 = vpop.f32.mrf.mxu1 }
 0x141   :  { %1220 = vst.msk [vmem:[%s2456_s3 + $0x10] sm:$0xff] %vm1217_vm4, %v1194_v5  ;;  %v1170_v47 = vadd.f32 %v2254_v4, %v1138_v56  ;;  %v850_v2 = vmax.f32 %v2462_v11, %v760_v57 }
 0x142   :  { %v1604_v6 = vpop.f32.mrf.mxu0  ;;  %v1658_v9 = vpop.f32.mrf.mxu1 }
 0x143   :  { %v1195_v10 = vmax.f32 %v1170_v47, 0.0  ;;  %v1139_v31 = vmax.f32 %v850_v2, %v1049_v58  ;;  %v2465_v2 = vmax.f32 %v2140_v29, %v2142_v30 }
 0x144   :  { %v763_v61 = vpop.f32.mrf.mxu0  ;;  %v1052_v62 = vpop.f32.mrf.mxu1 }
 0x145   :  { %1221 = vst.msk [vmem:[%s2456_s3 + $0x18] sm:$0xff] %vm1217_vm4, %v1195_v10  ;;  %v1171_v41 = vadd.f32 %v2254_v4, %v1139_v31  ;;  %v851_v26 = vmax.f32 %v2463_v36, %v763_v61 }
 0x146   :  { %v1605_v46 = vpop.f32.mrf.mxu0  ;;  %v1659_v14 = vpop.f32.mrf.mxu1 }
 0x147   :  { %v1196_v15 = vmax.f32 %v1171_v41, 0.0  ;;  %v1140_v51 = vmax.f32 %v851_v26, %v1052_v62  ;;  %v2466_v41 = vmax.f32 %v2146_v34, %v2148_v35 }
 0x148   :  { %v768_v16 = vpop.f32.mrf.mxu0  ;;  %v1057_v21 = vpop.f32.mrf.mxu1 }
 0x149   :  { %1222 = vst.msk [vmem:[%s2456_s3 + $0x20] sm:$0xff] %vm1217_vm4, %v1196_v15  ;;  %v1172_v28 = vadd.f32 %v2254_v4, %v1140_v51  ;;  %v852_v5 = vmax.f32 %v2464_v0, %v768_v16  ;;  %v2467_v16 = vmax.f32 %v2152_v39, %v2154_v40 }
 0x14a   :  { %v1608_v56 = vpop.f32.mrf.mxu0  ;;  %v1662_v19 = vpop.f32.mrf.mxu1 }
 0x14b   :  { %v1197_v20 = vmax.f32 %v1172_v28, 0.0  ;;  %v1141_v57 = vmax.f32 %v852_v5, %v1057_v21 }
 0x14c   :  { %v771_v58 = vpop.f32.mrf.mxu0  ;;  %v1060_v47 = vpop.f32.mrf.mxu1 }
 0x14d   :  { %1223 = vst.msk [vmem:[%s2456_s3 + $0x28] sm:$0xff] %vm1217_vm4, %v1197_v20  ;;  %v1173_v11 = vadd.f32 %v2254_v4, %v1141_v57  ;;  %v853_v6 = vmax.f32 %v2465_v2, %v771_v58  ;;  %v2468_v20 = vmax.f32 %v2158_v44, %v2160_v45 }
 0x14e   :  { %v1609_v9 = vpop.f32.mrf.mxu0  ;;  %v1663_v24 = vpop.f32.mrf.mxu1 }
 0x14f   :  { %v1198_v25 = vmax.f32 %v1173_v11, 0.0  ;;  %v1142_v10 = vmax.f32 %v853_v6, %v1060_v47  ;;  %v2469_v9 = vmax.f32 %v2164_v49, %v2166_v50 }
 0x150   :  { %v776_v31 = vpop.f32.mrf.mxu0  ;;  %v1065_v61 = vpop.f32.mrf.mxu1 }
 0x151   :  { %1224 = vst.msk [vmem:[%s2456_s3 + $0x30] sm:$0xff] %vm1217_vm4, %v1198_v25  ;;  %v1174_v62 = vadd.f32 %v2254_v4, %v1142_v10  ;;  %v854_v36 = vmax.f32 %v2466_v41, %v776_v31  ;;  %v2470_v41 = vmax.f32 %v2170_v54, %v2172_v55 }
 0x152   :  { %v1612_v26 = vpop.f32.mrf.mxu0  ;;  %v1666_v29 = vpop.f32.mrf.mxu1 }
 0x153   :  { %v1199_v30 = vmax.f32 %v1174_v62, 0.0  ;;  %v1143_v46 = vmax.f32 %v854_v36, %v1065_v61 }
 0x154   :  { %v779_v14 = vpop.f32.mrf.mxu0  ;;  %v1068_v15 = vpop.f32.mrf.mxu1 }
 0x155   :  { %1225 = vst.msk [vmem:[%s2456_s3 + $0x38] sm:$0xff] %vm1217_vm4, %v1199_v30  ;;  %v1175_v51 = vadd.f32 %v2254_v4, %v1143_v46  ;;  %v855_v21 = vmax.f32 %v2467_v16, %v779_v14 }
 0x156   :  { %v1613_v28 = vpop.f32.mrf.mxu0  ;;  %v1667_v34 = vpop.f32.mrf.mxu1 }
 0x157   :  { %v1200_v35 = vmax.f32 %v1175_v51, 0.0  ;;  %v1144_v0 = vmax.f32 %v855_v21, %v1068_v15  ;;  %v2471_v15 = vmax.f32 %v2176_v1, %v2178_v3 }
 0x158   :  { %v784_v5 = vpop.f32.mrf.mxu0  ;;  %v1073_v56 = vpop.f32.mrf.mxu1 }
 0x159   :  { %1226 = vst.msk [vmem:[%s2456_s3 + $0x40] sm:$0xff] %vm1217_vm4, %v1200_v35  ;;  %v1176_v19 = vadd.f32 %v2254_v4, %v1144_v0  ;;  %v856_v57 = vmax.f32 %v2468_v20, %v784_v5  ;;  %v2472_v0 = vmax.f32 %v2182_v12, %v2184_v13 }
 0x15a   :  { %v1616_v58 = vpop.f32.mrf.mxu0  ;;  %v1670_v39 = vpop.f32.mrf.mxu1 }
 0x15b   :  { %v1201_v40 = vmax.f32 %v1176_v19, 0.0  ;;  %v1145_v47 = vmax.f32 %v856_v57, %v1073_v56  ;;  %v2473_v39 = vmax.f32 %v2188_v23, %v2190_v27 }
 0x15c   :  { %v787_v11 = vpop.f32.mrf.mxu0  ;;  %v1076_v2 = vpop.f32.mrf.mxu1 }
 0x15d   :  { %1227 = vst.msk [vmem:[%s2456_s3 + $0x48] sm:$0xff] %vm1217_vm4, %v1201_v40  ;;  %v1177_v6 = vadd.f32 %v2254_v4, %v1145_v47  ;;  %v857_v24 = vmax.f32 %v2469_v9, %v787_v11 }
 0x15e   :  { %v1617_v25 = vpop.f32.mrf.mxu0  ;;  %v1671_v44 = vpop.f32.mrf.mxu1 }
 0x15f   :  { %v1202_v45 = vmax.f32 %v1177_v6, 0.0  ;;  %v1146_v10 = vmax.f32 %v857_v24, %v1076_v2  ;;  %v2474_v24 = vmax.f32 %v2194_v37, %v2196_v38 }
 0x160   :  { %v792_v31 = vpop.f32.mrf.mxu0  ;;  %v1081_v61 = vpop.f32.mrf.mxu1 }
 0x161   :  { %1228 = vst.msk [vmem:[%s2456_s3 + $0x50] sm:$0xff] %vm1217_vm4, %v1202_v45  ;;  %v1178_v62 = vadd.f32 %v2254_v4, %v1146_v10  ;;  %v858_v36 = vmax.f32 %v2470_v41, %v792_v31 }
 0x162   :  { %v1620_v26 = vpop.f32.mrf.mxu0  ;;  %v1674_v49 = vpop.f32.mrf.mxu1 }
 0x163   :  { %v1203_v50 = vmax.f32 %v1178_v62, 0.0  ;;  %v1147_v29 = vmax.f32 %v858_v36, %v1081_v61  ;;  %v2475_v62 = vmax.f32 %v2200_v48, %v2202_v52 }
 0x164   :  { %v795_v30 = vpop.f32.mrf.mxu0  ;;  %v1084_v46 = vpop.f32.mrf.mxu1 }
 0x165   :  { %1229 = vst.msk [vmem:[%s2456_s3 + $0x58] sm:$0xff] %vm1217_vm4, %v1203_v50  ;;  %v1179_v14 = vadd.f32 %v2254_v4, %v1147_v29  ;;  %v859_v51 = vmax.f32 %v2471_v15, %v795_v30  ;;  %v2476_v30 = vmax.f32 %v2206_v7, %v2208_v8 }
 0x166   :  { %v1621_v16 = vpop.f32.mrf.mxu0  ;;  %v1675_v54 = vpop.f32.mrf.mxu1 }
 0x167   :  { %v1204_v55 = vmax.f32 %v1179_v14, 0.0  ;;  %v1148_v21 = vmax.f32 %v859_v51, %v1084_v46 }
 0x168   :  { %v800_v28 = vpop.f32.mrf.mxu0  ;;  %v1089_v34 = vpop.f32.mrf.mxu1 }
 0x169   :  { %1230 = vst.msk [vmem:[%s2456_s3 + $0x60] sm:$0xff] %vm1217_vm4, %v1204_v55  ;;  %v1180_v35 = vadd.f32 %v2254_v4, %v1148_v21  ;;  %v860_v5 = vmax.f32 %v2472_v0, %v800_v28  ;;  %v2477_v55 = vmax.f32 %v2212_v33, %v2214_v43 }
 0x16a   :  { %v1624_v56 = vpop.f32.mrf.mxu0  ;;  %v1678_v1 = vpop.f32.mrf.mxu1 }
 0x16b   :  { %v1205_v3 = vmax.f32 %v1180_v35, 0.0  ;;  %v1149_v19 = vmax.f32 %v860_v5, %v1089_v34  ;;  %v2478_v56 = vmax.f32 %v2218_v60, %v2220_v63 }
 0x16c   :  { %v803_v20 = vpop.f32.mrf.mxu0  ;;  %v1092_v57 = vpop.f32.mrf.mxu1 }
 0x16d   :  { %1231 = vst.msk [vmem:[%s2456_s3 + $0x68] sm:$0xff] %vm1217_vm4, %v1205_v3  ;;  %v1181_v58 = vadd.f32 %v2254_v4, %v1149_v19  ;;  %v861_v40 = vmax.f32 %v2473_v39, %v803_v20  ;;  %v2479_v39 = vmax.f32 %v2224_v22, %v2226_v32 }
 0x16e   :  { %v1625_v47 = vpop.f32.mrf.mxu0  ;;  %v1679_v12 = vpop.f32.mrf.mxu1 }
 0x16f   :  { %v1206_v13 = vmax.f32 %v1181_v58, 0.0  ;;  %v1150_v11 = vmax.f32 %v861_v40, %v1092_v57 }
 0x170   :  { %v808_v2 = vpop.f32.mrf.mxu0  ;;  %v1097_v6 = vpop.f32.mrf.mxu1 }
 0x171   :  { %1232 = vst.msk [vmem:[%s2456_s3 + $0x70] sm:$0xff] %vm1217_vm4, %v1206_v13  ;;  %v1182_v9 = vadd.f32 %v2254_v4, %v1150_v11  ;;  %v862_v25 = vmax.f32 %v2474_v24, %v808_v2 }
 0x172   :  { %v1628_v44 = vpop.f32.mrf.mxu0  ;;  %v1682_v23 = vpop.f32.mrf.mxu1 }
 0x173   :  { %v1207_v27 = vmax.f32 %v1182_v9, 0.0  ;;  %v1151_v45 = vmax.f32 %v862_v25, %v1097_v6  ;;  %v2480_v6 = vmax.f32 %v2230_v42, %v2232_v53 }
 0x174   :  { %v811_v10 = vpop.f32.mrf.mxu0  ;;  %v1100_v31 = vpop.f32.mrf.mxu1 }
 0x175   :  { %1233 = vst.msk [vmem:[%s2456_s3 + $0x78] sm:$0xff] %vm1217_vm4, %v1207_v27  ;;  %v1183_v61 = vadd.f32 %v2254_v4, %v1151_v45  ;;  %v863_v41 = vmax.f32 %v2475_v62, %v811_v10  ;;  %v2481_v45 = vmax.f32 %v2236_v17, %v2238_v18 }
 0x176   :  { %v1629_v36 = vpop.f32.mrf.mxu0  ;;  %v1683_v37 = vpop.f32.mrf.mxu1 }
 0x177   :  { %v1208_v38 = vmax.f32 %v1183_v61, 0.0  ;;  %v1152_v26 = vmax.f32 %v863_v41, %v1100_v31  ;;  %v2482_v37 = vld [vmem:[#allocation2_spill] sm:$0xff] }
 0x178   :  { %v816_v49 = vpop.f32.mrf.mxu0  ;;  %v1105_v50 = vpop.f32.mrf.mxu1 }
 0x179   :  { %1234 = vst.msk [vmem:[%s2456_s3 + $0x80] sm:$0xff] %vm1217_vm4, %v1208_v38  ;;  %v1184_v29 = vadd.f32 %v2254_v4, %v1152_v26  ;;  %v864_v46 = vmax.f32 %v2476_v30, %v816_v49  ;;  %v2483_v38 = vmax.f32 %v2242_v59, %v2482_v37 }
 0x17a   :  { %v1632_v14 = vpop.f32.mrf.mxu0  ;;  %v1686_v48 = vpop.f32.mrf.mxu1 }
 0x17b   :  { %v1209_v52 = vmax.f32 %v1184_v29, 0.0  ;;  %v1153_v15 = vmax.f32 %v864_v46, %v1105_v50 }
 0x17c   :  { %v819_v51 = vpop.f32.mrf.mxu0  ;;  %v1108_v16 = vpop.f32.mrf.mxu1 }
 0x17d   :  { %1235 = vst.msk [vmem:[%s2456_s3 + $0x88] sm:$0xff] %vm1217_vm4, %v1209_v52  ;;  %v1185_v54 = vadd.f32 %v2254_v4, %v1153_v15  ;;  %v865_v21 = vmax.f32 %v2477_v55, %v819_v51 }
 0x17e   :  { %v1633_v28 = vpop.f32.mrf.mxu0  ;;  %v1687_v7 = vpop.f32.mrf.mxu1 }
 0x17f   :  { %v1210_v8 = vmax.f32 %v1185_v54, 0.0  ;;  %v1154_v34 = vmax.f32 %v865_v21, %v1108_v16 }
 0x180   :  { %v824_v35 = vpop.f32.mrf.mxu0  ;;  %v1113_v0 = vpop.f32.mrf.mxu1 }
 0x181   :  { %1236 = vst.msk [vmem:[%s2456_s3 + $0x90] sm:$0xff] %vm1217_vm4, %v1210_v8  ;;  %v1186_v5 = vadd.f32 %v2254_v4, %v1154_v34  ;;  %v866_v1 = vmax.f32 %v2478_v56, %v824_v35 }
 0x182   :  { %v1636_v3 = vpop.f32.mrf.mxu0  ;;  %v1690_v33 = vpop.f32.mrf.mxu1 }
 0x183   :  { %v1211_v43 = vmax.f32 %v1186_v5, 0.0  ;;  %v1155_v19 = vmax.f32 %v866_v1, %v1113_v0 }
 0x184   :  { %v827_v20 = vpop.f32.mrf.mxu0  ;;  %v1116_v57 = vpop.f32.mrf.mxu1 }
 0x185   :  { %1237 = vst.msk [vmem:[%s2456_s3 + $0x98] sm:$0xff] %vm1217_vm4, %v1211_v43  ;;  %v1187_v58 = vadd.f32 %v2254_v4, %v1155_v19  ;;  %v867_v40 = vmax.f32 %v2479_v39, %v827_v20 }
 0x186   :  { %v1637_v47 = vpop.f32.mrf.mxu0  ;;  %v1691_v60 = vpop.f32.mrf.mxu1 }
 0x187   :  { %v1212_v63 = vmax.f32 %v1187_v58, 0.0  ;;  %v1156_v12 = vmax.f32 %v867_v40, %v1116_v57 }
 0x188   :  { %v832_v13 = vpop.f32.mrf.mxu0  ;;  %v1121_v11 = vpop.f32.mrf.mxu1 }
 0x189   :  { %1238 = vst.msk [vmem:[%s2456_s3 + $0xa0] sm:$0xff] %vm1217_vm4, %v1212_v63  ;;  %v1188_v2 = vadd.f32 %v2254_v4, %v1156_v12  ;;  %v868_v9 = vmax.f32 %v2480_v6, %v832_v13 }
 0x18a   :  { %v1640_v24 = vpop.f32.mrf.mxu0  ;;  %v1694_v22 = vpop.f32.mrf.mxu1 }
 0x18b   :  { %v1213_v32 = vmax.f32 %v1188_v2, 0.0  ;;  %v1157_v25 = vmax.f32 %v868_v9, %v1121_v11 }
 0x18c   :  { %v835_v44 = vpop.f32.mrf.mxu0  ;;  %v1124_v23 = vpop.f32.mrf.mxu1 }
 0x18d   :  { %1239 = vst.msk [vmem:[%s2456_s3 + $0xa8] sm:$0xff] %vm1217_vm4, %v1213_v32  ;;  %v1189_v27 = vadd.f32 %v2254_v4, %v1157_v25  ;;  %v869_v10 = vmax.f32 %v2481_v45, %v835_v44 }
 0x18e   :  { %v1641_v31 = vpop.f32.mrf.mxu0  ;;  %v1695_v42 = vpop.f32.mrf.mxu1 }
 0x18f   :  { %v1214_v53 = vmax.f32 %v1189_v27, 0.0  ;;  %v1158_v61 = vmax.f32 %v869_v10, %v1124_v23 }
 0x190   :  { %v840_v62 = vpop.f32.mrf.mxu0  ;;  %v1129_v41 = vpop.f32.mrf.mxu1 }
 0x191   :  { %1240 = vst.msk [vmem:[%s2456_s3 + $0xb0] sm:$0xff] %vm1217_vm4, %v1214_v53  ;;  %v1190_v36 = vadd.f32 %v2254_v4, %v1158_v61  ;;  %v870_v26 = vmax.f32 %v2483_v38, %v840_v62 }
 0x192   :  { %v1644_v49 = vpop.f32.mrf.mxu0  ;;  %v1698_v17 = vpop.f32.mrf.mxu1 }
 0x193   :  { %v1215_v18 = vmax.f32 %v1190_v36, 0.0  ;;  %v1159_v50 = vmax.f32 %v870_v26, %v1129_v41 }
 0x194   :  { %v843_v29 = vpop.f32.mrf.mxu0  ;;  %v1132_v30 = vpop.f32.mrf.mxu1 }
 0x195   :  { %1241 = vst.msk [vmem:[%s2456_s3 + $0xb8] sm:$0xff] %vm1217_vm4, %v1215_v18  ;;  %v1191_v46 = vadd.f32 %v2254_v4, %v1159_v50 }
 0x196   :  { %v1645_v14 = vpop.f32.mrf.mxu0  ;;  %v1699_v48 = vpop.f32.mrf.mxu1 }
 0x197   :  { %v1216_v52 = vmax.f32 %v1191_v46, 0.0 }
 0x199   :  { %1242 = vst.msk [vmem:[%s2456_s3 + $0xc0] sm:$0xff] %vm1217_vm4, %v1216_v52 }

// kernel: cnn_forward.4
= control target key start
LH: loop header
LB: loop body
LE: loop exit
PB: predicated region body
PF: predicated region fallthrough
CT: control target
= control target key end

     0   :  { %vm762_vm0 = vcmask 1044480   ;;  %v6852_v36 = vmov 0.0   ;;  %vm763_vm1 = vcmask 1045504   ;;  %v4928_v39 = vmov 65535   ;;  %s6848_s1 = inlined_call_operand.vmem [shape: bf16[875,32], index: 1, kind: input, shape index: {}]   ;;  %s6849_s0 = inlined_call_operand.vmem [shape: bf16[4,104,875], index: 0, kind: input, shape index: {}]   ;;  %s6850_s2 = inlined_call_operand.vmem [shape: f32[1,32], index: 2, kind: input, shape index: {}]   ;;  %s6851_s3 = inlined_call_operand.vmem [shape: f32[104,32], index: 3, kind: output, shape index: {}]  }
   0x1   :  { %v4953_v0 = vld [vmem:[%s6848_s1 + $0x78] sm:$0xff]   ;;  %v4976_v4 = vld [vmem:[%s6848_s1 + $0x70] sm:$0xff]   ;;  %v5000_v8 = vld [vmem:[%s6848_s1 + $0x68] sm:$0xff]   ;;  %v764_v40 = vsel %vm762_vm0, 4294967295, %v4928_v39  ;;  %vm4929_vm2 = vmmov 0   ;;  %vm740_vm3 = vcmask 875520  }
   0x2   :  { %v4958_v1 = vld [vmem:[%s6848_s1 + $0xf8] sm:$0xff]   ;;  %3627 = vmatprep.subr.bf16.mxu0 %v4953_v0  ;;  %v4982_v5 = vld [vmem:[%s6848_s1 + $0xf0] sm:$0xff]   ;;  %v5006_v9 = vld [vmem:[%s6848_s1 + $0xe8] sm:$0xff]   ;;  %v765_v44 = vsel %vm763_vm1, %v764_v40, 0  ;;  %vm3173_vm4 = vcmask 261120  }
   0x3   :  { %v4964_v2 = vld [vmem:[%s6848_s1 + $0x38] sm:$0xff]   ;;  %3685 = vmatprep.subr.bf16.mxu1 %v4958_v1  ;;  %v4988_v6 = vld [vmem:[%s6848_s1 + $0x30] sm:$0xff]   ;;  %v5012_v10 = vld [vmem:[%s6848_s1 + $0x28] sm:$0xff]  }
   0x4   :  { %v4970_v3 = vld [vmem:[%s6848_s1 + $0xb8] sm:$0xff]   ;;  %3628 = vmatpush3.bf16.msra.mxu0 %v4964_v2  ;;  %v4994_v7 = vld [vmem:[%s6848_s1 + $0xb0] sm:$0xff]   ;;  %v5018_v11 = vld [vmem:[%s6848_s1 + $0xa8] sm:$0xff]  }
   0x5   :  { %3686 = vmatpush3.bf16.msra.mxu1 %v4970_v3  ;;  %3629 = vmatprep.subr.bf16.mxu0 %v4976_v4  ;;  %v5024_v12 = vld [vmem:[%s6848_s1 + $0x60] sm:$0xff]   ;;  %v5048_v16 = vld [vmem:[%s6848_s1 + $0x58] sm:$0xff]   ;;  %v5072_v20 = vld [vmem:[%s6848_s1 + $0x50] sm:$0xff]  }
   0x6   :  { %3687 = vmatprep.subr.bf16.mxu1 %v4982_v5  ;;  %v5030_v13 = vld [vmem:[%s6848_s1 + $0xe0] sm:$0xff]   ;;  %v5054_v17 = vld [vmem:[%s6848_s1 + $0xd8] sm:$0xff]   ;;  %v5078_v21 = vld [vmem:[%s6848_s1 + $0xd0] sm:$0xff]  }
   0x7   :  { %v5036_v14 = vld [vmem:[%s6848_s1 + $0x20] sm:$0xff]   ;;  %v5060_v18 = vld [vmem:[%s6848_s1 + $0x18] sm:$0xff]   ;;  %v5084_v22 = vld [vmem:[%s6848_s1 + $0x10] sm:$0xff]  }
   0x8   :  { %3630 = vmatpush3.bf16.msra.mxu0 %v4988_v6  ;;  %v5042_v15 = vld [vmem:[%s6848_s1 + $0xa0] sm:$0xff]   ;;  %v5066_v19 = vld [vmem:[%s6848_s1 + $0x98] sm:$0xff]   ;;  %v5090_v23 = vld [vmem:[%s6848_s1 + $0x90] sm:$0xff]  }
   0x9   :  { %3688 = vmatpush3.bf16.msra.mxu1 %v4994_v7  ;;  %3631 = vmatprep.subr.bf16.mxu0 %v5000_v8  ;;  %v5096_v24 = vld [vmem:[%s6848_s1 + $0x48] sm:$0xff]   ;;  %v5120_v28 = vld [vmem:[%s6848_s1 + $0x40] sm:$0xff]   ;;  %v5158_v37 = vld [vmem:[%s6848_s1 + $0x178] sm:$0xff]  }
   0xa   :  { %3689 = vmatprep.subr.bf16.mxu1 %v5006_v9  ;;  %v5102_v25 = vld [vmem:[%s6848_s1 + $0xc8] sm:$0xff]   ;;  %v5126_v29 = vld [vmem:[%s6848_s1 + $0xc0] sm:$0xff]   ;;  %v5163_v38 = vld [vmem:[%s6848_s1 + $0x138] sm:$0xff]  }
   0xb   :  { %v5108_v26 = vld [vmem:[%s6848_s1 + $0x8] sm:$0xff]   ;;  %v5132_v30 = vld [vmem:[%s6848_s1] sm:$0xff]   ;;  %v4590_v41 = vld [vmem:[%s6849_s0 + $0x3c] ss:$28 sps:$4 sm:$0xff]  }
   0xc   :  { %3632 = vmatpush3.bf16.msra.mxu0 %v5012_v10  ;;  %v5114_v27 = vld [vmem:[%s6848_s1 + $0x88] sm:$0xff]   ;;  %v5138_v31 = vld [vmem:[%s6848_s1 + $0x80] sm:$0xff]   ;;  %v5176_v43 = vld [vmem:[%s6848_s1 + $0x170] sm:$0xff]  }
   0xd   :  { %3690 = vmatpush3.bf16.msra.mxu1 %v5018_v11  ;;  %3633 = vmatprep.subr.bf16.mxu0 %v5024_v12  ;;  %v4582_v32 = vld [vmem:[%s6849_s0] ss:$28 sps:$4 sm:$0xff]   ;;  %v4585_v34 = vld [vmem:[%s6849_s0 + $0x8] ss:$28 sps:$4 sm:$0xff]   ;;  %v4595_v45 = vld [vmem:[%s6848_s1 + $0x1b0] sm:$0x3f]  }
   0xe   :  { %3691 = vmatprep.subr.bf16.mxu1 %v5030_v13  ;;  %v4584_v33 = vld [vmem:[%s6849_s0 + $0x4] ss:$28 sps:$4 sm:$0xff]   ;;  %v4587_v35 = vld [vmem:[%s6849_s0 + $0xc] ss:$28 sps:$4 sm:$0xff]   ;;  %v4596_v46 = vld [vmem:[%s6849_s0 + $0x38] ss:$28 sps:$4 sm:$0xff]   ;;  %v5188_v48 = vand.u32 %v4595_v45, %v765_v44 }
   0xf   :  { %801 = vmatprep.mubr.bf16.mxu0 %v4584_v33  ;;  %889 = vmatprep.mubr.bf16.mxu1 %v4587_v35  ;;  %v4592_v42 = vld [vmem:[%s6849_s0 + $0x44] ss:$28 sps:$4 sm:$0xff]   ;;  %v5193_v49 = vld [vmem:[%s6848_s1 + $0x130] sm:$0xff]   ;;  %v5198_v50 = vld [vmem:[%s6848_s1 + $0x168] sm:$0xff]  }
  0x10   :  { %3634 = vmatpush3.bf16.msra.mxu0 %v5036_v14  ;;  %v4597_v47 = vld [vmem:[%s6849_s0 + $0x40] ss:$28 sps:$4 sm:$0xff]   ;;  %6880 = vst [vmem:[#allocation2_spill] sm:$0xff] %v5188_v48  ;;  %v4600_v51 = vld [vmem:[%s6849_s0 + $0x74] ss:$28 sps:$4 sm:$0xff]   ;;  %v5213_v53 = vld [vmem:[%s6848_s1 + $0x128] sm:$0xff]  }
  0x11   :  { %3692 = vmatpush3.bf16.msra.mxu1 %v5042_v15  ;;  %3635 = vmatprep.subr.bf16.mxu0 %v5048_v16  ;;  %v4602_v52 = vld [vmem:[%s6849_s0 + $0x7c] ss:$28 sps:$4 sm:$0xff]   ;;  %v5218_v54 = vld [vmem:[%s6848_s1 + $0x1a8] sm:$0xff]   ;;  %v5229_v57 = vld [vmem:[%s6848_s1 + $0x160] sm:$0xff]  }
  0x12   :  { %3693 = vmatprep.subr.bf16.mxu1 %v5054_v17  ;;  %v4606_v55 = vld [vmem:[%s6849_s0 + $0x70] ss:$28 sps:$4 sm:$0xff]   ;;  %v4607_v56 = vld [vmem:[%s6849_s0 + $0x78] ss:$28 sps:$4 sm:$0xff]   ;;  %v5236_v58 = vld [vmem:[%s6848_s1 + $0x120] sm:$0xff]  }
  0x13   :  { %v4610_v59 = vld [vmem:[%s6849_s0 + $0xac] ss:$28 sps:$4 sm:$0xff]   ;;  %v4612_v60 = vld [vmem:[%s6849_s0 + $0xb4] ss:$28 sps:$4 sm:$0xff]   ;;  %v5249_v61 = vld [vmem:[%s6848_s1 + $0x1a0] sm:$0xff]  }
  0x14   :  { %3636 = vmatpush3.bf16.msra.mxu0 %v5060_v18  ;;  %v4615_v62 = vld [vmem:[%s6849_s0 + $0xa8] ss:$28 sps:$4 sm:$0xff]   ;;  %v5258_v63 = vld [vmem:[%s6848_s1 + $0x158] sm:$0xff]   ;;  %v4616_v33 = vld [vmem:[%s6849_s0 + $0xb0] ss:$28 sps:$4 sm:$0xff]  }
  0x15   :  { %3694 = vmatpush3.bf16.msra.mxu1 %v5066_v19  ;;  %3637 = vmatprep.subr.bf16.mxu0 %v5072_v20  ;;  %v4621_v35 = vld [vmem:[%s6849_s0 + $0xec] ss:$28 sps:$4 sm:$0xff]   ;;  %v5281_v39 = vld [vmem:[%s6848_s1 + $0x198] sm:$0xff]   ;;  %v5287_v40 = vld [vmem:[%s6848_s1 + $0x150] sm:$0xff]  }
  0x16   :  { %3695 = vmatprep.subr.bf16.mxu1 %v5078_v21  ;;  %v4625_v44 = vld [vmem:[%s6849_s0 + $0xe8] ss:$28 sps:$4 sm:$0xff]   ;;  %v4628_v45 = vld [vmem:[%s6849_s0 + $0x11c] ss:$28 sps:$4 sm:$0xff]  }
  0x18   :  { %3638 = vmatpush3.bf16.msra.mxu0 %v5084_v22 }
  0x19   :  { %3696 = vmatpush3.bf16.msra.mxu1 %v5090_v23  ;;  %3639 = vmatprep.subr.bf16.mxu0 %v5096_v24 }
  0x1a   :  { %3697 = vmatprep.subr.bf16.mxu1 %v5102_v25 }
  0x1c   :  { %3640 = vmatpush3.bf16.msra.mxu0 %v5108_v26 }
  0x1d   :  { %3698 = vmatpush3.bf16.msra.mxu1 %v5114_v27  ;;  %3641 = vmatprep.subr.bf16.mxu0 %v5120_v28 }
  0x1e   :  { %3699 = vmatprep.subr.bf16.mxu1 %v5126_v29 }
  0x20   :  { %3642 = vmatpush3.bf16.msra.mxu0 %v5132_v30 }
  0x21   :  { %3700 = vmatpush3.bf16.msra.mxu1 %v5138_v31  ;;  %3743 = vmatprep.subr.bf16.mxu0 %v5158_v37 }
  0x22   :  { %4379 = vmatprep.subr.bf16.mxu1 %v6852_v36 }
  0x23   :  { %802 = vmatmul.mubr.bf16.vlgmr.msra.gmra.mxu0 %v4582_v32  ;;  %v5264_v32 = vld [vmem:[%s6848_s1 + $0x118] sm:$0xff]  }
  0x24   :  { %890 = vmatmul.mubr.bf16.vlgmr.msra.gmra.mxu1 %v4585_v34  ;;  %3744 = vmatpush3.bf16.msra.mxu0 %v5163_v38  ;;  %v4619_v34 = vld [vmem:[%s6849_s0 + $0xe4] ss:$28 sps:$4 sm:$0xff]  }
  0x25   :  { %809 = vmatprep.mubr.bf16.mxu0 %v4590_v41  ;;  %897 = vmatprep.mubr.bf16.mxu1 %v4592_v42  ;;  %v5292_v41 = vld [vmem:[%s6848_s1 + $0x110] sm:$0xff]   ;;  %v4624_v42 = vld [vmem:[%s6849_s0 + $0xe0] ss:$28 sps:$4 sm:$0xff]  }
  0x26   :  { %3745 = vmatprep.subr.bf16.mxu0 %v5176_v43  ;;  %4380 = vmatpush3.bf16.msra.mxu1 %v5188_v48 }
  0x27   :  { %4381 = vmatprep.subr.bf16.mxu1 %v6852_v36 }
  0x28   :  { %3746 = vmatpush3.bf16.msra.mxu0 %v5193_v49 }
  0x29   :  { %3747 = vmatprep.subr.bf16.mxu0 %v5198_v50 }
  0x2a   :  { %4382 = vmatpush3.bf16.msra.mxu1 %v5218_v54 }
  0x2b   :  { %810 = vmatmul.mubr.bf16.gmra.mxu0 %v4596_v46  ;;  %4383 = vmatprep.subr.bf16.mxu1 %v6852_v36  ;;  %v4630_v46 = vld [vmem:[%s6849_s0 + $0x124] ss:$28 sps:$4 sm:$0xff]  }
  0x2c   :  { %898 = vmatmul.mubr.bf16.gmra.mxu1 %v4597_v47  ;;  %817 = vmatprep.mubr.bf16.mxu0 %v4600_v51  ;;  %v5312_v47 = vld [vmem:[%s6848_s1 + $0x190] sm:$0xff]   ;;  %v5317_v51 = vld [vmem:[%s6848_s1 + $0x148] sm:$0xff]  }
  0x2d   :  { %905 = vmatprep.mubr.bf16.mxu1 %v4602_v52  ;;  %3748 = vmatpush3.bf16.msra.mxu0 %v5213_v53  ;;  %v5323_v52 = vld [vmem:[%s6848_s1 + $0x108] sm:$0xff]  }
  0x2e   :  { %3749 = vmatprep.subr.bf16.mxu0 %v5229_v57  ;;  %4384 = vmatpush3.bf16.msra.mxu1 %v5249_v61 }
  0x2f   :  { %4385 = vmatprep.subr.bf16.mxu1 %v6852_v36 }
  0x31   :  { %3750 = vmatpush3.bf16.msra.mxu0 %v5236_v58 }
  0x32   :  { %3751 = vmatprep.subr.bf16.mxu0 %v5258_v63  ;;  %4386 = vmatpush3.bf16.msra.mxu1 %v5281_v39 }
  0x33   :  { %818 = vmatmul.mubr.bf16.gmra.mxu0 %v4606_v55  ;;  %4387 = vmatprep.subr.bf16.mxu1 %v6852_v36  ;;  %v173_v55 = vld [vmem:[%s6849_s0 + $0x150] sm:$0xff] }
  0x34   :  { %906 = vmatmul.mubr.bf16.gmra.mxu1 %v4607_v56  ;;  %825 = vmatprep.mubr.bf16.mxu0 %v4610_v59  ;;  %v5333_v56 = vld [vmem:[%s6848_s1 + $0x188] sm:$0xff]   ;;  %v174_v59 = vld [vmem:[%s6849_s0 + $0x158] sm:$0xff] }
  0x35   :  { %913 = vmatprep.mubr.bf16.mxu1 %v4612_v60  ;;  %3752 = vmatpush3.bf16.msra.mxu0 %v5264_v32  ;;  %v5341_v60 = vld [vmem:[%s6848_s1 + $0x140] sm:$0xff]  }
  0x36   :  { %3753 = vmatprep.subr.bf16.mxu0 %v5287_v40  ;;  %4388 = vmatpush3.bf16.msra.mxu1 %v5312_v47 }
  0x37   :  { %4389 = vmatprep.subr.bf16.mxu1 %v6852_v36 }
  0x39   :  { %3754 = vmatpush3.bf16.msra.mxu0 %v5292_v41 }
  0x3a   :  { %3755 = vmatprep.subr.bf16.mxu0 %v5317_v51  ;;  %4390 = vmatpush3.bf16.msra.mxu1 %v5333_v56 }
  0x3b   :  { %826 = vmatmul.mubr.bf16.gmra.mxu0 %v4615_v62  ;;  %v5347_v62 = vld [vmem:[%s6848_s1 + $0x100] sm:$0xff]   ;;  %4391 = vmatprep.subr.bf16.mxu1 %v6852_v36  ;;  %v4647_v36 = vld [vmem:[%s6849_s0 + $0x14] ss:$28 sps:$4 sm:$0xff]  }
  0x3c   :  { %914 = vmatmul.mubr.bf16.gmra.mxu1 %v4616_v33  ;;  %833 = vmatprep.mubr.bf16.mxu0 %v4619_v34  ;;  %6881 = vst [vmem:[#allocation3_spill] sm:$0xff] %v5347_v62  ;;  %v5354_v33 = vld [vmem:[%s6848_s1 + $0x180] sm:$0xff]   ;;  %v4633_v34 = vld [vmem:[%s6849_s0 + $0x118] ss:$28 sps:$4 sm:$0xff]  }
  0x3d   :  { %921 = vmatprep.mubr.bf16.mxu1 %v4621_v35  ;;  %3756 = vmatpush3.bf16.msra.mxu0 %v5323_v52  ;;  %v4634_v35 = vld [vmem:[%s6849_s0 + $0x120] ss:$28 sps:$4 sm:$0xff]  }
  0x3e   :  { %3757 = vmatprep.subr.bf16.mxu0 %v5341_v60  ;;  %4392 = vmatpush3.bf16.msra.mxu1 %v5354_v33 }
  0x3f   :  { %3873 = vmatprep.subr.bf16.mxu1 %v4958_v1  ;;  %v4648_v1 = vld [vmem:[%s6849_s0 + $0x18] ss:$28 sps:$4 sm:$0xff]  }
  0x41   :  { %3758 = vmatpush3.bf16.msra.mxu0 %v5347_v62  ;;  %v6882_v62 = vmov 0.0  }
  0x42   :  { %3815 = vmatprep.subr.bf16.mxu0 %v4953_v0  ;;  %v4645_v0 = vld [vmem:[%s6849_s0 + $0x10] ss:$28 sps:$4 sm:$0xff]  }
  0x43   :  { %834 = vmatmul.mubr.bf16.gmra.mxu0 %v4624_v42  ;;  %v3234_v42 = vcombine.high %v173_v55, %v173_v55 }
  0x44   :  { %922 = vmatmul.mubr.bf16.gmra.mxu1 %v4625_v44  ;;  %841 = vmatprep.mubr.bf16.mxu0 %v4628_v45  ;;  %v3236_v44 = vcombine.high %v174_v59, %v174_v59  ;;  %v3233_v45 = vcombine.low %v173_v55, %v173_v55  ;;  %v4649_v55 = vld [vmem:[%s6849_s0 + $0x4c] ss:$28 sps:$4 sm:$0xff]  }
  0x45   :  { %929 = vmatprep.mubr.bf16.mxu1 %v4630_v46  ;;  %v3235_v46 = vcombine.low %v174_v59, %v174_v59  ;;  %v4652_v59 = vld [vmem:[%s6849_s0 + $0x50] ss:$28 sps:$4 sm:$0xff]  }
  0x4b   :  { %842 = vmatmul.mubr.bf16.gmra.mxu0 %v4633_v34  ;;  %v4715_v34 = vld [vmem:[%s6849_s0 + $0x184] ss:$28 sps:$4 sm:$0xff]  }
  0x4c   :  { %930 = vmatmul.mubr.bf16.gmra.mxu1 %v4634_v35  ;;  %849 = vmatprep.mubr.bf16.mxu0 %v3234_v42  ;;  %v4716_v35 = vld [vmem:[%s6849_s0 + $0x1b8] ss:$28 sps:$4 sm:$0xff]  }
  0x4d   :  { %937 = vmatprep.mubr.bf16.mxu1 %v3236_v44  ;;  %v5616_v42 = vld [vmem:[%s6848_s1 + $0x38] sm:$0xff]   ;;  %v5624_v44 = vld [vmem:[%s6848_s1 + $0x70] sm:$0xff]  }
  0x53   :  { %850 = vmatmul.mubr.bf16.gmra.mxu0 %v3233_v45  ;;  %v5630_v45 = vld [vmem:[%s6848_s1 + $0xb8] sm:$0xff]  }
  0x54   :  { %938 = vmatmul.mubr.bf16.gmra.mxu1 %v3235_v46  ;;  %977 = vmatprep.mubr.bf16.mxu0 %v4647_v36  ;;  %v4651_v36 = vld [vmem:[%s6849_s0 + $0x48] ss:$28 sps:$4 sm:$0xff]   ;;  %v4718_v46 = vld [vmem:[%s6849_s0 + $0x1b4] ss:$28 sps:$4 sm:$0xff]  }
  0x55   :  { %4393 = vmatprep.mubr.msk.bf16.mxu1 %vm4929_vm2, %v6882_v62 }
  0x5b   :  { %978 = vmatmul.mubr.bf16.vlgmr.msra.gmra.mxu0 %v4645_v0  ;;  %v5639_v0 = vld [vmem:[%s6848_s1 + $0xf0] sm:$0xff]  }
  0x5c   :  { %4394 = vmatmul.mubr.msk.bf16.vlgmr.msra.gmra.mxu1 %vm740_vm3, %v4648_v1  ;;  %3816 = vmatpush3.bf16.msra.mxu0 %v4964_v2  ;;  %v4653_v2 = vld [vmem:[%s6849_s0 + $0x84] ss:$28 sps:$4 sm:$0xff]   ;;  %v4719_v1 = vld [vmem:[%s6849_s0 + $0x1bc] ss:$28 sps:$4 sm:$0xff]  }
  0x5d   :  { %985 = vmatprep.mubr.bf16.mxu0 %v4649_v55  ;;  %4397 = vmatprep.mubr.msk.bf16.mxu1 %vm4929_vm2, %v6882_v62  ;;  %v5648_v55 = vld [vmem:[%s6848_s1 + $0x30] sm:$0xff]  }
  0x5e   :  { %3817 = vmatprep.subr.bf16.mxu0 %v4976_v4  ;;  %3874 = vmatpush3.bf16.msra.mxu1 %v4970_v3  ;;  %v4655_v3 = vld [vmem:[%s6849_s0 + $0x80] ss:$28 sps:$4 sm:$0xff]   ;;  %v4656_v4 = vld [vmem:[%s6849_s0 + $0x88] ss:$28 sps:$4 sm:$0xff]  }
  0x5f   :  { %3875 = vmatprep.subr.bf16.mxu1 %v4982_v5  ;;  %v4657_v5 = vld [vmem:[%s6849_s0 + $0xbc] ss:$28 sps:$4 sm:$0xff]  }
  0x60   :  { %3818 = vmatpush3.bf16.msra.mxu0 %v4988_v6  ;;  %v4659_v6 = vld [vmem:[%s6849_s0 + $0xb8] ss:$28 sps:$4 sm:$0xff]  }
  0x61   :  { %3819 = vmatprep.subr.bf16.mxu0 %v5000_v8  ;;  %v4661_v8 = vld [vmem:[%s6849_s0 + $0xf4] ss:$28 sps:$4 sm:$0xff]  }
  0x62   :  { %3876 = vmatpush3.bf16.msra.mxu1 %v4994_v7  ;;  %v4660_v7 = vld [vmem:[%s6849_s0 + $0xc0] ss:$28 sps:$4 sm:$0xff]  }
  0x63   :  { %986 = vmatmul.mubr.bf16.gmra.mxu0 %v4651_v36  ;;  %3877 = vmatprep.subr.bf16.mxu1 %v5006_v9  ;;  %v4663_v9 = vld [vmem:[%s6849_s0 + $0xf0] ss:$28 sps:$4 sm:$0xff]  }
  0x64   :  { %4398 = vmatmul.mubr.msk.bf16.gmra.mxu1 %vm740_vm3, %v4652_v59  ;;  %993 = vmatprep.mubr.bf16.mxu0 %v4653_v2  ;;  %v4720_v36 = vld [vmem:[%s6849_s0 + $0x1f0] ss:$28 sps:$4 sm:$0xff]  }
  0x65   :  { %4401 = vmatprep.mubr.msk.bf16.mxu1 %vm4929_vm2, %v6882_v62  ;;  %3820 = vmatpush3.bf16.msra.mxu0 %v5012_v10  ;;  %v4664_v10 = vld [vmem:[%s6849_s0 + $0xf8] ss:$28 sps:$4 sm:$0xff]   ;;  %v5657_v59 = vld [vmem:[%s6848_s1 + $0x68] sm:$0xff]  }
  0x66   :  { %3821 = vmatprep.subr.bf16.mxu0 %v5024_v12  ;;  %3878 = vmatpush3.bf16.msra.mxu1 %v5018_v11  ;;  %v4665_v11 = vld [vmem:[%s6849_s0 + $0x12c] ss:$28 sps:$4 sm:$0xff]   ;;  %v175_v12 = vld [vmem:[%s6849_s0 + $0x160] sm:$0xff]  ;;  %v5663_v2 = vld [vmem:[%s6848_s1 + $0xb0] sm:$0xff]  }
  0x67   :  { %3879 = vmatprep.subr.bf16.mxu1 %v5030_v13  ;;  %v4667_v13 = vld [vmem:[%s6849_s0 + $0x128] ss:$28 sps:$4 sm:$0xff]  }
  0x69   :  { %3822 = vmatpush3.bf16.msra.mxu0 %v5036_v14  ;;  %v4668_v14 = vld [vmem:[%s6849_s0 + $0x130] ss:$28 sps:$4 sm:$0xff]  }
  0x6a   :  { %3823 = vmatprep.subr.bf16.mxu0 %v5048_v16  ;;  %3880 = vmatpush3.bf16.msra.mxu1 %v5042_v15  ;;  %v3238_v15 = vcombine.high %v175_v12, %v175_v12  ;;  %v4671_v16 = vld [vmem:[%s6849_s0 + $0x168] ss:$0 sps:$4 sm:$0xff]  }
  0x6b   :  { %994 = vmatmul.mubr.bf16.gmra.mxu0 %v4655_v3  ;;  %3881 = vmatprep.subr.bf16.mxu1 %v5054_v17  ;;  %v4674_v17 = vld [vmem:[%s6849_s0 + $0x170] ss:$28 sps:$4 sm:$0xff]  }
  0x6c   :  { %4402 = vmatmul.mubr.msk.bf16.gmra.mxu1 %vm740_vm3, %v4656_v4  ;;  %1001 = vmatprep.mubr.bf16.mxu0 %v4657_v5  ;;  %v5669_v3 = vld [vmem:[%s6848_s1 + $0xe8] sm:$0xff]   ;;  %v5684_v5 = vld [vmem:[%s6848_s1 + $0x60] sm:$0xff]  }
  0x6d   :  { %4405 = vmatprep.mubr.msk.bf16.mxu1 %vm4929_vm2, %v6882_v62  ;;  %3824 = vmatpush3.bf16.msra.mxu0 %v5060_v18  ;;  %v3237_v18 = vcombine.low %v175_v12, %v175_v12  ;;  %v5678_v4 = vld [vmem:[%s6848_s1 + $0x28] sm:$0xff]   ;;  %v5717_v12 = vld [vmem:[%s6848_s1 + $0x58] sm:$0xff]  }
  0x6e   :  { %3825 = vmatprep.subr.bf16.mxu0 %v5072_v20  ;;  %3882 = vmatpush3.bf16.msra.mxu1 %v5066_v19  ;;  %v4677_v19 = vld [vmem:[%s6849_s0 + $0x178] ss:$28 sps:$4 sm:$0xff]   ;;  %v4672_v20 = vld [vmem:[%s6849_s0 + $0x16c] ss:$28 sps:$4 sm:$0xff]  }
  0x6f   :  { %3883 = vmatprep.subr.bf16.mxu1 %v5078_v21  ;;  %v4675_v21 = vld [vmem:[%s6849_s0 + $0x174] ss:$28 sps:$4 sm:$0xff]  }
  0x71   :  { %3826 = vmatpush3.bf16.msra.mxu0 %v5084_v22  ;;  %v4678_v22 = vld [vmem:[%s6849_s0 + $0x1a8] ss:$28 sps:$4 sm:$0xff]  }
  0x72   :  { %3827 = vmatprep.subr.bf16.mxu0 %v5096_v24  ;;  %3884 = vmatpush3.bf16.msra.mxu1 %v5090_v23  ;;  %v4680_v23 = vld [vmem:[%s6849_s0 + $0x1b0] ss:$28 sps:$4 sm:$0xff]   ;;  %v4682_v24 = vld [vmem:[%s6849_s0 + $0x1a4] ss:$28 sps:$4 sm:$0xff]  }
  0x73   :  { %1002 = vmatmul.mubr.bf16.gmra.mxu0 %v4659_v6  ;;  %3885 = vmatprep.subr.bf16.mxu1 %v5102_v25  ;;  %v4683_v25 = vld [vmem:[%s6849_s0 + $0x1ac] ss:$28 sps:$4 sm:$0xff]  }
  0x74   :  { %4406 = vmatmul.mubr.msk.bf16.gmra.mxu1 %vm740_vm3, %v4660_v7  ;;  %1009 = vmatprep.mubr.bf16.mxu0 %v4661_v8  ;;  %v5690_v6 = vld [vmem:[%s6848_s1 + $0xa8] sm:$0xff]   ;;  %v5699_v8 = vld [vmem:[%s6848_s1 + $0xe0] sm:$0xff]  }
  0x75   :  { %4409 = vmatprep.mubr.msk.bf16.mxu1 %vm4929_vm2, %v6882_v62  ;;  %3828 = vmatpush3.bf16.msra.mxu0 %v5108_v26  ;;  %v4684_v26 = vld [vmem:[%s6849_s0 + $0x1e0] ss:$28 sps:$4 sm:$0xff]   ;;  %v4722_v7 = vld [vmem:[%s6849_s0 + $0x1ec] ss:$28 sps:$4 sm:$0xff]  }
  0x76   :  { %3829 = vmatprep.subr.bf16.mxu0 %v5120_v28  ;;  %3886 = vmatpush3.bf16.msra.mxu1 %v5114_v27  ;;  %v4686_v27 = vld [vmem:[%s6849_s0 + $0x1e8] ss:$28 sps:$4 sm:$0xff]   ;;  %v4688_v28 = vld [vmem:[%s6849_s0 + $0x1dc] ss:$28 sps:$4 sm:$0xff]  }
  0x77   :  { %3887 = vmatprep.subr.bf16.mxu1 %v5126_v29  ;;  %v4689_v29 = vld [vmem:[%s6849_s0 + $0x1e4] ss:$28 sps:$4 sm:$0xff]  }
  0x79   :  { %3830 = vmatpush3.bf16.msra.mxu0 %v5132_v30  ;;  %v4690_v30 = vld [vmem:[%s6849_s0 + $0x218] ss:$28 sps:$4 sm:$0xff]  }
  0x7a   :  { %3888 = vmatpush3.bf16.msra.mxu1 %v5138_v31  ;;  %3931 = vmatprep.subr.bf16.mxu0 %v5158_v37  ;;  %v4692_v31 = vld [vmem:[%s6849_s0 + $0x220] ss:$28 sps:$4 sm:$0xff]   ;;  %v4694_v37 = vld [vmem:[%s6849_s0 + $0x214] ss:$28 sps:$4 sm:$0xff]  }
  0x7b   :  { %1010 = vmatmul.mubr.bf16.gmra.mxu0 %v4663_v9  ;;  %4421 = vmatprep.subr.bf16.mxu1 %v6882_v62  ;;  %v4723_v9 = vld [vmem:[%s6849_s0 + $0x1f4] ss:$28 sps:$4 sm:$0xff]  }
  0x7c   :  { %4410 = vmatmul.mubr.msk.bf16.gmra.mxu1 %vm740_vm3, %v4664_v10  ;;  %1017 = vmatprep.mubr.bf16.mxu0 %v4665_v11  ;;  %v4724_v10 = vld [vmem:[%s6849_s0 + $0x228] ss:$28 sps:$4 sm:$0xff]  }
  0x7d   :  { %4413 = vmatprep.mubr.msk.bf16.mxu1 %vm4929_vm2, %v6882_v62  ;;  %v5711_v11 = vld [vmem:[%s6848_s1 + $0x20] sm:$0xff]  }
  0x83   :  { %1018 = vmatmul.mubr.bf16.gmra.mxu0 %v4667_v13  ;;  %v5723_v13 = vld [vmem:[%s6848_s1 + $0xa0] sm:$0xff]  }
  0x84   :  { %4414 = vmatmul.mubr.msk.bf16.gmra.mxu1 %vm740_vm3, %v4668_v14  ;;  %1025 = vmatprep.mubr.bf16.mxu0 %v3238_v15  ;;  %v5729_v14 = vld [vmem:[%s6848_s1 + $0xd8] sm:$0xff]  }
  0x85   :  { %4417 = vmatprep.mubr.msk.bf16.mxu1 %vm4929_vm2, %v6882_v62  ;;  %v5738_v15 = vld [vmem:[%s6848_s1 + $0x18] sm:$0xff]  }
  0x8b   :  { %1026 = vmatmul.mubr.bf16.gmra.mxu0 %v3237_v18  ;;  %v4726_v18 = vld [vmem:[%s6849_s0 + $0x224] ss:$28 sps:$4 sm:$0xff]  }
  0x8c   :  { %4418 = vmatmul.mubr.msk.bf16.gmra.mxu1 %vm740_vm3, %v4671_v16  ;;  %1461 = vmatprep.mubr.bf16.mxu0 %v4674_v17  ;;  %v5744_v16 = vld [vmem:[%s6848_s1 + $0x50] sm:$0xff]   ;;  %v5750_v17 = vld [vmem:[%s6848_s1 + $0x98] sm:$0xff]  }
  0x8d   :  { %1549 = vmatprep.mubr.bf16.mxu1 %v4677_v19  ;;  %v5759_v19 = vld [vmem:[%s6848_s1 + $0xd0] sm:$0xff]  }
  0x93   :  { %1462 = vmatmul.mubr.bf16.vlgmr.msra.gmra.mxu0 %v4672_v20  ;;  %v4727_v20 = vld [vmem:[%s6849_s0 + $0x22c] ss:$28 sps:$4 sm:$0xff]  }
  0x94   :  { %1550 = vmatmul.mubr.bf16.vlgmr.msra.gmra.mxu1 %v4675_v21  ;;  %3932 = vmatpush3.bf16.msra.mxu0 %v5163_v38  ;;  %v4695_v38 = vld [vmem:[%s6849_s0 + $0x21c] ss:$28 sps:$4 sm:$0xff]  }
  0x95   :  { %1469 = vmatprep.mubr.bf16.mxu0 %v4678_v22  ;;  %1557 = vmatprep.mubr.bf16.mxu1 %v4680_v23  ;;  %v4728_v21 = vld [vmem:[%s6849_s0 + $0x260] ss:$28 sps:$4 sm:$0xff]   ;;  %v5771_v22 = vld [vmem:[%s6848_s1 + $0x10] sm:$0xff]   ;;  %v5777_v23 = vld [vmem:[%s6848_s1 + $0x48] sm:$0xff]  }
  0x96   :  { %3933 = vmatprep.subr.bf16.mxu0 %v5176_v43  ;;  %4422 = vmatpush3.bf16.msra.mxu1 %v5188_v48  ;;  %v4696_v43 = vld [vmem:[%s6849_s0 + $0x250] ss:$28 sps:$4 sm:$0xff]  }
  0x97   :  { %4423 = vmatprep.subr.bf16.mxu1 %v6882_v62 }
  0x98   :  { %3934 = vmatpush3.bf16.msra.mxu0 %v5193_v49  ;;  %v4698_v49 = vld [vmem:[%s6849_s0 + $0x258] ss:$28 sps:$4 sm:$0xff]  }
  0x99   :  { %3935 = vmatprep.subr.bf16.mxu0 %v5198_v50  ;;  %v4700_v50 = vld [vmem:[%s6849_s0 + $0x24c] ss:$28 sps:$4 sm:$0xff]  }
  0x9a   :  { %4424 = vmatpush3.bf16.msra.mxu1 %v5218_v54  ;;  %v4701_v54 = vld [vmem:[%s6849_s0 + $0x254] ss:$28 sps:$4 sm:$0xff]  }
  0x9b   :  { %1470 = vmatmul.mubr.bf16.gmra.mxu0 %v4682_v24  ;;  %4425 = vmatprep.subr.bf16.mxu1 %v6882_v62  ;;  %v5783_v24 = vld [vmem:[%s6848_s1 + $0x90] sm:$0xff]  }
  0x9c   :  { %1558 = vmatmul.mubr.bf16.gmra.mxu1 %v4683_v25  ;;  %1477 = vmatprep.mubr.bf16.mxu0 %v4684_v26  ;;  %v5789_v26 = vld [vmem:[%s6848_s1 + $0xc8] sm:$0xff]  }
  0x9d   :  { %1565 = vmatprep.mubr.bf16.mxu1 %v4686_v27  ;;  %3936 = vmatpush3.bf16.msra.mxu0 %v5213_v53  ;;  %v5567_v53 = vld [vmem:[%s6848_s1 + $0xf8] sm:$0xff]  }
  0x9e   :  { %3937 = vmatprep.subr.bf16.mxu0 %v5229_v57  ;;  %4426 = vmatpush3.bf16.msra.mxu1 %v5249_v61  ;;  %v4702_v57 = vld [vmem:[%s6849_s0 + $0x288] ss:$28 sps:$4 sm:$0xff]  }
  0x9f   :  { %4427 = vmatprep.subr.bf16.mxu1 %v6882_v62  ;;  %v6883_v61 = vld [vmem:[#allocation3_spill] sm:$0xff] }
  0xa1   :  { %3938 = vmatpush3.bf16.msra.mxu0 %v5236_v58  ;;  %v4704_v58 = vld [vmem:[%s6849_s0 + $0x290] ss:$28 sps:$4 sm:$0xff]  }
  0xa2   :  { %3939 = vmatprep.subr.bf16.mxu0 %v5258_v63  ;;  %4428 = vmatpush3.bf16.msra.mxu1 %v5281_v39  ;;  %v5583_v63 = vld [vmem:[%s6848_s1 + $0x78] sm:$0xff]   ;;  %v3351_v39 = vld [vmem:[%s6849_s0 + $0x2c4] sm:$0xff] }
  0xa3   :  { %1478 = vmatmul.mubr.bf16.gmra.mxu0 %v4688_v28  ;;  %4429 = vmatprep.subr.bf16.mxu1 %v6882_v62 }
  0xa4   :  { %1566 = vmatmul.mubr.bf16.gmra.mxu1 %v4689_v29  ;;  %1485 = vmatprep.mubr.bf16.mxu0 %v4690_v30  ;;  %v5798_v29 = vld [vmem:[%s6848_s1 + $0x8] sm:$0xff]  }
  0xa5   :  { %1573 = vmatprep.mubr.bf16.mxu1 %v4692_v31  ;;  %3940 = vmatpush3.bf16.msra.mxu0 %v5264_v32  ;;  %v3350_v32 = vld [vmem:[%s6849_s0 + $0x2bc] sm:$0xff] }
  0xa6   :  { %3941 = vmatprep.subr.bf16.mxu0 %v5287_v40  ;;  %4430 = vmatpush3.bf16.msra.mxu1 %v5312_v47  ;;  %v4706_v40 = vld [vmem:[%s6849_s0 + $0x284] ss:$28 sps:$4 sm:$0xff]   ;;  %v3397_v47 = vcombine.high %v3350_v32, %v3350_v32 }
  0xa7   :  { %4431 = vmatprep.subr.bf16.mxu1 %v6882_v62 }
  0xa9   :  { %3942 = vmatpush3.bf16.msra.mxu0 %v5292_v41  ;;  %v4707_v41 = vld [vmem:[%s6849_s0 + $0x28c] ss:$28 sps:$4 sm:$0xff]  }
  0xaa   :  { %3943 = vmatprep.subr.bf16.mxu0 %v5317_v51  ;;  %4432 = vmatpush3.bf16.msra.mxu1 %v5333_v56  ;;  %v3399_v51 = vcombine.high %v3351_v39, %v3351_v39  ;;  %v3398_v56 = vcombine.low %v3351_v39, %v3351_v39 }
  0xab   :  { %1486 = vmatmul.mubr.bf16.gmra.mxu0 %v4694_v37  ;;  %4433 = vmatprep.subr.bf16.mxu1 %v6882_v62  ;;  %v5804_v37 = vld [vmem:[%s6848_s1 + $0x40] sm:$0xff]  }
  0xac   :  { %1574 = vmatmul.mubr.bf16.gmra.mxu1 %v4695_v38  ;;  %1493 = vmatprep.mubr.bf16.mxu0 %v4696_v43  ;;  %v5810_v38 = vld [vmem:[%s6848_s1 + $0x88] sm:$0xff]  }
  0xad   :  { %1581 = vmatprep.mubr.bf16.mxu1 %v4698_v49  ;;  %3944 = vmatpush3.bf16.msra.mxu0 %v5323_v52  ;;  %v3396_v52 = vcombine.low %v3350_v32, %v3350_v32 }
  0xae   :  { %3945 = vmatprep.subr.bf16.mxu0 %v5341_v60  ;;  %4434 = vmatpush3.bf16.msra.mxu1 %v5354_v33  ;;  %v4714_v60 = vld [vmem:[%s6849_s0 + $0x180] ss:$28 sps:$4 sm:$0xff]  }
  0xaf   :  { %4061 = vmatprep.subr.bf16.mxu1 %v5567_v53  ;;  %v4712_v33 = vld [vmem:[%s6849_s0 + $0x17c] ss:$28 sps:$4 sm:$0xff]  }
  0xb1   :  { %3946 = vmatpush3.bf16.msra.mxu0 %v6883_v61  ;;  %v4732_v61 = vld [vmem:[%s6849_s0 + $0x298] ss:$28 sps:$4 sm:$0xff]  }
  0xb2   :  { %4003 = vmatprep.subr.bf16.mxu0 %v5583_v63 }
  0xb3   :  { %1494 = vmatmul.mubr.bf16.gmra.mxu0 %v4700_v50  ;;  %v4730_v50 = vld [vmem:[%s6849_s0 + $0x25c] ss:$28 sps:$4 sm:$0xff]  }
  0xb4   :  { %1582 = vmatmul.mubr.bf16.gmra.mxu1 %v4701_v54  ;;  %1501 = vmatprep.mubr.bf16.mxu0 %v4702_v57  ;;  %v5819_v54 = vld [vmem:[%s6848_s1 + $0xc0] sm:$0xff]  }
  0xb5   :  { %1589 = vmatprep.mubr.bf16.mxu1 %v4704_v58  ;;  %v4731_v58 = vld [vmem:[%s6849_s0 + $0x264] ss:$28 sps:$4 sm:$0xff]  }
  0xbb   :  { %1502 = vmatmul.mubr.bf16.gmra.mxu0 %v4706_v40  ;;  %v5833_v40 = vld [vmem:[%s6848_s1] sm:$0xff]  }
  0xbc   :  { %1590 = vmatmul.mubr.bf16.gmra.mxu1 %v4707_v41  ;;  %1509 = vmatprep.mubr.bf16.mxu0 %v3397_v47 }
  0xbd   :  { %1597 = vmatprep.mubr.bf16.mxu1 %v3399_v51  ;;  %v5839_v51 = vld [vmem:[%s6848_s1 + $0x80] sm:$0xff]  }
  0xc3   :  { %1510 = vmatmul.mubr.bf16.gmra.mxu0 %v3396_v52  ;;  %v5845_v52 = vld [vmem:[%s6848_s1 + $0x178] sm:$0xff]  }
  0xc4   :  { %1598 = vmatmul.mubr.bf16.gmra.mxu1 %v3398_v56  ;;  %1637 = vmatprep.mubr.bf16.mxu0 %v4714_v60  ;;  %6884 = vst [vmem:[#allocation3_spill] sm:$0xff] %v5845_v52 }
  0xc5   :  { %4435 = vmatprep.mubr.msk.bf16.mxu1 %vm4929_vm2, %v6882_v62 }
  0xcb   :  { %1638 = vmatmul.mubr.bf16.vlgmr.msra.gmra.mxu0 %v4712_v33 }
  0xcc   :  { %4436 = vmatmul.mubr.msk.bf16.vlgmr.msra.gmra.mxu1 %vm740_vm3, %v4715_v34  ;;  %4004 = vmatpush3.bf16.msra.mxu0 %v5616_v42 }
  0xcd   :  { %1645 = vmatprep.mubr.bf16.mxu0 %v4716_v35  ;;  %4439 = vmatprep.mubr.msk.bf16.mxu1 %vm4929_vm2, %v6882_v62 }
  0xce   :  { %4005 = vmatprep.subr.bf16.mxu0 %v5624_v44  ;;  %4062 = vmatpush3.bf16.msra.mxu1 %v5630_v45 }
  0xcf   :  { %4063 = vmatprep.subr.bf16.mxu1 %v5639_v0 }
  0xd0   :  { %4006 = vmatpush3.bf16.msra.mxu0 %v5648_v55 }
  0xd1   :  { %4007 = vmatprep.subr.bf16.mxu0 %v5657_v59 }
  0xd2   :  { %4064 = vmatpush3.bf16.msra.mxu1 %v5663_v2 }
  0xd3   :  { %1646 = vmatmul.mubr.bf16.gmra.mxu0 %v4718_v46  ;;  %4065 = vmatprep.subr.bf16.mxu1 %v5669_v3  ;;  %v3352_v46 = vld [vmem:[%s6849_s0 + $0x2cc] sm:$0xff] }
  0xd4   :  { %4440 = vmatmul.mubr.msk.bf16.gmra.mxu1 %vm740_vm3, %v4719_v1  ;;  %1653 = vmatprep.mubr.bf16.mxu0 %v4720_v36 }
  0xd5   :  { %4443 = vmatprep.mubr.msk.bf16.mxu1 %vm4929_vm2, %v6882_v62  ;;  %4008 = vmatpush3.bf16.msra.mxu0 %v5678_v4 }
  0xd6   :  { %4009 = vmatprep.subr.bf16.mxu0 %v5684_v5  ;;  %4066 = vmatpush3.bf16.msra.mxu1 %v5690_v6 }
  0xd7   :  { %4067 = vmatprep.subr.bf16.mxu1 %v5699_v8 }
  0xd9   :  { %4010 = vmatpush3.bf16.msra.mxu0 %v5711_v11 }
  0xda   :  { %4011 = vmatprep.subr.bf16.mxu0 %v5717_v12  ;;  %4068 = vmatpush3.bf16.msra.mxu1 %v5723_v13 }
  0xdb   :  { %1654 = vmatmul.mubr.bf16.gmra.mxu0 %v4722_v7  ;;  %4069 = vmatprep.subr.bf16.mxu1 %v5729_v14 }
  0xdc   :  { %4444 = vmatmul.mubr.msk.bf16.gmra.mxu1 %vm740_vm3, %v4723_v9  ;;  %1661 = vmatprep.mubr.bf16.mxu0 %v4724_v10  ;;  %v4734_v10 = vld [vmem:[%s6849_s0 + $0x294] ss:$28 sps:$4 sm:$0xff]  }
  0xdd   :  { %4447 = vmatprep.mubr.msk.bf16.mxu1 %vm4929_vm2, %v6882_v62  ;;  %4012 = vmatpush3.bf16.msra.mxu0 %v5738_v15 }
  0xde   :  { %4013 = vmatprep.subr.bf16.mxu0 %v5744_v16  ;;  %4070 = vmatpush3.bf16.msra.mxu1 %v5750_v17 }
  0xdf   :  { %4071 = vmatprep.subr.bf16.mxu1 %v5759_v19 }
  0xe1   :  { %4014 = vmatpush3.bf16.msra.mxu0 %v5771_v22 }
  0xe2   :  { %4015 = vmatprep.subr.bf16.mxu0 %v5777_v23  ;;  %4072 = vmatpush3.bf16.msra.mxu1 %v5783_v24 }
  0xe3   :  { %v3643_v25 = vpop.f32.mrf.mxu0  ;;  %1662 = vmatmul.mubr.bf16.gmra.mxu0 %v4726_v18  ;;  %4073 = vmatprep.subr.bf16.mxu1 %v5789_v26 }
  0xe4   :  { %v3701_v27 = vpop.f32.mrf.mxu1  ;;  %4448 = vmatmul.mubr.msk.bf16.gmra.mxu1 %vm740_vm3, %v4727_v20  ;;  %1669 = vmatprep.mubr.bf16.mxu0 %v4728_v21  ;;  %v4735_v20 = vld [vmem:[%s6849_s0 + $0x29c] ss:$28 sps:$4 sm:$0xff]   ;;  %v3401_v21 = vcombine.high %v3352_v46, %v3352_v46 }
  0xe5   :  { %v3644_v28 = vpop.f32.mrf.mxu0  ;;  %4451 = vmatprep.mubr.msk.bf16.mxu1 %vm4929_vm2, %v6882_v62  ;;  %4016 = vmatpush3.bf16.msra.mxu0 %v5798_v29 }
  0xe6   :  { %v3645_v30 = vadd.f32 %v3644_v28, %v3643_v25  ;;  %v3702_v31 = vpop.f32.mrf.mxu1  ;;  %4017 = vmatprep.subr.bf16.mxu0 %v5804_v37  ;;  %4074 = vmatpush3.bf16.msra.mxu1 %v5810_v38 }
  0xe7   :  { %v3703_v43 = vadd.f32 %v3702_v31, %v3701_v27  ;;  %v3646_v49 = vpop.f32.mrf.mxu0  ;;  %4075 = vmatprep.subr.bf16.mxu1 %v5819_v54 }
  0xe8   :  { %v3704_v57 = vpop.f32.mrf.mxu1 }
  0xe9   :  { %v5828_v32 = vadd.f32 %v3703_v43, %v3645_v30  ;;  %v3647_v39 = vpop.f32.mrf.mxu0  ;;  %4018 = vmatpush3.bf16.msra.mxu0 %v5833_v40 }
  0xea   :  { %v3648_v41 = vadd.f32 %v3647_v39, %v3646_v49  ;;  %v3705_v47 = vpop.f32.mrf.mxu1  ;;  %4076 = vmatpush3.bf16.msra.mxu1 %v5839_v51  ;;  %4119 = vmatprep.subr.bf16.mxu0 %v5845_v52 }
  0xeb   :  { %v3706_v56 = vadd.f32 %v3705_v47, %v3704_v57  ;;  %v3649_v60 = vpop.f32.mrf.mxu0  ;;  %1670 = vmatmul.mubr.bf16.gmra.mxu0 %v4730_v50  ;;  %4463 = vmatprep.subr.bf16.mxu1 %v6882_v62  ;;  %v3400_v47 = vcombine.low %v3352_v46, %v3352_v46 }
  0xec   :  { %v3707_v33 = vpop.f32.mrf.mxu1  ;;  %4452 = vmatmul.mubr.msk.bf16.gmra.mxu1 %vm740_vm3, %v4731_v58  ;;  %1677 = vmatprep.mubr.bf16.mxu0 %v4732_v61 }
  0xed   :  { %v5850_v34 = vadd.f32 %v3706_v56, %v3648_v41  ;;  %v3650_v35 = vpop.f32.mrf.mxu0  ;;  %4455 = vmatprep.mubr.msk.bf16.mxu1 %vm4929_vm2, %v6882_v62 }
  0xee   :  { %v3651_v1 = vadd.f32 %v3650_v35, %v3649_v60  ;;  %v3708_v36 = vpop.f32.mrf.mxu1  ;;  %v4738_v60 = vld [vmem:[%s6849_s0 + $0x2d4] ss:$0 sps:$4 sm:$0xff]  }
  0xef   :  { %v3709_v7 = vadd.f32 %v3708_v36, %v3707_v33  ;;  %v3652_v9 = vpop.f32.mrf.mxu0  ;;  %v4741_v33 = vld [vmem:[%s6849_s0 + $0x2dc] ss:$28 sps:$4 sm:$0xff]   ;;  %v4744_v36 = vld [vmem:[%s6849_s0 + $0x2e4] ss:$28 sps:$4 sm:$0xff]  }
  0xf0   :  { %v3710_v18 = vpop.f32.mrf.mxu1 }
  0xf1   :  { %v5863_v25 = vadd.f32 %v3709_v7, %v3651_v1  ;;  %v3653_v27 = vpop.f32.mrf.mxu0 }
  0xf2   :  { %v3654_v28 = vadd.f32 %v3653_v27, %v3652_v9  ;;  %v3711_v30 = vpop.f32.mrf.mxu1 }
  0xf3   :  { %v3712_v31 = vadd.f32 %v3711_v30, %v3710_v18  ;;  %v3655_v43 = vpop.f32.mrf.mxu0  ;;  %1678 = vmatmul.mubr.bf16.gmra.mxu0 %v4734_v10 }
  0xf4   :  { %v3713_v49 = vpop.f32.mrf.mxu1  ;;  %4456 = vmatmul.mubr.msk.bf16.gmra.mxu1 %vm740_vm3, %v4735_v20  ;;  %1685 = vmatprep.mubr.bf16.mxu0 %v3401_v21 }
  0xf5   :  { %v5866_v50 = vadd.f32 %v3712_v31, %v3654_v28  ;;  %v3656_v57 = vpop.f32.mrf.mxu0  ;;  %4459 = vmatprep.mubr.msk.bf16.mxu1 %vm4929_vm2, %v6882_v62 }
  0xf6   :  { %v3657_v58 = vadd.f32 %v3656_v57, %v3655_v43  ;;  %v3714_v61 = vpop.f32.mrf.mxu1  ;;  %v4739_v43 = vld [vmem:[%s6849_s0 + $0x2d8] ss:$28 sps:$4 sm:$0xff]   ;;  %v4742_v57 = vld [vmem:[%s6849_s0 + $0x2e0] ss:$28 sps:$4 sm:$0xff]  }
  0xf7   :  { %v3715_v39 = vadd.f32 %v3714_v61, %v3713_v49  ;;  %v3658_v41 = vpop.f32.mrf.mxu0 }
  0xf8   :  { %v3716_v56 = vpop.f32.mrf.mxu1 }
  0xf9   :  { %v5876_v35 = vadd.f32 %v3715_v39, %v3657_v58  ;;  %v3659_v1 = vpop.f32.mrf.mxu0  ;;  %v4747_v39 = vld [vmem:[%s6849_s0 + $0x314] ss:$28 sps:$4 sm:$0xff]  }
  0xfa   :  { %v3660_v7 = vadd.f32 %v3659_v1, %v3658_v41  ;;  %v3717_v9 = vpop.f32.mrf.mxu1  ;;  %v4750_v41 = vld [vmem:[%s6849_s0 + $0x31c] ss:$28 sps:$4 sm:$0xff]  }
  0xfb   :  { %v3718_v10 = vadd.f32 %v3717_v9, %v3716_v56  ;;  %v3661_v46 = vpop.f32.mrf.mxu0  ;;  %1686 = vmatmul.mubr.bf16.gmra.mxu0 %v3400_v47 }
  0xfc   :  { %v3719_v18 = vpop.f32.mrf.mxu1  ;;  %4460 = vmatmul.mubr.msk.bf16.gmra.mxu1 %vm740_vm3, %v4738_v60  ;;  %2134 = vmatprep.mubr.bf16.mxu0 %v4741_v33 }
  0xfd   :  { %v5882_v20 = vadd.f32 %v3718_v10, %v3660_v7  ;;  %v3662_v21 = vpop.f32.mrf.mxu0  ;;  %2222 = vmatprep.mubr.bf16.mxu1 %v4744_v36  ;;  %v5901_v36 = vld [vmem:[%s6848_s1 + $0x138] sm:$0xff]  }
  0xfe   :  { %v3663_v27 = vadd.f32 %v3662_v21, %v3661_v46  ;;  %v3720_v28 = vpop.f32.mrf.mxu1  ;;  %6885 = vst [vmem:[#allocation4_spill] sm:$0xff] %v5901_v36 }
  0xff   :  { %v3721_v30 = vadd.f32 %v3720_v28, %v3719_v18  ;;  %v3664_v31 = vpop.f32.mrf.mxu0  ;;  %v5909_v18 = vld [vmem:[%s6848_s1 + $0x170] sm:$0xff]  }
 0x100   :  { %v3722_v49 = vpop.f32.mrf.mxu1  ;;  %6886 = vst [vmem:[#allocation5_spill] sm:$0xff] %v5909_v18  ;;  %v4745_v28 = vld [vmem:[%s6849_s0 + $0x310] ss:$28 sps:$4 sm:$0xff]  }
 0x101   :  { %v5890_v58 = vadd.f32 %v3721_v30, %v3663_v27  ;;  %v3665_v61 = vpop.f32.mrf.mxu0 }
 0x102   :  { %v3666_v47 = vadd.f32 %v3665_v61, %v3664_v31  ;;  %v3723_v56 = vpop.f32.mrf.mxu1  ;;  %v4748_v31 = vld [vmem:[%s6849_s0 + $0x318] ss:$28 sps:$4 sm:$0xff]  }
 0x103   :  { %v3724_v60 = vadd.f32 %v3723_v56, %v3722_v49  ;;  %v3667_v33 = vpop.f32.mrf.mxu0  ;;  %2135 = vmatmul.mubr.bf16.vlgmr.msra.gmra.mxu0 %v4739_v43  ;;  %v5923_v43 = vld [vmem:[%s6848_s1 + $0x130] sm:$0xff]   ;;  %v4753_v49 = vld [vmem:[%s6849_s0 + $0x34c] ss:$28 sps:$4 sm:$0xff]  }
 0x104   :  { %v3725_v1 = vpop.f32.mrf.mxu1  ;;  %2223 = vmatmul.mubr.bf16.vlgmr.msra.gmra.mxu1 %v4742_v57  ;;  %4120 = vmatpush3.bf16.msra.mxu0 %v5901_v36  ;;  %6887 = vst [vmem:[#allocation6_spill] sm:$0xff] %v5923_v43 }
 0x105   :  { %v5904_v7 = vadd.f32 %v3724_v60, %v3666_v47  ;;  %v3668_v9 = vpop.f32.mrf.mxu0  ;;  %2142 = vmatprep.mubr.bf16.mxu0 %v4747_v39  ;;  %2230 = vmatprep.mubr.bf16.mxu1 %v4750_v41  ;;  %v5934_v39 = vld [vmem:[%s6848_s1 + $0x168] sm:$0xff]   ;;  %v4756_v41 = vld [vmem:[%s6849_s0 + $0x354] ss:$28 sps:$4 sm:$0xff]  }
 0x106   :  { %v3669_v10 = vadd.f32 %v3668_v9, %v3667_v33  ;;  %v3726_v46 = vpop.f32.mrf.mxu1  ;;  %4121 = vmatprep.subr.bf16.mxu0 %v5909_v18  ;;  %4464 = vmatpush3.bf16.msra.mxu1 %v5188_v48  ;;  %6888 = vst [vmem:[#allocation7_spill] sm:$0xff] %v5934_v39  ;;  %v5943_v60 = vld [vmem:[%s6848_s1 + $0x1a8] sm:$0xff]  }
 0x107   :  { %v3727_v21 = vadd.f32 %v3726_v46, %v3725_v1  ;;  %v3670_v27 = vpop.f32.mrf.mxu0  ;;  %4465 = vmatprep.subr.bf16.mxu1 %v6882_v62  ;;  %6889 = vst [vmem:[#allocation8_spill] sm:$0xff] %v5943_v60  ;;  %v3458_v18 = vld [vmem:[%s6849_s0 + $0x428] sm:$0xff] }
 0x108   :  { %v3728_v30 = vpop.f32.mrf.mxu1  ;;  %4122 = vmatpush3.bf16.msra.mxu0 %v5923_v43  ;;  %v3504_v52 = vcombine.low %v3458_v18, %v3458_v18 }
 0x109   :  { %v5929_v57 = vadd.f32 %v3727_v21, %v3669_v10  ;;  %v3671_v61 = vpop.f32.mrf.mxu0  ;;  %4123 = vmatprep.subr.bf16.mxu0 %v5934_v39  ;;  %v5952_v21 = vld [vmem:[%s6848_s1 + $0x128] sm:$0xff]  }
 0x10a   :  { %v3672_v47 = vadd.f32 %v3671_v61, %v3670_v27  ;;  %v3729_v56 = vpop.f32.mrf.mxu1  ;;  %4466 = vmatpush3.bf16.msra.mxu1 %v5943_v60  ;;  %6890 = vst [vmem:[#allocation9_spill] sm:$0xff] %v5952_v21 }
 0x10b   :  { %v3730_v33 = vadd.f32 %v3729_v56, %v3728_v30  ;;  %v3673_v1 = vpop.f32.mrf.mxu0  ;;  %2143 = vmatmul.mubr.bf16.gmra.mxu0 %v4745_v28  ;;  %4467 = vmatprep.subr.bf16.mxu1 %v6882_v62  ;;  %v5958_v28 = vld [vmem:[%s6848_s1 + $0x160] sm:$0xff]   ;;  %v4754_v56 = vld [vmem:[%s6849_s0 + $0x350] ss:$28 sps:$4 sm:$0xff]  }
 0x10c   :  { %v3731_v9 = vpop.f32.mrf.mxu1  ;;  %2231 = vmatmul.mubr.bf16.gmra.mxu1 %v4748_v31  ;;  %2150 = vmatprep.mubr.bf16.mxu0 %v4753_v49  ;;  %6891 = vst [vmem:[#allocation10_spill] sm:$0xff] %v5958_v28  ;;  %v5964_v31 = vld [vmem:[%s6848_s1 + $0x1a0] sm:$0xff]  }
 0x10d   :  { %v5947_v10 = vadd.f32 %v3730_v33, %v3672_v47  ;;  %v3674_v46 = vpop.f32.mrf.mxu0  ;;  %2238 = vmatprep.mubr.bf16.mxu1 %v4756_v41  ;;  %4124 = vmatpush3.bf16.msra.mxu0 %v5952_v21  ;;  %6892 = vst [vmem:[#allocation11_spill] sm:$0xff] %v5964_v31  ;;  %v4751_v41 = vld [vmem:[%s6849_s0 + $0x348] ss:$28 sps:$4 sm:$0xff]   ;;  %v5991_v21 = vld [vmem:[%s6848_s1 + $0x158] sm:$0xff]  }
 0x10e   :  { %v3675_v27 = vadd.f32 %v3674_v46, %v3673_v1  ;;  %v3732_v30 = vpop.f32.mrf.mxu1  ;;  %4125 = vmatprep.subr.bf16.mxu0 %v5958_v28  ;;  %4468 = vmatpush3.bf16.msra.mxu1 %v5964_v31  ;;  %v4759_v33 = vld [vmem:[%s6849_s0 + $0x384] ss:$28 sps:$4 sm:$0xff]   ;;  %6894 = vst [vmem:[#allocation13_spill] sm:$0xff] %v5991_v21 }
 0x10f   :  { %v3733_v49 = vadd.f32 %v3732_v30, %v3731_v9  ;;  %v3676_v61 = vpop.f32.mrf.mxu0  ;;  %4469 = vmatprep.subr.bf16.mxu1 %v6882_v62  ;;  %v5982_v9 = vld [vmem:[%s6848_s1 + $0x120] sm:$0xff]   ;;  %v4762_v30 = vld [vmem:[%s6849_s0 + $0x38c] ss:$28 sps:$4 sm:$0xff]  }
 0x110   :  { %v3734_v47 = vpop.f32.mrf.mxu1  ;;  %6893 = vst [vmem:[#allocation12_spill] sm:$0xff] %v5982_v9 }
 0x111   :  { %v5977_v1 = vadd.f32 %v3733_v49, %v3675_v27  ;;  %v3677_v46 = vpop.f32.mrf.mxu0  ;;  %4126 = vmatpush3.bf16.msra.mxu0 %v5982_v9  ;;  %v5997_v27 = vld [vmem:[%s6848_s1 + $0x198] sm:$0xff]  }
 0x112   :  { %v3678_v31 = vadd.f32 %v3677_v46, %v3676_v61  ;;  %v3735_v28 = vpop.f32.mrf.mxu1  ;;  %4127 = vmatprep.subr.bf16.mxu0 %v5991_v21  ;;  %6895 = vst [vmem:[#allocation14_spill] sm:$0xff] %v5997_v27  ;;  %4470 = vmatpush3.bf16.msra.mxu1 %v5997_v27  ;;  %v6006_v21 = vld [vmem:[%s6848_s1 + $0x118] sm:$0xff]  }
 0x113   :  { %v3736_v49 = vadd.f32 %v3735_v28, %v3734_v47  ;;  %v3679_v9 = vpop.f32.mrf.mxu0  ;;  %2151 = vmatmul.mubr.bf16.gmra.mxu0 %v4751_v41  ;;  %4471 = vmatprep.subr.bf16.mxu1 %v6882_v62  ;;  %6896 = vst [vmem:[#allocation15_spill] sm:$0xff] %v6006_v21  ;;  %v6012_v41 = vld [vmem:[%s6848_s1 + $0x150] sm:$0xff]  }
 0x114   :  { %v3737_v61 = vpop.f32.mrf.mxu1  ;;  %2239 = vmatmul.mubr.bf16.gmra.mxu1 %v4754_v56  ;;  %2158 = vmatprep.mubr.bf16.mxu0 %v4759_v33  ;;  %6897 = vst [vmem:[#allocation16_spill] sm:$0xff] %v6012_v41 }
 0x115   :  { %v6001_v46 = vadd.f32 %v3736_v49, %v3678_v31  ;;  %v3680_v60 = vpop.f32.mrf.mxu0  ;;  %2246 = vmatprep.mubr.bf16.mxu1 %v4762_v30  ;;  %4128 = vmatpush3.bf16.msra.mxu0 %v6006_v21  ;;  %v6018_v31 = vld [vmem:[%s6848_s1 + $0x190] sm:$0xff]   ;;  %v4765_v30 = vld [vmem:[%s6849_s0 + $0x3bc] ss:$28 sps:$4 sm:$0xff]  }
 0x116   :  { %v3681_v27 = vadd.f32 %v3680_v60, %v3679_v9  ;;  %v3738_v28 = vpop.f32.mrf.mxu1  ;;  %4129 = vmatprep.subr.bf16.mxu0 %v6012_v41  ;;  %6898 = vst [vmem:[#allocation17_spill] sm:$0xff] %v6018_v31  ;;  %4472 = vmatpush3.bf16.msra.mxu1 %v6018_v31  ;;  %v4757_v60 = vld [vmem:[%s6849_s0 + $0x380] ss:$28 sps:$4 sm:$0xff]   ;;  %v4760_v9 = vld [vmem:[%s6849_s0 + $0x388] ss:$28 sps:$4 sm:$0xff]  }
 0x117   :  { %v3739_v47 = vadd.f32 %v3738_v28, %v3737_v61  ;;  %v3682_v56 = vpop.f32.mrf.mxu0  ;;  %4473 = vmatprep.subr.bf16.mxu1 %v6882_v62  ;;  %v4768_v61 = vld [vmem:[%s6849_s0 + $0x3c4] ss:$28 sps:$4 sm:$0xff]   ;;  %v6039_v28 = vld [vmem:[%s6848_s1 + $0x110] sm:$0xff]  }
 0x118   :  { %v3740_v33 = vpop.f32.mrf.mxu1  ;;  %6899 = vst [vmem:[#allocation18_spill] sm:$0xff] %v6039_v28 }
 0x119   :  { %v6031_v49 = vadd.f32 %v3739_v47, %v3681_v27  ;;  %v3683_v31 = vpop.f32.mrf.mxu0  ;;  %4130 = vmatpush3.bf16.msra.mxu0 %v6039_v28  ;;  %v6045_v33 = vld [vmem:[%s6848_s1 + $0x148] sm:$0xff]  }
 0x11a   :  { %v3741_v56 = vpop.f32.mrf.mxu1  ;;  %6900 = vst [vmem:[#allocation19_spill] sm:$0xff] %v6045_v33  ;;  %4131 = vmatprep.subr.bf16.mxu0 %v6045_v33  ;;  %v6051_v27 = vld [vmem:[%s6848_s1 + $0x188] sm:$0xff]  }
 0x11b   :  { %6901 = vst [vmem:[#allocation20_spill] sm:$0xff] %v6051_v27  ;;  %4474 = vmatpush3.bf16.msra.mxu1 %v6051_v27  ;;  %v3759_v31 = vpop.f32.mrf.mxu0  ;;  %2159 = vmatmul.mubr.bf16.gmra.mxu0 %v4757_v60  ;;  %v6058_v33 = vld [vmem:[%s6848_s1 + $0x108] sm:$0xff]   ;;  %v6064_v60 = vld [vmem:[%s6848_s1 + $0x140] sm:$0xff]  }
 0x11c   :  { %4475 = vmatprep.subr.bf16.mxu1 %v6882_v62  ;;  %v1067_v47 = vpop.f32.mrf.mxu1  ;;  %2247 = vmatmul.mubr.bf16.gmra.mxu1 %v4760_v9  ;;  %6902 = vst [vmem:[#allocation21_spill] sm:$0xff] %v6058_v33  ;;  %6903 = vst [vmem:[#allocation22_spill] sm:$0xff] %v6064_v60  ;;  %v6070_v9 = vld [vmem:[%s6848_s1 + $0x180] sm:$0xff]  }
 0x11d   :  { %2166 = vmatprep.mubr.bf16.mxu0 %v4765_v30  ;;  %v3760_v56 = vpop.f32.mrf.mxu0  ;;  %2254 = vmatprep.mubr.bf16.mxu1 %v4768_v61  ;;  %6904 = vst [vmem:[#allocation23_spill] sm:$0xff] %v6070_v9  ;;  %v4763_v61 = vld [vmem:[%s6849_s0 + $0x3b8] ss:$28 sps:$4 sm:$0xff]  }
 0x11e   :  { %4132 = vmatpush3.bf16.msra.mxu0 %v6058_v33  ;;  %v3761_v28 = vadd.f32 %v3760_v56, %v3759_v31  ;;  %v4395_v41 = vpop.f32.mrf.mxu1  ;;  %v4766_v56 = vld [vmem:[%s6849_s0 + $0x3c0] ss:$28 sps:$4 sm:$0xff]  }
 0x11f   :  { %4133 = vmatprep.subr.bf16.mxu0 %v6064_v60  ;;  %4476 = vmatpush3.bf16.msra.mxu1 %v6070_v9  ;;  %v3762_v30 = vpop.f32.mrf.mxu0  ;;  %v4771_v60 = vld [vmem:[%s6849_s0 + $0x3f4] ss:$28 sps:$4 sm:$0xff]   ;;  %v4774_v9 = vld [vmem:[%s6849_s0 + $0x3fc] ss:$28 sps:$4 sm:$0xff]  }
 0x120   :  { %4249 = vmatprep.subr.bf16.mxu1 %v5567_v53  ;;  %v980_v41 = vadd.f32 %v3761_v28, %v5828_v32  ;;  %v1070_v31 = vpop.f32.mrf.mxu1  ;;  %v6090_v53 = vld [vmem:[%s6848_s1 + $0x100] sm:$0xff]  }
 0x121   :  { %v3763_v33 = vpop.f32.mrf.mxu0  ;;  %6905 = vst [vmem:[#allocation24_spill] sm:$0xff] %v6090_v53 }
 0x122   :  { %4134 = vmatpush3.bf16.msra.mxu0 %v6090_v53  ;;  %v6093_v32 = vadd.f32 %v1067_v47, %v980_v41  ;;  %v3764_v28 = vadd.f32 %v3763_v33, %v3762_v30  ;;  %v4396_v27 = vpop.f32.mrf.mxu1  ;;  %v4772_v30 = vld [vmem:[%s6849_s0 + $0x3f8] ss:$28 sps:$4 sm:$0xff]  }
 0x123   :  { %4191 = vmatprep.subr.bf16.mxu0 %v5583_v63  ;;  %v3765_v21 = vpop.f32.mrf.mxu0  ;;  %2167 = vmatmul.mubr.bf16.gmra.mxu0 %v4763_v61  ;;  %v3459_v63 = vld [vmem:[%s6849_s0 + $0x430] sm:$0xff] }
 0x124   :  { %6906 = vst [vmem:[#allocation25_spill] sm:$0xff] %v6093_v32  ;;  %v983_v39 = vadd.f32 %v3764_v28, %v5850_v34  ;;  %v1075_v43 = vpop.f32.mrf.mxu1  ;;  %2255 = vmatmul.mubr.bf16.gmra.mxu1 %v4766_v56  ;;  %2174 = vmatprep.mubr.bf16.mxu0 %v4771_v60  ;;  %v4769_v34 = vld [vmem:[%s6849_s0 + $0x3f0] ss:$28 sps:$4 sm:$0xff]  }
 0x125   :  { %v3766_v48 = vpop.f32.mrf.mxu0  ;;  %2262 = vmatprep.mubr.bf16.mxu1 %v4774_v9 }
 0x126   :  { %v6100_v53 = vadd.f32 %v1070_v31, %v983_v39  ;;  %v3767_v47 = vadd.f32 %v3766_v48, %v3765_v21  ;;  %v4399_v33 = vpop.f32.mrf.mxu1  ;;  %v3505_v39 = vcombine.high %v3458_v18, %v3458_v18  ;;  %v3507_v48 = vcombine.high %v3459_v63, %v3459_v63 }
 0x127   :  { %v3768_v27 = vpop.f32.mrf.mxu0 }
 0x128   :  { %6907 = vst [vmem:[#allocation26_spill] sm:$0xff] %v6100_v53  ;;  %v988_v60 = vadd.f32 %v3767_v47, %v5863_v25  ;;  %v1078_v9 = vpop.f32.mrf.mxu1 }
 0x129   :  { %v3769_v61 = vpop.f32.mrf.mxu0 }
 0x12a   :  { %v6112_v21 = vadd.f32 %v1075_v43, %v988_v60  ;;  %v3770_v41 = vadd.f32 %v3769_v61, %v3768_v27  ;;  %v4400_v31 = vpop.f32.mrf.mxu1  ;;  %v3506_v27 = vcombine.low %v3459_v63, %v3459_v63 }
 0x12b   :  { %v3771_v56 = vpop.f32.mrf.mxu0  ;;  %2175 = vmatmul.mubr.bf16.gmra.mxu0 %v4769_v34  ;;  %v4781_v34 = vld [vmem:[%s6849_s0 + $0x2ec] ss:$28 sps:$4 sm:$0xff]  }
 0x12c   :  { %v991_v28 = vadd.f32 %v3770_v41, %v5866_v50  ;;  %v1083_v33 = vpop.f32.mrf.mxu1  ;;  %2263 = vmatmul.mubr.bf16.gmra.mxu1 %v4772_v30  ;;  %2182 = vmatprep.mubr.bf16.mxu0 %v3505_v39 }
 0x12d   :  { %v3772_v25 = vpop.f32.mrf.mxu0  ;;  %2270 = vmatprep.mubr.bf16.mxu1 %v3507_v48 }
 0x12e   :  { %v6115_v47 = vadd.f32 %v1078_v9, %v991_v28  ;;  %v3773_v53 = vadd.f32 %v3772_v25, %v3771_v56  ;;  %v4403_v32 = vpop.f32.mrf.mxu1  ;;  %v4785_v28 = vld [vmem:[%s6849_s0 + $0x324] ss:$28 sps:$4 sm:$0xff]  }
 0x12f   :  { %v3774_v36 = vpop.f32.mrf.mxu0 }
 0x130   :  { %v996_v43 = vadd.f32 %v3773_v53, %v5876_v35  ;;  %v1086_v60 = vpop.f32.mrf.mxu1 }
 0x131   :  { %v3775_v50 = vpop.f32.mrf.mxu0 }
 0x132   :  { %v6121_v61 = vadd.f32 %v1083_v33, %v996_v43  ;;  %v3776_v30 = vadd.f32 %v3775_v50, %v3774_v36  ;;  %v4404_v39 = vpop.f32.mrf.mxu1  ;;  %v4779_v36 = vld [vmem:[%s6849_s0 + $0x2e8] ss:$28 sps:$4 sm:$0xff]  }
 0x133   :  { %v3777_v48 = vpop.f32.mrf.mxu0  ;;  %2183 = vmatmul.mubr.bf16.gmra.mxu0 %v3504_v52 }
 0x134   :  { %v999_v9 = vadd.f32 %v3776_v30, %v5882_v20  ;;  %v1091_v32 = vpop.f32.mrf.mxu1  ;;  %2271 = vmatmul.mubr.bf16.gmra.mxu1 %v3506_v27  ;;  %2310 = vmatprep.mubr.bf16.mxu0 %v4781_v34  ;;  %v4782_v20 = vld [vmem:[%s6849_s0 + $0x2f0] ss:$28 sps:$4 sm:$0xff]  }
 0x135   :  { %v3778_v18 = vpop.f32.mrf.mxu0  ;;  %4477 = vmatprep.mubr.msk.bf16.mxu1 %vm4929_vm2, %v6882_v62 }
 0x136   :  { %v6126_v35 = vadd.f32 %v1086_v60, %v999_v9  ;;  %v3779_v53 = vadd.f32 %v3778_v18, %v3777_v48  ;;  %v4407_v63 = vpop.f32.mrf.mxu1 }
 0x137   :  { %v3780_v41 = vpop.f32.mrf.mxu0 }
 0x138   :  { %v1004_v52 = vadd.f32 %v3779_v53, %v5890_v58  ;;  %v1094_v31 = vpop.f32.mrf.mxu1 }
 0x139   :  { %v3781_v56 = vpop.f32.mrf.mxu0 }
 0x13a   :  { %v6138_v33 = vadd.f32 %v1091_v32, %v1004_v52  ;;  %v3782_v25 = vadd.f32 %v3781_v56, %v3780_v41  ;;  %v4408_v43 = vpop.f32.mrf.mxu1  ;;  %v4786_v32 = vld [vmem:[%s6849_s0 + $0x328] ss:$28 sps:$4 sm:$0xff]  }
 0x13b   :  { %v3783_v60 = vpop.f32.mrf.mxu0  ;;  %2311 = vmatmul.mubr.bf16.vlgmr.msra.gmra.mxu0 %v4779_v36 }
 0x13c   :  { %v1007_v27 = vadd.f32 %v3782_v25, %v5904_v7  ;;  %v1099_v34 = vpop.f32.mrf.mxu1  ;;  %4478 = vmatmul.mubr.msk.bf16.vlgmr.msra.gmra.mxu1 %vm740_vm3, %v4782_v20  ;;  %4192 = vmatpush3.bf16.msra.mxu0 %v5616_v42  ;;  %v4783_v7 = vld [vmem:[%s6849_s0 + $0x320] ss:$28 sps:$4 sm:$0xff]  }
 0x13d   :  { %v3784_v58 = vpop.f32.mrf.mxu0  ;;  %2318 = vmatprep.mubr.bf16.mxu0 %v4785_v28  ;;  %4481 = vmatprep.mubr.msk.bf16.mxu1 %vm4929_vm2, %v6882_v62 }
 0x13e   :  { %v6145_v50 = vadd.f32 %v1094_v31, %v1007_v27  ;;  %v3785_v30 = vadd.f32 %v3784_v58, %v3783_v60  ;;  %v4411_v39 = vpop.f32.mrf.mxu1  ;;  %4193 = vmatprep.subr.bf16.mxu0 %v5624_v44  ;;  %4250 = vmatpush3.bf16.msra.mxu1 %v5630_v45  ;;  %v4789_v44 = vld [vmem:[%s6849_s0 + $0x35c] ss:$28 sps:$4 sm:$0xff]  }
 0x13f   :  { %v3786_v48 = vpop.f32.mrf.mxu0  ;;  %4251 = vmatprep.subr.bf16.mxu1 %v5639_v0 }
 0x140   :  { %v1012_v42 = vadd.f32 %v3785_v30, %v5929_v57  ;;  %v1102_v9 = vpop.f32.mrf.mxu1  ;;  %4194 = vmatpush3.bf16.msra.mxu0 %v5648_v55 }
 0x141   :  { %v3787_v45 = vpop.f32.mrf.mxu0  ;;  %4195 = vmatprep.subr.bf16.mxu0 %v5657_v59 }
 0x142   :  { %v6162_v18 = vadd.f32 %v1099_v34, %v1012_v42  ;;  %v3788_v53 = vadd.f32 %v3787_v45, %v3786_v48  ;;  %v4412_v0 = vpop.f32.mrf.mxu1  ;;  %4252 = vmatpush3.bf16.msra.mxu1 %v5663_v2 }
 0x143   :  { %v3789_v57 = vpop.f32.mrf.mxu0  ;;  %2319 = vmatmul.mubr.bf16.gmra.mxu0 %v4783_v7  ;;  %4253 = vmatprep.subr.bf16.mxu1 %v5669_v3  ;;  %v4798_v7 = vld [vmem:[%s6849_s0 + $0x3d0] ss:$28 sps:$4 sm:$0xff]  }
 0x144   :  { %v1015_v63 = vadd.f32 %v3788_v53, %v5947_v10  ;;  %v1107_v55 = vpop.f32.mrf.mxu1  ;;  %4482 = vmatmul.mubr.msk.bf16.gmra.mxu1 %vm740_vm3, %v4786_v32  ;;  %2326 = vmatprep.mubr.bf16.mxu0 %v4789_v44  ;;  %v4787_v10 = vld [vmem:[%s6849_s0 + $0x358] ss:$28 sps:$4 sm:$0xff]   ;;  %v6908_v32 = vld [vmem:[#allocation3_spill] sm:$0xff] }
 0x145   :  { %v3790_v41 = vpop.f32.mrf.mxu0  ;;  %4485 = vmatprep.mubr.msk.bf16.mxu1 %vm4929_vm2, %v6882_v62  ;;  %4196 = vmatpush3.bf16.msra.mxu0 %v5678_v4  ;;  %v4790_v4 = vld [vmem:[%s6849_s0 + $0x360] ss:$28 sps:$4 sm:$0xff]  }
 0x146   :  { %v6171_v59 = vadd.f32 %v1102_v9, %v1015_v63  ;;  %v3791_v36 = vadd.f32 %v3790_v41, %v3789_v57  ;;  %v4415_v2 = vpop.f32.mrf.mxu1  ;;  %4197 = vmatprep.subr.bf16.mxu0 %v5684_v5  ;;  %4254 = vmatpush3.bf16.msra.mxu1 %v5690_v6  ;;  %v4793_v5 = vld [vmem:[%s6849_s0 + $0x394] ss:$28 sps:$4 sm:$0xff]   ;;  %v4799_v41 = vld [vmem:[%s6849_s0 + $0x400] ss:$28 sps:$4 sm:$0xff]  }
 0x147   :  { %v3792_v3 = vpop.f32.mrf.mxu0  ;;  %4255 = vmatprep.subr.bf16.mxu1 %v5699_v8  ;;  %v4802_v2 = vld [vmem:[%s6849_s0 + $0x408] ss:$28 sps:$4 sm:$0xff]  }
 0x148   :  { %v1020_v52 = vadd.f32 %v3791_v36, %v5977_v1  ;;  %v1110_v31 = vpop.f32.mrf.mxu1 }
 0x149   :  { %v3793_v20 = vpop.f32.mrf.mxu0  ;;  %4198 = vmatpush3.bf16.msra.mxu0 %v5711_v11 }
 0x14a   :  { %v6187_v6 = vadd.f32 %v1107_v55, %v1020_v52  ;;  %v3794_v56 = vadd.f32 %v3793_v20, %v3792_v3  ;;  %v4416_v28 = vpop.f32.mrf.mxu1  ;;  %4199 = vmatprep.subr.bf16.mxu0 %v5717_v12  ;;  %4256 = vmatpush3.bf16.msra.mxu1 %v5723_v13 }
 0x14b   :  { %v3795_v8 = vpop.f32.mrf.mxu0  ;;  %2327 = vmatmul.mubr.bf16.gmra.mxu0 %v4787_v10  ;;  %4257 = vmatprep.subr.bf16.mxu1 %v5729_v14 }
 0x14c   :  { %v1023_v1 = vadd.f32 %v3794_v56, %v6001_v46  ;;  %v1115_v25 = vpop.f32.mrf.mxu1  ;;  %4486 = vmatmul.mubr.msk.bf16.gmra.mxu1 %vm740_vm3, %v4790_v4  ;;  %2334 = vmatprep.mubr.bf16.mxu0 %v4793_v5  ;;  %v4791_v46 = vld [vmem:[%s6849_s0 + $0x390] ss:$28 sps:$4 sm:$0xff]  }
 0x14d   :  { %v3796_v43 = vpop.f32.mrf.mxu0  ;;  %4489 = vmatprep.mubr.msk.bf16.mxu1 %vm4929_vm2, %v6882_v62  ;;  %4200 = vmatpush3.bf16.msra.mxu0 %v5738_v15  ;;  %v4794_v15 = vld [vmem:[%s6849_s0 + $0x398] ss:$28 sps:$4 sm:$0xff]  }
 0x14e   :  { %v6197_v11 = vadd.f32 %v1110_v31, %v1023_v1  ;;  %v3797_v12 = vadd.f32 %v3796_v43, %v3795_v8  ;;  %v4419_v13 = vpop.f32.mrf.mxu1  ;;  %4201 = vmatprep.subr.bf16.mxu0 %v5744_v16  ;;  %4258 = vmatpush3.bf16.msra.mxu1 %v5750_v17  ;;  %v4797_v16 = vld [vmem:[%s6849_s0 + $0x3cc] ss:$28 sps:$4 sm:$0xff]  }
 0x14f   :  { %v3798_v14 = vpop.f32.mrf.mxu0  ;;  %4259 = vmatprep.subr.bf16.mxu1 %v5759_v19 }
 0x150   :  { %v1028_v60 = vadd.f32 %v3797_v12, %v6031_v49  ;;  %v1118_v27 = vpop.f32.mrf.mxu1 }
 0x151   :  { %v3799_v34 = vpop.f32.mrf.mxu0  ;;  %4202 = vmatpush3.bf16.msra.mxu0 %v5771_v22 }
 0x152   :  { %v6213_v17 = vadd.f32 %v1115_v25, %v1028_v60  ;;  %v4420_v58 = vpop.f32.mrf.mxu1  ;;  %4203 = vmatprep.subr.bf16.mxu0 %v5777_v23  ;;  %4260 = vmatpush3.bf16.msra.mxu1 %v5783_v24  ;;  %v4808_v60 = vld [vmem:[%s6849_s0 + $0x448] ss:$28 sps:$4 sm:$0xff]  }
 0x153   :  { %v3831_v19 = vpop.f32.mrf.mxu0  ;;  %2335 = vmatmul.mubr.bf16.gmra.mxu0 %v4791_v46  ;;  %4261 = vmatprep.subr.bf16.mxu1 %v5789_v26  ;;  %v4795_v26 = vld [vmem:[%s6849_s0 + $0x3c8] ss:$28 sps:$4 sm:$0xff]   ;;  %v4805_v46 = vld [vmem:[%s6849_s0 + $0x440] ss:$0 sps:$4 sm:$0xff]  }
 0x154   :  { %v3889_v49 = vpop.f32.mrf.mxu1  ;;  %4490 = vmatmul.mubr.msk.bf16.gmra.mxu1 %vm740_vm3, %v4794_v15  ;;  %2342 = vmatprep.mubr.bf16.mxu0 %v4797_v16  ;;  %v4811_v16 = vld [vmem:[%s6849_s0 + $0x450] ss:$28 sps:$4 sm:$0xff]  }
 0x155   :  { %v3832_v30 = vpop.f32.mrf.mxu0  ;;  %4493 = vmatprep.mubr.msk.bf16.mxu1 %vm4929_vm2, %v6882_v62  ;;  %4204 = vmatpush3.bf16.msra.mxu0 %v5798_v29  ;;  %v4801_v29 = vld [vmem:[%s6849_s0 + $0x404] ss:$28 sps:$4 sm:$0xff]  }
 0x156   :  { %v3833_v22 = vadd.f32 %v3832_v30, %v3831_v19  ;;  %v3890_v39 = vpop.f32.mrf.mxu1  ;;  %4205 = vmatprep.subr.bf16.mxu0 %v5804_v37  ;;  %4262 = vmatpush3.bf16.msra.mxu1 %v5810_v38 }
 0x157   :  { %v3891_v23 = vadd.f32 %v3890_v39, %v3889_v49  ;;  %v3834_v24 = vpop.f32.mrf.mxu0  ;;  %4263 = vmatprep.subr.bf16.mxu1 %v5819_v54 }
 0x158   :  { %v3892_v48 = vpop.f32.mrf.mxu1 }
 0x159   :  { %v6234_v37 = vadd.f32 %v3891_v23, %v3833_v22  ;;  %v3835_v38 = vpop.f32.mrf.mxu0  ;;  %4206 = vmatpush3.bf16.msra.mxu0 %v5833_v40  ;;  %v3460_v40 = vld [vmem:[%s6849_s0 + $0x438] sm:$0xff] }
 0x15a   :  { %v3836_v42 = vadd.f32 %v3835_v38, %v3834_v24  ;;  %v3893_v9 = vpop.f32.mrf.mxu1  ;;  %4264 = vmatpush3.bf16.msra.mxu1 %v5839_v51  ;;  %4307 = vmatprep.subr.bf16.mxu0 %v6908_v32  ;;  %v3509_v3 = vcombine.high %v3460_v40, %v3460_v40  ;;  %v3508_v13 = vcombine.low %v3460_v40, %v3460_v40  ;;  %v4809_v38 = vld [vmem:[%s6849_s0 + $0x44c] ss:$28 sps:$4 sm:$0xff]   ;;  %v4814_v32 = vld [vmem:[%s6849_s0 + $0x480] ss:$28 sps:$4 sm:$0xff]  }
 0x15b   :  { %v3894_v54 = vadd.f32 %v3893_v9, %v3892_v48  ;;  %v3837_v44 = vpop.f32.mrf.mxu0  ;;  %2343 = vmatmul.mubr.bf16.gmra.mxu0 %v4795_v26  ;;  %4505 = vmatprep.subr.bf16.mxu1 %v6882_v62 }
 0x15c   :  { %v3895_v45 = vpop.f32.mrf.mxu1  ;;  %4494 = vmatmul.mubr.msk.bf16.gmra.mxu1 %vm740_vm3, %v4798_v7  ;;  %2350 = vmatprep.mubr.bf16.mxu0 %v4801_v29  ;;  %v4806_v7 = vld [vmem:[%s6849_s0 + $0x444] ss:$28 sps:$4 sm:$0xff]  }
 0x15d   :  { %v6241_v53 = vadd.f32 %v3894_v54, %v3836_v42  ;;  %v3838_v0 = vpop.f32.mrf.mxu0  ;;  %4497 = vmatprep.mubr.msk.bf16.mxu1 %vm4929_vm2, %v6882_v62  ;;  %v4817_v54 = vld [vmem:[%s6849_s0 + $0x488] ss:$28 sps:$4 sm:$0xff]  }
 0x15e   :  { %v3839_v51 = vadd.f32 %v3838_v0, %v3837_v44  ;;  %v3896_v57 = vpop.f32.mrf.mxu1 }
 0x15f   :  { %v3897_v63 = vadd.f32 %v3896_v57, %v3895_v45  ;;  %v3840_v55 = vpop.f32.mrf.mxu0  ;;  %v6909_v57 = vld [vmem:[#allocation4_spill] sm:$0xff] }
 0x160   :  { %v3898_v36 = vpop.f32.mrf.mxu1 }
 0x161   :  { %v6254_v10 = vadd.f32 %v3897_v63, %v3839_v51  ;;  %v3841_v52 = vpop.f32.mrf.mxu0 }
 0x162   :  { %v3842_v31 = vadd.f32 %v3841_v52, %v3840_v55  ;;  %v3899_v4 = vpop.f32.mrf.mxu1 }
 0x163   :  { %v3900_v5 = vadd.f32 %v3899_v4, %v3898_v36  ;;  %v3843_v20 = vpop.f32.mrf.mxu0  ;;  %2351 = vmatmul.mubr.bf16.gmra.mxu0 %v4799_v41  ;;  %v4812_v4 = vld [vmem:[%s6849_s0 + $0x47c] ss:$28 sps:$4 sm:$0xff]  }
 0x164   :  { %v3901_v56 = vpop.f32.mrf.mxu1  ;;  %4498 = vmatmul.mubr.msk.bf16.gmra.mxu1 %vm740_vm3, %v4802_v2  ;;  %2358 = vmatprep.mubr.bf16.mxu0 %v3509_v3  ;;  %v6910_v2 = vld [vmem:[#allocation5_spill] sm:$0xff]  ;;  %v6911_v3 = vld [vmem:[#allocation2_spill] sm:$0xff] }
 0x165   :  { %v6257_v28 = vadd.f32 %v3900_v5, %v3842_v31  ;;  %v3844_v8 = vpop.f32.mrf.mxu0  ;;  %4501 = vmatprep.mubr.msk.bf16.mxu1 %vm4929_vm2, %v6882_v62 }
 0x166   :  { %v3845_v1 = vadd.f32 %v3844_v8, %v3843_v20  ;;  %v3902_v25 = vpop.f32.mrf.mxu1  ;;  %v4815_v20 = vld [vmem:[%s6849_s0 + $0x484] ss:$28 sps:$4 sm:$0xff]   ;;  %v4820_v8 = vld [vmem:[%s6849_s0 + $0x4b8] ss:$28 sps:$4 sm:$0xff]  }
 0x167   :  { %v3903_v43 = vadd.f32 %v3902_v25, %v3901_v56  ;;  %v3846_v12 = vpop.f32.mrf.mxu0  ;;  %v6912_v56 = vld [vmem:[#allocation6_spill] sm:$0xff] }
 0x168   :  { %v3904_v14 = vpop.f32.mrf.mxu1 }
 0x169   :  { %v6267_v27 = vadd.f32 %v3903_v43, %v3845_v1  ;;  %v3847_v15 = vpop.f32.mrf.mxu0  ;;  %v6913_v43 = vld [vmem:[#allocation7_spill] sm:$0xff] }
 0x16a   :  { %v3848_v34 = vadd.f32 %v3847_v15, %v3846_v12  ;;  %v3905_v58 = vpop.f32.mrf.mxu1  ;;  %v4823_v12 = vld [vmem:[%s6849_s0 + $0x4c0] ss:$28 sps:$4 sm:$0xff]  }
 0x16b   :  { %v3906_v19 = vadd.f32 %v3905_v58, %v3904_v14  ;;  %v3849_v49 = vpop.f32.mrf.mxu0  ;;  %2359 = vmatmul.mubr.bf16.gmra.mxu0 %v3508_v13 }
 0x16c   :  { %v3907_v30 = vpop.f32.mrf.mxu1  ;;  %4502 = vmatmul.mubr.msk.bf16.gmra.mxu1 %vm740_vm3, %v4805_v46  ;;  %2807 = vmatprep.mubr.bf16.mxu0 %v4808_v60  ;;  %v6914_v46 = vld [vmem:[#allocation8_spill] sm:$0xff] }
 0x16d   :  { %v6273_v22 = vadd.f32 %v3906_v19, %v3848_v34  ;;  %v3850_v39 = vpop.f32.mrf.mxu0  ;;  %2895 = vmatprep.mubr.bf16.mxu1 %v4811_v16  ;;  %v6915_v19 = vld [vmem:[#allocation9_spill] sm:$0xff] }
 0x16e   :  { %v3851_v23 = vadd.f32 %v3850_v39, %v3849_v49  ;;  %v3908_v24 = vpop.f32.mrf.mxu1  ;;  %v6916_v39 = vld [vmem:[#allocation10_spill] sm:$0xff] }
 0x16f   :  { %v3909_v26 = vadd.f32 %v3908_v24, %v3907_v30  ;;  %v3852_v48 = vpop.f32.mrf.mxu0 }
 0x170   :  { %v3910_v29 = vpop.f32.mrf.mxu1 }
 0x171   :  { %v6281_v42 = vadd.f32 %v3909_v26, %v3851_v23  ;;  %v3853_v9 = vpop.f32.mrf.mxu0  ;;  %v6917_v23 = vld [vmem:[#allocation11_spill] sm:$0xff] }
 0x172   :  { %v3854_v44 = vadd.f32 %v3853_v9, %v3852_v48  ;;  %v3911_v45 = vpop.f32.mrf.mxu1  ;;  %v4818_v48 = vld [vmem:[%s6849_s0 + $0x4b4] ss:$28 sps:$4 sm:$0xff]  }
 0x173   :  { %v3912_v0 = vadd.f32 %v3911_v45, %v3910_v29  ;;  %v3855_v40 = vpop.f32.mrf.mxu0  ;;  %2808 = vmatmul.mubr.bf16.vlgmr.msra.gmra.mxu0 %v4806_v7  ;;  %v4821_v29 = vld [vmem:[%s6849_s0 + $0x4bc] ss:$28 sps:$4 sm:$0xff]  }
 0x174   :  { %v3913_v51 = vpop.f32.mrf.mxu1  ;;  %2896 = vmatmul.mubr.bf16.vlgmr.msra.gmra.mxu1 %v4809_v38  ;;  %4308 = vmatpush3.bf16.msra.mxu0 %v6909_v57  ;;  %v4826_v38 = vld [vmem:[%s6849_s0 + $0x4f0] ss:$28 sps:$4 sm:$0xff]  }
 0x175   :  { %v6290_v63 = vadd.f32 %v3912_v0, %v3854_v44  ;;  %v3856_v55 = vpop.f32.mrf.mxu0  ;;  %2815 = vmatprep.mubr.bf16.mxu0 %v4814_v32  ;;  %2903 = vmatprep.mubr.bf16.mxu1 %v4817_v54  ;;  %v6918_v54 = vld [vmem:[#allocation12_spill] sm:$0xff] }
 0x176   :  { %v3857_v41 = vadd.f32 %v3856_v55, %v3855_v40  ;;  %v3914_v36 = vpop.f32.mrf.mxu1  ;;  %4309 = vmatprep.subr.bf16.mxu0 %v6910_v2  ;;  %4506 = vmatpush3.bf16.msra.mxu1 %v6911_v3  ;;  %v4829_v44 = vld [vmem:[%s6849_s0 + $0x4f8] ss:$28 sps:$4 sm:$0xff]   ;;  %v6921_v3 = vld [vmem:[#allocation15_spill] sm:$0xff] }
 0x177   :  { %v3915_v52 = vadd.f32 %v3914_v36, %v3913_v51  ;;  %v3858_v31 = vpop.f32.mrf.mxu0  ;;  %4507 = vmatprep.subr.bf16.mxu1 %v6882_v62  ;;  %v6919_v40 = vld [vmem:[#allocation13_spill] sm:$0xff]  ;;  %v6920_v51 = vld [vmem:[#allocation14_spill] sm:$0xff] }
 0x178   :  { %v3916_v5 = vpop.f32.mrf.mxu1  ;;  %4310 = vmatpush3.bf16.msra.mxu0 %v6912_v56 }
 0x179   :  { %v6305_v1 = vadd.f32 %v3915_v52, %v3857_v41  ;;  %v3859_v25 = vpop.f32.mrf.mxu0  ;;  %4311 = vmatprep.subr.bf16.mxu0 %v6913_v43  ;;  %v4827_v43 = vld [vmem:[%s6849_s0 + $0x4f4] ss:$28 sps:$4 sm:$0xff]  }
 0x17a   :  { %v3860_v13 = vadd.f32 %v3859_v25, %v3858_v31  ;;  %v3917_v14 = vpop.f32.mrf.mxu1  ;;  %4508 = vmatpush3.bf16.msra.mxu1 %v6914_v46  ;;  %v4835_v46 = vld [vmem:[%s6849_s0 + $0x530] ss:$28 sps:$4 sm:$0xff]  }
 0x17b   :  { %v3918_v60 = vadd.f32 %v3917_v14, %v3916_v5  ;;  %v3861_v15 = vpop.f32.mrf.mxu0  ;;  %2816 = vmatmul.mubr.bf16.gmra.mxu0 %v4812_v4  ;;  %4509 = vmatprep.subr.bf16.mxu1 %v6882_v62  ;;  %v6922_v4 = vld [vmem:[#allocation16_spill] sm:$0xff]  ;;  %v6923_v5 = vld [vmem:[#allocation17_spill] sm:$0xff] }
 0x17c   :  { %v3919_v16 = vpop.f32.mrf.mxu1  ;;  %2904 = vmatmul.mubr.bf16.gmra.mxu1 %v4815_v20  ;;  %2823 = vmatprep.mubr.bf16.mxu0 %v4820_v8  ;;  %v4824_v8 = vld [vmem:[%s6849_s0 + $0x4ec] ss:$28 sps:$4 sm:$0xff]  }
 0x17d   :  { %v6313_v34 = vadd.f32 %v3918_v60, %v3860_v13  ;;  %v3862_v58 = vpop.f32.mrf.mxu0  ;;  %2911 = vmatprep.mubr.bf16.mxu1 %v4823_v12  ;;  %4312 = vmatpush3.bf16.msra.mxu0 %v6915_v19  ;;  %v4832_v12 = vld [vmem:[%s6849_s0 + $0x528] ss:$28 sps:$4 sm:$0xff]  }
 0x17e   :  { %v3863_v49 = vadd.f32 %v3862_v58, %v3861_v15  ;;  %v3920_v30 = vpop.f32.mrf.mxu1  ;;  %4313 = vmatprep.subr.bf16.mxu0 %v6916_v39  ;;  %4510 = vmatpush3.bf16.msra.mxu1 %v6917_v23  ;;  %v6924_v60 = vld [vmem:[#allocation18_spill] sm:$0xff]  ;;  %v6926_v58 = vld [vmem:[#allocation20_spill] sm:$0xff]  ;;  %v6927_v39 = vld [vmem:[#allocation21_spill] sm:$0xff] }
 0x17f   :  { %v3921_v24 = vadd.f32 %v3920_v30, %v3919_v16  ;;  %v3864_v26 = vpop.f32.mrf.mxu0  ;;  %4511 = vmatprep.subr.bf16.mxu1 %v6882_v62  ;;  %v6925_v16 = vld [vmem:[#allocation19_spill] sm:$0xff] }
 0x180   :  { %v3922_v7 = vpop.f32.mrf.mxu1 }
 0x181   :  { %v6328_v9 = vadd.f32 %v3921_v24, %v3863_v49  ;;  %v3865_v32 = vpop.f32.mrf.mxu0  ;;  %4314 = vmatpush3.bf16.msra.mxu0 %v6918_v54  ;;  %v4833_v54 = vld [vmem:[%s6849_s0 + $0x52c] ss:$28 sps:$4 sm:$0xff]  }
 0x182   :  { %v3866_v45 = vadd.f32 %v3865_v32, %v3864_v26  ;;  %v3923_v0 = vpop.f32.mrf.mxu1  ;;  %4315 = vmatprep.subr.bf16.mxu0 %v6919_v40  ;;  %4512 = vmatpush3.bf16.msra.mxu1 %v6920_v51  ;;  %v6928_v26 = vld [vmem:[#allocation22_spill] sm:$0xff]  ;;  %v6930_v40 = vld [vmem:[#allocation24_spill] sm:$0xff] }
 0x183   :  { %v3924_v57 = vadd.f32 %v3923_v0, %v3922_v7  ;;  %v3867_v55 = vpop.f32.mrf.mxu0  ;;  %2824 = vmatmul.mubr.bf16.gmra.mxu0 %v4818_v48  ;;  %4513 = vmatprep.subr.bf16.mxu1 %v6882_v62  ;;  %v6929_v48 = vld [vmem:[#allocation23_spill] sm:$0xff] }
 0x184   :  { %v3925_v41 = vpop.f32.mrf.mxu1  ;;  %2912 = vmatmul.mubr.bf16.gmra.mxu1 %v4821_v29  ;;  %2831 = vmatprep.mubr.bf16.mxu0 %v4826_v38  ;;  %v4830_v29 = vld [vmem:[%s6849_s0 + $0x524] ss:$28 sps:$4 sm:$0xff]  }
 0x185   :  { %v6337_v36 = vadd.f32 %v3924_v57, %v3866_v45  ;;  %v3868_v2 = vpop.f32.mrf.mxu0  ;;  %2919 = vmatprep.mubr.bf16.mxu1 %v4829_v44  ;;  %4316 = vmatpush3.bf16.msra.mxu0 %v6921_v3  ;;  %v4838_v44 = vld [vmem:[%s6849_s0 + $0x560] ss:$28 sps:$4 sm:$0xff]   ;;  %v4841_v0 = vld [vmem:[%s6849_s0 + $0x568] ss:$28 sps:$4 sm:$0xff]  }
 0x186   :  { %v3869_v52 = vadd.f32 %v3868_v2, %v3867_v55  ;;  %v3926_v31 = vpop.f32.mrf.mxu1  ;;  %4317 = vmatprep.subr.bf16.mxu0 %v6922_v4  ;;  %4514 = vmatpush3.bf16.msra.mxu1 %v6923_v5  ;;  %v3566_v4 = vld [vmem:[%s6849_s0 + $0x594] sm:$0xff] }
 0x187   :  { %v3927_v20 = vadd.f32 %v3926_v31, %v3925_v41  ;;  %v3870_v56 = vpop.f32.mrf.mxu0  ;;  %4515 = vmatprep.subr.bf16.mxu1 %v6882_v62  ;;  %v6931_v41 = vld [vmem:[#allocation25_spill] sm:$0xff] }
 0x188   :  { %v3928_v25 = vpop.f32.mrf.mxu1 }
 0x189   :  { %v6352_v13 = vadd.f32 %v3927_v20, %v3869_v52  ;;  %v3871_v14 = vpop.f32.mrf.mxu0  ;;  %4318 = vmatpush3.bf16.msra.mxu0 %v6924_v60  ;;  %v4839_v60 = vld [vmem:[%s6849_s0 + $0x564] ss:$28 sps:$4 sm:$0xff]  }
 0x18a   :  { %v3929_v15 = vpop.f32.mrf.mxu1  ;;  %4319 = vmatprep.subr.bf16.mxu0 %v6925_v16  ;;  %4516 = vmatpush3.bf16.msra.mxu1 %v6926_v58 }
 0x18b   :  { %v3947_v19 = vpop.f32.mrf.mxu0  ;;  %2832 = vmatmul.mubr.bf16.gmra.mxu0 %v4824_v8  ;;  %4517 = vmatprep.subr.bf16.mxu1 %v6882_v62  ;;  %v3567_v8 = vld [vmem:[%s6849_s0 + $0x59c] sm:$0xff]  ;;  %v3613_v15 = vcombine.high %v3566_v4, %v3566_v4 }
 0x18c   :  { %v1727_v49 = vpop.f32.mrf.mxu1  ;;  %2920 = vmatmul.mubr.bf16.gmra.mxu1 %v4827_v43  ;;  %2839 = vmatprep.mubr.bf16.mxu0 %v4832_v12  ;;  %v6932_v43 = vld [vmem:[#allocation26_spill] sm:$0xff]  ;;  %v3615_v58 = vcombine.high %v3567_v8, %v3567_v8 }
 0x18d   :  { %v3948_v30 = vpop.f32.mrf.mxu0  ;;  %2927 = vmatprep.mubr.bf16.mxu1 %v4835_v46  ;;  %4320 = vmatpush3.bf16.msra.mxu0 %v6927_v39 }
 0x18e   :  { %v3949_v23 = vadd.f32 %v3948_v30, %v3947_v19  ;;  %v4437_v24 = vpop.f32.mrf.mxu1  ;;  %4321 = vmatprep.subr.bf16.mxu0 %v6928_v26  ;;  %4518 = vmatpush3.bf16.msra.mxu1 %v6929_v48 }
 0x18f   :  { %v3950_v7 = vpop.f32.mrf.mxu0 }
 0x190   :  { %v1640_v38 = vadd.f32 %v3949_v23, %v6234_v37  ;;  %v1730_v32 = vpop.f32.mrf.mxu1 }
 0x191   :  { %v3951_v45 = vpop.f32.mrf.mxu0  ;;  %4322 = vmatpush3.bf16.msra.mxu0 %v6930_v40 }
 0x192   :  { %v6378_v51 = vadd.f32 %v1727_v49, %v1640_v38  ;;  %v3952_v57 = vadd.f32 %v3951_v45, %v3950_v7  ;;  %v4438_v37 = vpop.f32.mrf.mxu1 }
 0x193   :  { %v3953_v55 = vpop.f32.mrf.mxu0  ;;  %2840 = vmatmul.mubr.bf16.gmra.mxu0 %v4830_v29 }
 0x194   :  { %v1781_v2 = vmax.f32 %v6931_v41, %v6378_v51  ;;  %v1643_v3 = vadd.f32 %v3952_v57, %v6241_v53  ;;  %v1735_v52 = vpop.f32.mrf.mxu1  ;;  %2928 = vmatmul.mubr.bf16.gmra.mxu1 %v4833_v54  ;;  %2847 = vmatprep.mubr.bf16.mxu0 %v4838_v44  ;;  %v4836_v53 = vld [vmem:[%s6849_s0 + $0x55c] ss:$28 sps:$4 sm:$0xff]  }
 0x195   :  { %v3954_v31 = vpop.f32.mrf.mxu0  ;;  %2935 = vmatprep.mubr.bf16.mxu1 %v4841_v0  ;;  %v3614_v0 = vcombine.low %v3567_v8, %v3567_v8 }
 0x196   :  { %v6386_v5 = vadd.f32 %v1730_v32, %v1643_v3  ;;  %v3955_v20 = vadd.f32 %v3954_v31, %v3953_v55  ;;  %v4441_v56 = vpop.f32.mrf.mxu1  ;;  %v3612_v32 = vcombine.low %v3566_v4, %v3566_v4 }
 0x197   :  { %v3956_v25 = vpop.f32.mrf.mxu0 }
 0x198   :  { %v1782_v12 = vmax.f32 %v6932_v43, %v6386_v5  ;;  %v1648_v14 = vadd.f32 %v3955_v20, %v6254_v10  ;;  %v1738_v46 = vpop.f32.mrf.mxu1 }
 0x199   :  { %v3957_v16 = vpop.f32.mrf.mxu0 }
 0x19a   :  { %v6400_v19 = vadd.f32 %v1735_v52, %v1648_v14  ;;  %v3958_v49 = vadd.f32 %v3957_v16, %v3956_v25  ;;  %v4442_v30 = vpop.f32.mrf.mxu1 }
 0x19b   :  { %v3959_v39 = vpop.f32.mrf.mxu0  ;;  %2848 = vmatmul.mubr.bf16.gmra.mxu0 %v4836_v53  ;;  %v4846_v53 = vld [vmem:[%s6849_s0 + $0x454] ss:$28 sps:$4 sm:$0xff]  }
 0x19c   :  { %v1783_v23 = vmax.f32 %v6112_v21, %v6400_v19  ;;  %v1651_v24 = vadd.f32 %v3958_v49, %v6257_v28  ;;  %v1743_v10 = vpop.f32.mrf.mxu1  ;;  %2936 = vmatmul.mubr.bf16.gmra.mxu1 %v4839_v60  ;;  %2855 = vmatprep.mubr.bf16.mxu0 %v3613_v15  ;;  %v4848_v28 = vld [vmem:[%s6849_s0 + $0x458] ss:$28 sps:$4 sm:$0xff]   ;;  %v4852_v15 = vld [vmem:[%s6849_s0 + $0x490] ss:$28 sps:$4 sm:$0xff]  }
 0x19d   :  { %v3960_v26 = vpop.f32.mrf.mxu0  ;;  %2943 = vmatprep.mubr.bf16.mxu1 %v3615_v58  ;;  %v4849_v60 = vld [vmem:[%s6849_s0 + $0x45c] ss:$28 sps:$4 sm:$0xff]  }
 0x19e   :  { %v6405_v48 = vadd.f32 %v1738_v46, %v1651_v24  ;;  %v3961_v7 = vadd.f32 %v3960_v26, %v3959_v39  ;;  %v4445_v29 = vpop.f32.mrf.mxu1 }
 0x19f   :  { %v3962_v38 = vpop.f32.mrf.mxu0 }
 0x1a0   :  { %v1784_v54 = vmax.f32 %v6115_v47, %v6405_v48  ;;  %v1656_v44 = vadd.f32 %v3961_v7, %v6267_v27  ;;  %v1746_v45 = vpop.f32.mrf.mxu1 }
 0x1a1   :  { %v3963_v40 = vpop.f32.mrf.mxu0 }
 0x1a2   :  { %v6413_v57 = vadd.f32 %v1743_v10, %v1656_v44  ;;  %v3964_v37 = vadd.f32 %v3963_v40, %v3962_v38  ;;  %v4446_v55 = vpop.f32.mrf.mxu1  ;;  %v4850_v44 = vld [vmem:[%s6849_s0 + $0x48c] ss:$28 sps:$4 sm:$0xff]  }
 0x1a3   :  { %v3965_v3 = vpop.f32.mrf.mxu0  ;;  %2856 = vmatmul.mubr.bf16.gmra.mxu0 %v3612_v32  ;;  %v4856_v40 = vld [vmem:[%s6849_s0 + $0x4c8] ss:$28 sps:$4 sm:$0xff]  }
 0x1a4   :  { %v1785_v52 = vmax.f32 %v6121_v61, %v6413_v57  ;;  %v1659_v31 = vadd.f32 %v3964_v37, %v6273_v22  ;;  %v1751_v4 = vpop.f32.mrf.mxu1  ;;  %2944 = vmatmul.mubr.bf16.gmra.mxu1 %v3614_v0  ;;  %2983 = vmatprep.mubr.bf16.mxu0 %v4848_v28  ;;  %v4853_v28 = vld [vmem:[%s6849_s0 + $0x494] ss:$28 sps:$4 sm:$0xff]  }
 0x1a5   :  { %v3966_v27 = vpop.f32.mrf.mxu0  ;;  %4519 = vmatprep.mubr.msk.bf16.mxu1 %vm4929_vm2, %v6882_v62 }
 0x1a6   :  { %v6420_v20 = vadd.f32 %v1746_v45, %v1659_v31  ;;  %v3967_v56 = vadd.f32 %v3966_v27, %v3965_v3  ;;  %v4449_v8 = vpop.f32.mrf.mxu1 }
 0x1a7   :  { %v3968_v25 = vpop.f32.mrf.mxu0 }
 0x1a8   :  { %v1664_v22 = vadd.f32 %v3967_v56, %v6281_v42  ;;  %v1754_v46 = vpop.f32.mrf.mxu1 }
 0x1a9   :  { %v3969_v16 = vpop.f32.mrf.mxu0 }
 0x1aa   :  { %v6434_v58 = vadd.f32 %v1751_v4, %v1664_v22  ;;  %v3970_v49 = vadd.f32 %v3969_v16, %v3968_v25  ;;  %v4450_v30 = vpop.f32.mrf.mxu1 }
 0x1ab   :  { %v3971_v39 = vpop.f32.mrf.mxu0  ;;  %2984 = vmatmul.mubr.bf16.vlgmr.msra.gmra.mxu0 %v4846_v53  ;;  %v4860_v30 = vld [vmem:[%s6849_s0 + $0x500] ss:$28 sps:$4 sm:$0xff]  }
 0x1ac   :  { %v1667_v42 = vadd.f32 %v3970_v49, %v6290_v63  ;;  %v1759_v10 = vpop.f32.mrf.mxu1  ;;  %4520 = vmatmul.mubr.msk.bf16.vlgmr.msra.gmra.mxu1 %vm740_vm3, %v4849_v60  ;;  %2991 = vmatprep.mubr.bf16.mxu0 %v4852_v15  ;;  %v4854_v60 = vld [vmem:[%s6849_s0 + $0x4c4] ss:$28 sps:$4 sm:$0xff]   ;;  %v4857_v49 = vld [vmem:[%s6849_s0 + $0x4cc] ss:$28 sps:$4 sm:$0xff]  }
 0x1ad   :  { %v3972_v26 = vpop.f32.mrf.mxu0  ;;  %4523 = vmatprep.mubr.msk.bf16.mxu1 %vm4929_vm2, %v6882_v62 }
 0x1ae   :  { %v6442_v7 = vadd.f32 %v1754_v46, %v1667_v42  ;;  %v3973_v29 = vadd.f32 %v3972_v26, %v3971_v39  ;;  %v4453_v38 = vpop.f32.mrf.mxu1 }
 0x1af   :  { %v3974_v32 = vpop.f32.mrf.mxu0 }
 0x1b0   :  { %v1672_v45 = vadd.f32 %v3973_v29, %v6305_v1  ;;  %v1762_v0 = vpop.f32.mrf.mxu1 }
 0x1b1   :  { %v3975_v37 = vpop.f32.mrf.mxu0 }
 0x1b2   :  { %v6456_v55 = vadd.f32 %v1759_v10, %v1672_v45  ;;  %v3976_v3 = vadd.f32 %v3975_v37, %v3974_v32  ;;  %v4454_v31 = vpop.f32.mrf.mxu1  ;;  %v4858_v37 = vld [vmem:[%s6849_s0 + $0x4fc] ss:$28 sps:$4 sm:$0xff]  }
 0x1b3   :  { %v3977_v4 = vpop.f32.mrf.mxu0  ;;  %2992 = vmatmul.mubr.bf16.gmra.mxu0 %v4850_v44 }
 0x1b4   :  { %v1675_v1 = vadd.f32 %v3976_v3, %v6313_v34  ;;  %v1767_v56 = vpop.f32.mrf.mxu1  ;;  %4524 = vmatmul.mubr.msk.bf16.gmra.mxu1 %vm740_vm3, %v4853_v28  ;;  %2999 = vmatprep.mubr.bf16.mxu0 %v4856_v40 }
 0x1b5   :  { %v3978_v8 = vpop.f32.mrf.mxu0  ;;  %4527 = vmatprep.mubr.msk.bf16.mxu1 %vm4929_vm2, %v6882_v62 }
 0x1b6   :  { %v6464_v25 = vadd.f32 %v1762_v0, %v1675_v1  ;;  %v3979_v53 = vadd.f32 %v3978_v8, %v3977_v4  ;;  %v4457_v22 = vpop.f32.mrf.mxu1  ;;  %v4861_v4 = vld [vmem:[%s6849_s0 + $0x504] ss:$28 sps:$4 sm:$0xff]   ;;  %v4864_v1 = vld [vmem:[%s6849_s0 + $0x538] ss:$28 sps:$4 sm:$0xff]  }
 0x1b7   :  { %v3980_v46 = vpop.f32.mrf.mxu0 }
 0x1b8   :  { %v1680_v15 = vadd.f32 %v3979_v53, %v6328_v9  ;;  %v1770_v16 = vpop.f32.mrf.mxu1 }
 0x1b9   :  { %v3981_v39 = vpop.f32.mrf.mxu0 }
 0x1ba   :  { %v6478_v42 = vadd.f32 %v1767_v56, %v1680_v15  ;;  %v3982_v10 = vadd.f32 %v3981_v39, %v3980_v46  ;;  %v4458_v26 = vpop.f32.mrf.mxu1  ;;  %v4862_v39 = vld [vmem:[%s6849_s0 + $0x534] ss:$28 sps:$4 sm:$0xff]  }
 0x1bb   :  { %v3983_v29 = vpop.f32.mrf.mxu0  ;;  %3000 = vmatmul.mubr.bf16.gmra.mxu0 %v4854_v60  ;;  %v4865_v26 = vld [vmem:[%s6849_s0 + $0x53c] ss:$28 sps:$4 sm:$0xff]  }
 0x1bc   :  { %v1683_v9 = vadd.f32 %v3982_v10, %v6337_v36  ;;  %v1775_v32 = vpop.f32.mrf.mxu1  ;;  %4528 = vmatmul.mubr.msk.bf16.gmra.mxu1 %vm740_vm3, %v4857_v49  ;;  %3007 = vmatprep.mubr.bf16.mxu0 %v4860_v30 }
 0x1bd   :  { %v3984_v44 = vpop.f32.mrf.mxu0  ;;  %4531 = vmatprep.mubr.msk.bf16.mxu1 %vm4929_vm2, %v6882_v62 }
 0x1be   :  { %v6486_v45 = vadd.f32 %v1770_v16, %v1683_v9  ;;  %v3985_v0 = vadd.f32 %v3984_v44, %v3983_v29  ;;  %v4461_v28 = vpop.f32.mrf.mxu1  ;;  %v4868_v29 = vld [vmem:[%s6849_s0 + $0x570] ss:$28 sps:$4 sm:$0xff]  }
 0x1bf   :  { %v3986_v40 = vpop.f32.mrf.mxu0 }
 0x1c0   :  { %v1688_v3 = vadd.f32 %v3985_v0, %v6352_v13  ;;  %v1778_v31 = vpop.f32.mrf.mxu1 }
 0x1c1   :  { %v3987_v56 = vpop.f32.mrf.mxu0 }
 0x1c2   :  { %v6500_v8 = vadd.f32 %v1775_v32, %v1688_v3  ;;  %v4462_v53 = vpop.f32.mrf.mxu1 }
 0x1c3   :  { %v4019_v22 = vpop.f32.mrf.mxu0  ;;  %3008 = vmatmul.mubr.bf16.gmra.mxu0 %v4858_v37 }
 0x1c4   :  { %v4077_v60 = vpop.f32.mrf.mxu1  ;;  %4532 = vmatmul.mubr.msk.bf16.gmra.mxu1 %vm740_vm3, %v4861_v4  ;;  %3015 = vmatprep.mubr.bf16.mxu0 %v4864_v1  ;;  %v3568_v4 = vld [vmem:[%s6849_s0 + $0x5a4] sm:$0xff] }
 0x1c5   :  { %v4020_v13 = vpop.f32.mrf.mxu0  ;;  %4535 = vmatprep.mubr.msk.bf16.mxu1 %vm4929_vm2, %v6882_v62 }
 0x1c6   :  { %v4021_v15 = vadd.f32 %v4020_v13, %v4019_v22  ;;  %v4078_v16 = vpop.f32.mrf.mxu1 }
 0x1c7   :  { %v4079_v49 = vadd.f32 %v4078_v16, %v4077_v60  ;;  %v4022_v30 = vpop.f32.mrf.mxu0  ;;  %v4866_v60 = vld [vmem:[%s6849_s0 + $0x56c] ss:$28 sps:$4 sm:$0xff]   ;;  %v3617_v16 = vcombine.high %v3568_v4, %v3568_v4 }
 0x1c8   :  { %v4080_v10 = vpop.f32.mrf.mxu1 }
 0x1c9   :  { %v6516_v9 = vadd.f32 %v4079_v49, %v4021_v15  ;;  %v4023_v32 = vpop.f32.mrf.mxu0  ;;  %v4869_v15 = vld [vmem:[%s6849_s0 + $0x574] ss:$28 sps:$4 sm:$0xff]  }
 0x1ca   :  { %v4024_v44 = vadd.f32 %v4023_v32, %v4022_v30  ;;  %v4081_v0 = vpop.f32.mrf.mxu1 }
 0x1cb   :  { %v4082_v28 = vadd.f32 %v4081_v0, %v4080_v10  ;;  %v4025_v40 = vpop.f32.mrf.mxu0  ;;  %3016 = vmatmul.mubr.bf16.gmra.mxu0 %v4862_v39 }
 0x1cc   :  { %v4083_v37 = vpop.f32.mrf.mxu1  ;;  %4536 = vmatmul.mubr.msk.bf16.gmra.mxu1 %vm740_vm3, %v4865_v26  ;;  %3023 = vmatprep.mubr.bf16.mxu0 %v4868_v29 }
 0x1cd   :  { %v6519_v3 = vadd.f32 %v4082_v28, %v4024_v44  ;;  %v4026_v31 = vpop.f32.mrf.mxu0  ;;  %4539 = vmatprep.mubr.msk.bf16.mxu1 %vm4929_vm2, %v6882_v62 }
 0x1ce   :  { %v4027_v1 = vadd.f32 %v4026_v31, %v4025_v40  ;;  %v4084_v56 = vpop.f32.mrf.mxu1 }
 0x1cf   :  { %v4085_v53 = vadd.f32 %v4084_v56, %v4083_v37  ;;  %v4028_v22 = vpop.f32.mrf.mxu0 }
 0x1d0   :  { %v4086_v13 = vpop.f32.mrf.mxu1 }
 0x1d1   :  { %v6532_v49 = vadd.f32 %v4085_v53, %v4027_v1  ;;  %v4029_v30 = vpop.f32.mrf.mxu0  ;;  %v3616_v1 = vcombine.low %v3568_v4, %v3568_v4  ;;  %v4872_v53 = vld [vmem:[%s6849_s0 + $0x5ac] ss:$0 sps:$4 sm:$0xff]  }
 0x1d2   :  { %v4030_v39 = vadd.f32 %v4029_v30, %v4028_v22  ;;  %v4087_v10 = vpop.f32.mrf.mxu1 }
 0x1d3   :  { %v4088_v26 = vadd.f32 %v4087_v10, %v4086_v13  ;;  %v4031_v29 = vpop.f32.mrf.mxu0  ;;  %3024 = vmatmul.mubr.bf16.gmra.mxu0 %v4866_v60 }
 0x1d4   :  { %v4089_v32 = vpop.f32.mrf.mxu1  ;;  %4540 = vmatmul.mubr.msk.bf16.gmra.mxu1 %vm740_vm3, %v4869_v15  ;;  %3031 = vmatprep.mubr.bf16.mxu0 %v3617_v16 }
 0x1d5   :  { %v6535_v44 = vadd.f32 %v4088_v26, %v4030_v39  ;;  %v4032_v0 = vpop.f32.mrf.mxu0  ;;  %4543 = vmatprep.mubr.msk.bf16.mxu1 %vm4929_vm2, %v6882_v62 }
 0x1d6   :  { %v4033_v28 = vadd.f32 %v4032_v0, %v4031_v29  ;;  %v4090_v40 = vpop.f32.mrf.mxu1 }
 0x1d7   :  { %v4091_v37 = vadd.f32 %v4090_v40, %v4089_v32  ;;  %v4034_v31 = vpop.f32.mrf.mxu0 }
 0x1d8   :  { %v4092_v56 = vpop.f32.mrf.mxu1 }
 0x1d9   :  { %v6542_v22 = vadd.f32 %v4091_v37, %v4033_v28  ;;  %v4035_v60 = vpop.f32.mrf.mxu0 }
 0x1da   :  { %v4036_v13 = vadd.f32 %v4035_v60, %v4034_v31  ;;  %v4093_v15 = vpop.f32.mrf.mxu1 }
 0x1db   :  { %v4094_v16 = vadd.f32 %v4093_v15, %v4092_v56  ;;  %v4037_v30 = vpop.f32.mrf.mxu0  ;;  %3032 = vmatmul.mubr.bf16.gmra.mxu0 %v3616_v1 }
 0x1dc   :  { %v4095_v39 = vpop.f32.mrf.mxu1  ;;  %4544 = vmatmul.mubr.msk.bf16.gmra.mxu1 %vm740_vm3, %v4872_v53 }
 0x1dd   :  { %v6545_v62 = vadd.f32 %v4094_v16, %v4036_v13  ;;  %v4038_v10 = vpop.f32.mrf.mxu0 }
 0x1de   :  { %v4039_v4 = vadd.f32 %v4038_v10, %v4037_v30  ;;  %v4096_v26 = vpop.f32.mrf.mxu1 }
 0x1df   :  { %v4097_v29 = vadd.f32 %v4096_v26, %v4095_v39  ;;  %v4040_v32 = vpop.f32.mrf.mxu0 }
 0x1e0   :  { %v4098_v0 = vpop.f32.mrf.mxu1 }
 0x1e1   :  { %v6547_v40 = vadd.f32 %v4097_v29, %v4039_v4  ;;  %v4041_v28 = vpop.f32.mrf.mxu0 }
 0x1e2   :  { %v4042_v37 = vadd.f32 %v4041_v28, %v4040_v32  ;;  %v4099_v31 = vpop.f32.mrf.mxu1 }
 0x1e3   :  { %v4100_v60 = vadd.f32 %v4099_v31, %v4098_v0  ;;  %v4043_v56 = vpop.f32.mrf.mxu0 }
 0x1e4   :  { %v4101_v15 = vpop.f32.mrf.mxu1 }
 0x1e5   :  { %v6549_v1 = vadd.f32 %v4100_v60, %v4042_v37  ;;  %v4044_v46 = vpop.f32.mrf.mxu0 }
 0x1e6   :  { %v4045_v53 = vadd.f32 %v4044_v46, %v4043_v56  ;;  %v4102_v13 = vpop.f32.mrf.mxu1 }
 0x1e7   :  { %v4103_v16 = vadd.f32 %v4102_v13, %v4101_v15  ;;  %v4046_v36 = vpop.f32.mrf.mxu0 }
 0x1e8   :  { %v4104_v30 = vpop.f32.mrf.mxu1 }
 0x1e9   :  { %v6551_v10 = vadd.f32 %v4103_v16, %v4045_v53  ;;  %v4047_v39 = vpop.f32.mrf.mxu0 }
 0x1ea   :  { %v4048_v26 = vadd.f32 %v4047_v39, %v4046_v36  ;;  %v4105_v4 = vpop.f32.mrf.mxu1 }
 0x1eb   :  { %v4106_v29 = vadd.f32 %v4105_v4, %v4104_v30  ;;  %v4049_v38 = vpop.f32.mrf.mxu0 }
 0x1ec   :  { %v4107_v32 = vpop.f32.mrf.mxu1 }
 0x1ed   :  { %v6553_v28 = vadd.f32 %v4106_v29, %v4048_v26  ;;  %v4050_v0 = vpop.f32.mrf.mxu0 }
 0x1ee   :  { %v4051_v31 = vadd.f32 %v4050_v0, %v4049_v38  ;;  %v4108_v37 = vpop.f32.mrf.mxu1 }
 0x1ef   :  { %v4109_v60 = vadd.f32 %v4108_v37, %v4107_v32  ;;  %v4052_v34 = vpop.f32.mrf.mxu0 }
 0x1f0   :  { %v4110_v46 = vpop.f32.mrf.mxu1 }
 0x1f1   :  { %v6555_v56 = vadd.f32 %v4109_v60, %v4051_v31  ;;  %v4053_v15 = vpop.f32.mrf.mxu0 }
 0x1f2   :  { %v4054_v13 = vadd.f32 %v4053_v15, %v4052_v34  ;;  %v4111_v53 = vpop.f32.mrf.mxu1 }
 0x1f3   :  { %v4112_v16 = vadd.f32 %v4111_v53, %v4110_v46  ;;  %v4055_v27 = vpop.f32.mrf.mxu0 }
 0x1f4   :  { %v4113_v36 = vpop.f32.mrf.mxu1 }
 0x1f5   :  { %v6557_v39 = vadd.f32 %v4112_v16, %v4054_v13  ;;  %v4056_v30 = vpop.f32.mrf.mxu0 }
 0x1f6   :  { %v4057_v4 = vadd.f32 %v4056_v30, %v4055_v27  ;;  %v4114_v26 = vpop.f32.mrf.mxu1 }
 0x1f7   :  { %v4115_v29 = vadd.f32 %v4114_v26, %v4113_v36  ;;  %v4058_v63 = vpop.f32.mrf.mxu0 }
 0x1f8   :  { %v4116_v38 = vpop.f32.mrf.mxu1 }
 0x1f9   :  { %v6559_v0 = vadd.f32 %v4115_v29, %v4057_v4  ;;  %v4059_v32 = vpop.f32.mrf.mxu0 }
 0x1fa   :  { %v4117_v37 = vpop.f32.mrf.mxu1 }
 0x1fb   :  { %v4135_v31 = vpop.f32.mrf.mxu0 }
 0x1fc   :  { %v2400_v60 = vpop.f32.mrf.mxu1 }
 0x1fd   :  { %v4136_v24 = vpop.f32.mrf.mxu0 }
 0x1fe   :  { %v4137_v34 = vadd.f32 %v4136_v24, %v4135_v31  ;;  %v4479_v15 = vpop.f32.mrf.mxu1 }
 0x1ff   :  { %v4138_v46 = vpop.f32.mrf.mxu0 }
 0x200   :  { %v2313_v53 = vadd.f32 %v4137_v34, %v6516_v9  ;;  %v2403_v13 = vpop.f32.mrf.mxu1 }
 0x201   :  { %v4139_v16 = vpop.f32.mrf.mxu0 }
 0x202   :  { %v2401_v14 = vadd.f32 %v2400_v60, %v2313_v53  ;;  %v4140_v27 = vadd.f32 %v4139_v16, %v4138_v46  ;;  %v4480_v30 = vpop.f32.mrf.mxu1 }
 0x203   :  { %v4141_v36 = vpop.f32.mrf.mxu0 }
 0x204   :  { %v6565_v63 = vmax.f32 %v1781_v2, %v2401_v14  ;;  %v2316_v4 = vadd.f32 %v4140_v27, %v6519_v3  ;;  %v2408_v26 = vpop.f32.mrf.mxu1 }
 0x205   :  { %v4142_v29 = vpop.f32.mrf.mxu0 }
 0x206   :  { %v2404_v24 = vadd.f32 %v2403_v13, %v2316_v4  ;;  %v4143_v38 = vadd.f32 %v4142_v29, %v4141_v36  ;;  %v4483_v32 = vpop.f32.mrf.mxu1 }
 0x207   :  { %v4144_v37 = vpop.f32.mrf.mxu0 }
 0x208   :  { %v6571_v9 = vmax.f32 %v1782_v12, %v2404_v24  ;;  %v2321_v31 = vadd.f32 %v4143_v38, %v6532_v49  ;;  %v2411_v60 = vpop.f32.mrf.mxu1 }
 0x209   :  { %v4145_v34 = vpop.f32.mrf.mxu0 }
 0x20a   :  { %v2409_v51 = vadd.f32 %v2408_v26, %v2321_v31  ;;  %v4146_v41 = vadd.f32 %v4145_v34, %v4144_v37  ;;  %v4484_v2 = vpop.f32.mrf.mxu1 }
 0x20b   :  { %v4147_v14 = vpop.f32.mrf.mxu0 }
 0x20c   :  { %v6577_v3 = vmax.f32 %v1783_v23, %v2409_v51  ;;  %v2324_v15 = vadd.f32 %v4146_v41, %v6535_v44  ;;  %v2416_v46 = vpop.f32.mrf.mxu1 }
 0x20d   :  { %v4148_v53 = vpop.f32.mrf.mxu0 }
 0x20e   :  { %v2412_v5 = vadd.f32 %v2411_v60, %v2324_v15  ;;  %v4149_v43 = vadd.f32 %v4148_v53, %v4147_v14  ;;  %v4487_v12 = vpop.f32.mrf.mxu1 }
 0x20f   :  { %v4150_v13 = vpop.f32.mrf.mxu0 }
 0x210   :  { %v6583_v49 = vmax.f32 %v1784_v54, %v2412_v5  ;;  %v2329_v16 = vadd.f32 %v4149_v43, %v6542_v22  ;;  %v2419_v27 = vpop.f32.mrf.mxu1  ;;  %v6933_v22 = vmax.f32 %v6126_v35, %v6420_v20 }
 0x211   :  { %v4151_v30 = vpop.f32.mrf.mxu0 }
 0x212   :  { %v2417_v21 = vadd.f32 %v2416_v46, %v2329_v16  ;;  %v4152_v19 = vadd.f32 %v4151_v30, %v4150_v13  ;;  %v4488_v23 = vpop.f32.mrf.mxu1 }
 0x213   :  { %v4153_v36 = vpop.f32.mrf.mxu0 }
 0x214   :  { %v6589_v44 = vmax.f32 %v1785_v52, %v2417_v21  ;;  %v2332_v4 = vadd.f32 %v4152_v19, %v6545_v62  ;;  %v2424_v26 = vpop.f32.mrf.mxu1  ;;  %v6934_v62 = vmax.f32 %v6138_v33, %v6434_v58 }
 0x215   :  { %v4154_v29 = vpop.f32.mrf.mxu0 }
 0x216   :  { %v2420_v47 = vadd.f32 %v2419_v27, %v2332_v4  ;;  %v4155_v48 = vadd.f32 %v4154_v29, %v4153_v36  ;;  %v4491_v54 = vpop.f32.mrf.mxu1 }
 0x217   :  { %v4156_v24 = vpop.f32.mrf.mxu0 }
 0x218   :  { %v6595_v38 = vmax.f32 %v6933_v22, %v2420_v47  ;;  %v2337_v32 = vadd.f32 %v4155_v48, %v6547_v40  ;;  %v2427_v37 = vpop.f32.mrf.mxu1  ;;  %v6935_v40 = vmax.f32 %v6145_v50, %v6442_v7 }
 0x219   :  { %v4157_v31 = vpop.f32.mrf.mxu0 }
 0x21a   :  { %v2425_v61 = vadd.f32 %v2424_v26, %v2337_v32  ;;  %v4158_v57 = vadd.f32 %v4157_v31, %v4156_v24  ;;  %v4492_v52 = vpop.f32.mrf.mxu1 }
 0x21b   :  { %v4159_v60 = vpop.f32.mrf.mxu0 }
 0x21c   :  { %v6601_v34 = vmax.f32 %v6934_v62, %v2425_v61  ;;  %v2340_v51 = vadd.f32 %v4158_v57, %v6549_v1  ;;  %v2432_v41 = vpop.f32.mrf.mxu1  ;;  %v6937_v1 = vmax.f32 %v6162_v18, %v6456_v55 }
 0x21d   :  { %v4160_v2 = vpop.f32.mrf.mxu0 }
 0x21e   :  { %v2428_v35 = vadd.f32 %v2427_v37, %v2340_v51  ;;  %v4161_v20 = vadd.f32 %v4160_v2, %v4159_v60  ;;  %v4495_v14 = vpop.f32.mrf.mxu1 }
 0x21f   :  { %v4162_v15 = vpop.f32.mrf.mxu0 }
 0x220   :  { %v6607_v46 = vmax.f32 %v6935_v40, %v2428_v35  ;;  %v2345_v53 = vadd.f32 %v4161_v20, %v6551_v10  ;;  %v2435_v5 = vpop.f32.mrf.mxu1  ;;  %v6939_v10 = vmax.f32 %v6171_v59, %v6464_v25 }
 0x221   :  { %v4163_v43 = vpop.f32.mrf.mxu0 }
 0x222   :  { %6936 = vst [vmem:[#allocation3_spill] sm:$0xff] %v6607_v46  ;;  %v2433_v33 = vadd.f32 %v2432_v41, %v2345_v53  ;;  %v4164_v58 = vadd.f32 %v4163_v43, %v4162_v15  ;;  %v4496_v12 = vpop.f32.mrf.mxu1 }
 0x223   :  { %v4165_v13 = vpop.f32.mrf.mxu0 }
 0x224   :  { %v6613_v16 = vmax.f32 %v6937_v1, %v2433_v33  ;;  %v2348_v27 = vadd.f32 %v4164_v58, %v6553_v28  ;;  %v2440_v30 = vpop.f32.mrf.mxu1  ;;  %v6941_v28 = vmax.f32 %v6187_v6, %v6478_v42 }
 0x225   :  { %v4166_v21 = vpop.f32.mrf.mxu0 }
 0x226   :  { %6938 = vst [vmem:[#allocation4_spill] sm:$0xff] %v6613_v16  ;;  %v2436_v50 = vadd.f32 %v2435_v5, %v2348_v27  ;;  %v4167_v7 = vadd.f32 %v4166_v21, %v4165_v13  ;;  %v4499_v19 = vpop.f32.mrf.mxu1 }
 0x227   :  { %v4168_v23 = vpop.f32.mrf.mxu0 }
 0x228   :  { %v6619_v36 = vmax.f32 %v6939_v10, %v2436_v50  ;;  %v2353_v4 = vadd.f32 %v4167_v7, %v6555_v56  ;;  %v2443_v26 = vpop.f32.mrf.mxu1  ;;  %v6943_v56 = vmax.f32 %v6197_v11, %v6486_v45 }
 0x229   :  { %v4169_v29 = vpop.f32.mrf.mxu0 }
 0x22a   :  { %6940 = vst [vmem:[#allocation5_spill] sm:$0xff] %v6619_v36  ;;  %v2441_v18 = vadd.f32 %v2440_v30, %v2353_v4  ;;  %v4170_v55 = vadd.f32 %v4169_v29, %v4168_v23  ;;  %v4500_v47 = vpop.f32.mrf.mxu1 }
 0x22b   :  { %v4171_v48 = vpop.f32.mrf.mxu0 }
 0x22c   :  { %v6625_v54 = vmax.f32 %v6941_v28, %v2441_v18  ;;  %v2356_v24 = vadd.f32 %v4170_v55, %v6557_v39  ;;  %v2448_v22 = vpop.f32.mrf.mxu1  ;;  %v6945_v39 = vmax.f32 %v6213_v17, %v6500_v8 }
 0x22d   :  { %v4172_v32 = vpop.f32.mrf.mxu0 }
 0x22e   :  { %6942 = vst [vmem:[#allocation2_spill] sm:$0xff] %v6625_v54  ;;  %v2444_v59 = vadd.f32 %v2443_v26, %v2356_v24  ;;  %v4173_v25 = vadd.f32 %v4172_v32, %v4171_v48  ;;  %v4503_v37 = vpop.f32.mrf.mxu1 }
 0x22f   :  { %v4174_v31 = vpop.f32.mrf.mxu0 }
 0x230   :  { %v6631_v61 = vmax.f32 %v6943_v56, %v2444_v59  ;;  %v2361_v57 = vadd.f32 %v4173_v25, %v6559_v0  ;;  %v2451_v52 = vpop.f32.mrf.mxu1 }
 0x231   :  { %v4175_v60 = vpop.f32.mrf.mxu0 }
 0x232   :  { %6944 = vst [vmem:[#allocation6_spill] sm:$0xff] %v6631_v61  ;;  %v2449_v6 = vadd.f32 %v2448_v22, %v2361_v57  ;;  %v4504_v42 = vpop.f32.mrf.mxu1 }
 0x233   :  { %v4207_v62 = vpop.f32.mrf.mxu0 }
 0x234   :  { %v6637_v51 = vmax.f32 %v6945_v39, %v2449_v6  ;;  %v4265_v41 = vpop.f32.mrf.mxu1 }
 0x235   :  { %v4208_v2 = vpop.f32.mrf.mxu0 }
 0x236   :  { %6946 = vst [vmem:[#allocation7_spill] sm:$0xff] %v6637_v51  ;;  %v4266_v35 = vpop.f32.mrf.mxu1  ;;  %v4209_v16 = vadd.f32 %v4208_v2, %v4207_v62  ;;  %v6728_v2 = vld [vmem:[%s6850_s2] ss:$0 sm:$0xff] }
 0x237   :  { %v4210_v20 = vpop.f32.mrf.mxu0 }
 0x238   :  { %v4268_v14 = vpop.f32.mrf.mxu1 }
 0x239   :  { %v4211_v11 = vpop.f32.mrf.mxu0 }
 0x23a   :  { %v4269_v45 = vpop.f32.mrf.mxu1 }
 0x23b   :  { %v6639_v15 = vpop.f32.mrf.mxu0 }
 0x23c   :  { %v6641_v0 = vpop.f32.mrf.mxu1 }
 0x23d   :  { %v4214_v40 = vpop.f32.mrf.mxu0 }
 0x23e   :  { %v4272_v53 = vpop.f32.mrf.mxu1 }
 0x23f   :  { %v6643_v5 = vpop.f32.mrf.mxu0 }
 0x240   :  { %v6645_v43 = vpop.f32.mrf.mxu1 }
 0x241   :  { %v6647_v17 = vpop.f32.mrf.mxu0 }
 0x242   :  { %v6649_v8 = vpop.f32.mrf.mxu1 }
 0x243   :  { %v6651_v33 = vpop.f32.mrf.mxu0 }
 0x244   :  { %v6653_v58 = vpop.f32.mrf.mxu1 }
 0x245   :  { %v6655_v12 = vpop.f32.mrf.mxu0 }
 0x246   :  { %v6657_v13 = vpop.f32.mrf.mxu1 }
 0x247   :  { %v6659_v1 = vpop.f32.mrf.mxu0 }
 0x248   :  { %v6661_v27 = vpop.f32.mrf.mxu1 }
 0x249   :  { %v6663_v30 = vpop.f32.mrf.mxu0 }
 0x24a   :  { %v6665_v21 = vpop.f32.mrf.mxu1 }
 0x24b   :  { %v6667_v50 = vpop.f32.mrf.mxu0 }
 0x24c   :  { %v6669_v7 = vpop.f32.mrf.mxu1 }
 0x24d   :  { %v6671_v19 = vpop.f32.mrf.mxu0 }
 0x24e   :  { %v6673_v23 = vpop.f32.mrf.mxu1 }
 0x24f   :  { %v6675_v10 = vpop.f32.mrf.mxu0 }
 0x250   :  { %v6677_v4 = vpop.f32.mrf.mxu1 }
 0x251   :  { %v6679_v26 = vpop.f32.mrf.mxu0 }
 0x252   :  { %v6681_v29 = vpop.f32.mrf.mxu1 }
 0x253   :  { %v6683_v18 = vpop.f32.mrf.mxu0 }
 0x254   :  { %v6685_v55 = vpop.f32.mrf.mxu1 }
 0x255   :  { %v6687_v47 = vpop.f32.mrf.mxu0 }
 0x256   :  { %v6689_v48 = vpop.f32.mrf.mxu1 }
 0x257   :  { %v6691_v28 = vpop.f32.mrf.mxu0 }
 0x258   :  { %v6693_v24 = vpop.f32.mrf.mxu1 }
 0x259   :  { %6947 = vst [vmem:[#allocation8_spill] sm:$0xff] %v6693_v24  ;;  %v6695_v22 = vpop.f32.mrf.mxu0 }
 0x25a   :  { %6948 = vst [vmem:[#allocation9_spill] sm:$0xff] %v6695_v22  ;;  %v6697_v32 = vpop.f32.mrf.mxu1 }
 0x25b   :  { %6949 = vst [vmem:[#allocation10_spill] sm:$0xff] %v6697_v32  ;;  %v6699_v59 = vpop.f32.mrf.mxu0 }
 0x25c   :  { %6950 = vst [vmem:[#allocation11_spill] sm:$0xff] %v6699_v59  ;;  %v6701_v25 = vpop.f32.mrf.mxu1 }
 0x25d   :  { %6951 = vst [vmem:[#allocation12_spill] sm:$0xff] %v6701_v25  ;;  %v6703_v37 = vpop.f32.mrf.mxu0 }
 0x25e   :  { %6952 = vst [vmem:[#allocation13_spill] sm:$0xff] %v6703_v37  ;;  %v6705_v31 = vpop.f32.mrf.mxu1  ;;  %v4212_v37 = vadd.f32 %v4211_v11, %v4210_v20  ;;  %v4276_v11 = vadd.f32 %v6649_v8, %v6645_v43  ;;  %v4279_v43 = vadd.f32 %v6657_v13, %v6653_v58  ;;  %v4282_v58 = vadd.f32 %v6665_v21, %v6661_v27 }
 0x25f   :  { %6953 = vst [vmem:[#allocation14_spill] sm:$0xff] %v6705_v31  ;;  %v6707_v56 = vpop.f32.mrf.mxu0  ;;  %v4267_v31 = vadd.f32 %v4266_v35, %v4265_v41  ;;  %v4227_v27 = vadd.f32 %v6671_v19, %v6667_v50  ;;  %v4230_v19 = vadd.f32 %v6679_v26, %v6675_v10 }
 0x260   :  { %6954 = vst [vmem:[#allocation15_spill] sm:$0xff] %v6707_v56  ;;  %v6709_v57 = vpop.f32.mrf.mxu1 }
 0x261   :  { %6955 = vst [vmem:[#allocation16_spill] sm:$0xff] %v6709_v57  ;;  %v6711_v52 = vpop.f32.mrf.mxu0 }
 0x262   :  { %6956 = vst [vmem:[#allocation17_spill] sm:$0xff] %v6711_v52  ;;  %v6713_v60 = vpop.f32.mrf.mxu1  ;;  %v4270_v52 = vadd.f32 %v4269_v45, %v4268_v14  ;;  %v4218_v14 = vadd.f32 %v6647_v17, %v6643_v5  ;;  %v4221_v5 = vadd.f32 %v6655_v12, %v6651_v33  ;;  %v4224_v12 = vadd.f32 %v6663_v30, %v6659_v1 }
 0x263   :  { %6957 = vst [vmem:[#allocation18_spill] sm:$0xff] %v6713_v60  ;;  %v6715_v6 = vpop.f32.mrf.mxu0  ;;  %v2898_v60 = vadd.f32 %v4267_v31, %v4209_v16 }
 0x264   :  { %6958 = vst [vmem:[#allocation19_spill] sm:$0xff] %v6715_v6  ;;  %v6717_v42 = vpop.f32.mrf.mxu1  ;;  %v2909_v31 = vadd.f32 %v4276_v11, %v4218_v14 }
 0x265   :  { %6959 = vst [vmem:[#allocation20_spill] sm:$0xff] %v6717_v42  ;;  %v6719_v39 = vpop.f32.mrf.mxu0 }
 0x266   :  { %6960 = vst [vmem:[#allocation21_spill] sm:$0xff] %v6719_v39  ;;  %v6721_v51 = vpop.f32.mrf.mxu1  ;;  %v2901_v39 = vadd.f32 %v4270_v52, %v4212_v37 }
 0x267   :  { %v4246_v61 = vpop.f32.mrf.mxu0 }
 0x268   :  { %v4304_v54 = vpop.f32.mrf.mxu1  ;;  %v4215_v61 = vadd.f32 %v4214_v40, %v6639_v15 }
 0x269   :  { %v4247_v36 = vpop.f32.mrf.mxu0 }
 0x26a   :  { %v4305_v56 = vpop.f32.mrf.mxu1  ;;  %v4273_v36 = vadd.f32 %v4272_v53, %v6641_v0 }
 0x26b   :  { %v4323_v25 = vpop.f32.mrf.mxu0 }
 0x26c   :  { %v3073_v57 = vpop.f32.mrf.mxu1  ;;  %v2906_v15 = vadd.f32 %v4273_v36, %v4215_v61 }
 0x26d   :  { %v4324_v59 = vpop.f32.mrf.mxu0 }
 0x26e   :  { %v4325_v46 = vadd.f32 %v4324_v59, %v4323_v25  ;;  %v4521_v6 = vpop.f32.mrf.mxu1 }
 0x26f   :  { %v4326_v32 = vpop.f32.mrf.mxu0 }
 0x270   :  { %v2986_v42 = vadd.f32 %v4325_v46, %v2898_v60  ;;  %v3076_v24 = vpop.f32.mrf.mxu1 }
 0x271   :  { %v4327_v22 = vpop.f32.mrf.mxu0 }
 0x272   :  { %v3074_v54 = vadd.f32 %v3073_v57, %v2986_v42  ;;  %v4328_v62 = vadd.f32 %v4327_v22, %v4326_v32  ;;  %v4522_v41 = vpop.f32.mrf.mxu1  ;;  %v2914_v42 = vadd.f32 %v4279_v43, %v4221_v5 }
 0x273   :  { %v4329_v16 = vpop.f32.mrf.mxu0 }
 0x274   :  { %v3127_v35 = vmax.f32 %v6565_v63, %v3074_v54  ;;  %v2989_v20 = vadd.f32 %v4328_v62, %v2901_v39  ;;  %v3081_v46 = vpop.f32.mrf.mxu1 }
 0x275   :  { %v4330_v45 = vpop.f32.mrf.mxu0 }
 0x276   :  { %v3147_v0 = vadd.f32 %v6728_v2, %v3127_v35  ;;  %v3077_v40 = vadd.f32 %v3076_v24, %v2989_v20  ;;  %v4331_v53 = vadd.f32 %v4330_v45, %v4329_v16  ;;  %v4525_v22 = vpop.f32.mrf.mxu1  ;;  %v2917_v16 = vadd.f32 %v4282_v58, %v4224_v12 }
 0x277   :  { %v4332_v32 = vpop.f32.mrf.mxu0  ;;  %v4285_v35 = vadd.f32 %v6673_v23, %v6669_v7  ;;  %v4288_v7 = vadd.f32 %v6681_v29, %v6677_v4  ;;  %v4233_v4 = vadd.f32 %v6687_v47, %v6683_v18  ;;  %v6961_v47 = vld [vmem:[#allocation9_spill] sm:$0xff] }
 0x278   :  { %v3160_v59 = vmax.f32 %v3147_v0, 0.0  ;;  %v3128_v63 = vmax.f32 %v6571_v9, %v3077_v40  ;;  %v2994_v25 = vadd.f32 %v4331_v53, %v2906_v15  ;;  %v3084_v37 = vpop.f32.mrf.mxu1 }
 0x279   :  { %v4333_v17 = vpop.f32.mrf.mxu0  ;;  %v2922_v40 = vadd.f32 %v4285_v35, %v4227_v27 }
 0x27a   :  { %3174 = vst.msk [vmem:[%s6851_s3] sm:$0xff] %vm3173_vm4, %v3160_v59  ;;  %v3148_v8 = vadd.f32 %v6728_v2, %v3128_v63  ;;  %v3082_v24 = vadd.f32 %v3081_v46, %v2994_v25  ;;  %v4334_v56 = vadd.f32 %v4333_v17, %v4332_v32  ;;  %v4526_v9 = vpop.f32.mrf.mxu1 }
 0x27b   :  { %v4335_v57 = vpop.f32.mrf.mxu0 }
 0x27c   :  { %v3161_v52 = vmax.f32 %v3148_v8, 0.0  ;;  %v3129_v60 = vmax.f32 %v6577_v3, %v3082_v24  ;;  %v2997_v6 = vadd.f32 %v4334_v56, %v2909_v31  ;;  %v3089_v33 = vpop.f32.mrf.mxu1  ;;  %v4291_v31 = vadd.f32 %v6689_v48, %v6685_v55  ;;  %v6962_v55 = vld [vmem:[#allocation8_spill] sm:$0xff]  ;;  %v6963_v48 = vld [vmem:[#allocation10_spill] sm:$0xff] }
 0x27d   :  { %v4336_v13 = vpop.f32.mrf.mxu0 }
 0x27e   :  { %3175 = vst.msk [vmem:[%s6851_s3 + $0x8] sm:$0xff] %vm3173_vm4, %v3161_v52  ;;  %v3149_v39 = vadd.f32 %v6728_v2, %v3129_v60  ;;  %v3085_v61 = vadd.f32 %v3084_v37, %v2997_v6  ;;  %v4337_v36 = vadd.f32 %v4336_v13, %v4335_v57  ;;  %v4529_v3 = vpop.f32.mrf.mxu1  ;;  %v2925_v37 = vadd.f32 %v4288_v7, %v4230_v19  ;;  %v6971_v19 = vld [vmem:[#allocation17_spill] sm:$0xff] }
 0x27f   :  { %v4338_v54 = vpop.f32.mrf.mxu0  ;;  %v4236_v57 = vadd.f32 %v6961_v47, %v6691_v28  ;;  %v4294_v52 = vadd.f32 %v6963_v48, %v6962_v55  ;;  %v2930_v6 = vadd.f32 %v4291_v31, %v4233_v4 }
 0x280   :  { %v3162_v62 = vmax.f32 %v3149_v39, 0.0  ;;  %v3130_v41 = vmax.f32 %v6583_v49, %v3085_v61  ;;  %v3002_v1 = vadd.f32 %v4337_v36, %v2914_v42  ;;  %v3092_v30 = vpop.f32.mrf.mxu1  ;;  %v6964_v39 = vld [vmem:[#allocation3_spill] sm:$0xff] }
 0x281   :  { %v4339_v21 = vpop.f32.mrf.mxu0  ;;  %v2933_v3 = vadd.f32 %v4294_v52, %v4236_v57  ;;  %v6978_v52 = vld [vmem:[#allocation2_spill] sm:$0xff] }
 0x282   :  { %3176 = vst.msk [vmem:[%s6851_s3 + $0x10] sm:$0xff] %vm3173_vm4, %v3162_v62  ;;  %v3150_v20 = vadd.f32 %v6728_v2, %v3130_v41  ;;  %v3090_v46 = vadd.f32 %v3089_v33, %v3002_v1  ;;  %v4340_v14 = vadd.f32 %v4339_v21, %v4338_v54  ;;  %v4530_v49 = vpop.f32.mrf.mxu1  ;;  %v6965_v54 = vld [vmem:[#allocation11_spill] sm:$0xff]  ;;  %v6966_v62 = vld [vmem:[#allocation13_spill] sm:$0xff] }
 0x283   :  { %v4341_v11 = vpop.f32.mrf.mxu0  ;;  %v4239_v41 = vadd.f32 %v6966_v62, %v6965_v54 }
 0x284   :  { %v3163_v45 = vmax.f32 %v3150_v20, 0.0  ;;  %v3131_v15 = vmax.f32 %v6589_v44, %v3090_v46  ;;  %v3005_v0 = vadd.f32 %v4340_v14, %v2917_v16  ;;  %v3097_v50 = vpop.f32.mrf.mxu1  ;;  %v6968_v16 = vld [vmem:[#allocation14_spill] sm:$0xff] }
 0x285   :  { %v4342_v23 = vpop.f32.mrf.mxu0 }
 0x286   :  { %3177 = vst.msk [vmem:[%s6851_s3 + $0x18] sm:$0xff] %vm3173_vm4, %v3163_v45  ;;  %v3151_v53 = vadd.f32 %v6728_v2, %v3131_v15  ;;  %v3093_v22 = vadd.f32 %v3092_v30, %v3005_v0  ;;  %v4343_v32 = vadd.f32 %v4342_v23, %v4341_v11  ;;  %v4533_v44 = vpop.f32.mrf.mxu1  ;;  %v6967_v30 = vld [vmem:[#allocation12_spill] sm:$0xff] }
 0x287   :  { %v4344_v59 = vpop.f32.mrf.mxu0  ;;  %v4297_v27 = vadd.f32 %v6968_v16, %v6967_v30  ;;  %v6969_v11 = vld [vmem:[#allocation4_spill] sm:$0xff] }
 0x288   :  { %v3164_v63 = vmax.f32 %v3151_v53, 0.0  ;;  %v3132_v25 = vmax.f32 %v6595_v38, %v3093_v22  ;;  %v3010_v10 = vadd.f32 %v4343_v32, %v2922_v40  ;;  %v3100_v26 = vpop.f32.mrf.mxu1  ;;  %v6972_v23 = vld [vmem:[#allocation16_spill] sm:$0xff]  ;;  %v6973_v40 = vld [vmem:[#allocation18_spill] sm:$0xff] }
 0x289   :  { %v4345_v29 = vpop.f32.mrf.mxu0  ;;  %v4300_v53 = vadd.f32 %v6973_v40, %v6972_v23  ;;  %v2938_v32 = vadd.f32 %v4297_v27, %v4239_v41  ;;  %v6980_v27 = vld [vmem:[#allocation7_spill] sm:$0xff] }
 0x28a   :  { %3178 = vst.msk [vmem:[%s6851_s3 + $0x20] sm:$0xff] %vm3173_vm4, %v3164_v63  ;;  %v3152_v5 = vadd.f32 %v6728_v2, %v3132_v25  ;;  %v3098_v17 = vadd.f32 %v3097_v50, %v3010_v10  ;;  %v4346_v43 = vadd.f32 %v4345_v29, %v4344_v59  ;;  %v4534_v38 = vpop.f32.mrf.mxu1  ;;  %v6970_v50 = vld [vmem:[#allocation15_spill] sm:$0xff] }
 0x28b   :  { %v4347_v8 = vpop.f32.mrf.mxu0  ;;  %v4242_v7 = vadd.f32 %v6971_v19, %v6970_v50 }
 0x28c   :  { %v3165_v24 = vmax.f32 %v3152_v5, 0.0  ;;  %v3133_v56 = vmax.f32 %v6601_v34, %v3098_v17  ;;  %v3013_v9 = vadd.f32 %v4346_v43, %v2925_v37  ;;  %v3105_v18 = vpop.f32.mrf.mxu1  ;;  %v6974_v37 = vld [vmem:[#allocation5_spill] sm:$0xff]  ;;  %v6975_v17 = vld [vmem:[#allocation19_spill] sm:$0xff] }
 0x28d   :  { %v4348_v60 = vpop.f32.mrf.mxu0  ;;  %v2941_v5 = vadd.f32 %v4300_v53, %v4242_v7  ;;  %v6976_v43 = vld [vmem:[#allocation21_spill] sm:$0xff] }
 0x28e   :  { %3179 = vst.msk [vmem:[%s6851_s3 + $0x28] sm:$0xff] %vm3173_vm4, %v3165_v24  ;;  %v3153_v33 = vadd.f32 %v6728_v2, %v3133_v56  ;;  %v3101_v12 = vadd.f32 %v3100_v26, %v3013_v9  ;;  %v4349_v58 = vadd.f32 %v4348_v60, %v4347_v8  ;;  %v4537_v34 = vpop.f32.mrf.mxu1  ;;  %v4245_v38 = vadd.f32 %v6976_v43, %v6975_v17  ;;  %v6977_v24 = vld [vmem:[#allocation20_spill] sm:$0xff] }
 0x28f   :  { %v4350_v13 = vpop.f32.mrf.mxu0  ;;  %v4303_v56 = vadd.f32 %v6721_v51, %v6977_v24 }
 0x290   :  { %v3166_v42 = vmax.f32 %v3153_v33, 0.0  ;;  %v3134_v61 = vmax.f32 %v6964_v39, %v3101_v12  ;;  %v3018_v28 = vadd.f32 %v4349_v58, %v2930_v6  ;;  %v3108_v36 = vpop.f32.mrf.mxu1 }
 0x291   :  { %v4351_v1 = vpop.f32.mrf.mxu0  ;;  %v2946_v58 = vadd.f32 %v4303_v56, %v4245_v38 }
 0x292   :  { %3180 = vst.msk [vmem:[%s6851_s3 + $0x30] sm:$0xff] %vm3173_vm4, %v3166_v42  ;;  %v3154_v21 = vadd.f32 %v6728_v2, %v3134_v61  ;;  %v3106_v35 = vadd.f32 %v3105_v18, %v3018_v28  ;;  %v4352_v20 = vadd.f32 %v4351_v1, %v4350_v13  ;;  %v4538_v46 = vpop.f32.mrf.mxu1  ;;  %v6979_v28 = vld [vmem:[#allocation6_spill] sm:$0xff] }
 0x293   :  { %v4353_v14 = vpop.f32.mrf.mxu0 }
 0x294   :  { %v3167_v49 = vmax.f32 %v3154_v21, 0.0  ;;  %v3135_v45 = vmax.f32 %v6969_v11, %v3106_v35  ;;  %v3021_v15 = vadd.f32 %v4352_v20, %v2933_v3  ;;  %v3113_v0 = vpop.f32.mrf.mxu1 }
 0x295   :  { %v4354_v22 = vpop.f32.mrf.mxu0 }
 0x296   :  { %3181 = vst.msk [vmem:[%s6851_s3 + $0x38] sm:$0xff] %vm3173_vm4, %v3167_v49  ;;  %v3155_v44 = vadd.f32 %v6728_v2, %v3135_v45  ;;  %v3109_v59 = vadd.f32 %v3108_v36, %v3021_v15  ;;  %v4355_v63 = vadd.f32 %v4354_v22, %v4353_v14  ;;  %v4541_v25 = vpop.f32.mrf.mxu1 }
 0x297   :  { %v4356_v10 = vpop.f32.mrf.mxu0 }
 0x298   :  { %v3168_v26 = vmax.f32 %v3155_v44, 0.0  ;;  %v3136_v4 = vmax.f32 %v6974_v37, %v3109_v59  ;;  %v3026_v29 = vadd.f32 %v4355_v63, %v2938_v32  ;;  %v3116_v31 = vpop.f32.mrf.mxu1 }
 0x299   :  { %v4357_v8 = vpop.f32.mrf.mxu0 }
 0x29a   :  { %3182 = vst.msk [vmem:[%s6851_s3 + $0x40] sm:$0xff] %vm3173_vm4, %v3168_v26  ;;  %v3156_v9 = vadd.f32 %v6728_v2, %v3136_v4  ;;  %v3114_v18 = vadd.f32 %v3113_v0, %v3026_v29  ;;  %v4358_v47 = vadd.f32 %v4357_v8, %v4356_v10  ;;  %v4542_v57 = vpop.f32.mrf.mxu1 }
 0x29b   :  { %v4359_v55 = vpop.f32.mrf.mxu0 }
 0x29c   :  { %v3169_v48 = vmax.f32 %v3156_v9, 0.0  ;;  %v3137_v60 = vmax.f32 %v6978_v52, %v3114_v18  ;;  %v3029_v6 = vadd.f32 %v4358_v47, %v2941_v5  ;;  %v3121_v33 = vpop.f32.mrf.mxu1 }
 0x29d   :  { %v4360_v12 = vpop.f32.mrf.mxu0 }
 0x29e   :  { %3183 = vst.msk [vmem:[%s6851_s3 + $0x48] sm:$0xff] %vm3173_vm4, %v3169_v48  ;;  %v3157_v51 = vadd.f32 %v6728_v2, %v3137_v60  ;;  %v3117_v34 = vadd.f32 %v3116_v31, %v3029_v6  ;;  %v4361_v13 = vadd.f32 %v4360_v12, %v4359_v55  ;;  %v4545_v42 = vpop.f32.mrf.mxu1 }
 0x29f   :  { %v4362_v39 = vpop.f32.mrf.mxu0 }
 0x2a0   :  { %v3170_v61 = vmax.f32 %v3157_v51, 0.0  ;;  %v3138_v36 = vmax.f32 %v6979_v28, %v3117_v34  ;;  %v3034_v3 = vadd.f32 %v4361_v13, %v2946_v58  ;;  %v3124_v54 = vpop.f32.mrf.mxu1 }
 0x2a1   :  { %v4363_v62 = vpop.f32.mrf.mxu0 }
 0x2a2   :  { %3184 = vst.msk [vmem:[%s6851_s3 + $0x50] sm:$0xff] %vm3173_vm4, %v3170_v61  ;;  %v3158_v41 = vadd.f32 %v6728_v2, %v3138_v36  ;;  %v3122_v1 = vadd.f32 %v3121_v33, %v3034_v3  ;;  %v4546_v30 = vpop.f32.mrf.mxu1 }
 0x2a4   :  { %v3171_v16 = vmax.f32 %v3158_v41, 0.0  ;;  %v3139_v21 = vmax.f32 %v6980_v27, %v3122_v1 }
 0x2a6   :  { %3185 = vst.msk [vmem:[%s6851_s3 + $0x58] sm:$0xff] %vm3173_vm4, %v3171_v16  ;;  %v3159_v35 = vadd.f32 %v6728_v2, %v3139_v21 }
 0x2a8   :  { %v3172_v20 = vmax.f32 %v3159_v35, 0.0 }
 0x2aa   :  { %3186 = vst.msk [vmem:[%s6851_s3 + $0x60] sm:$0xff] %vm3173_vm4, %v3172_v20 }

// kernel: cnn_forward.5
= control target key start
LH: loop header
LB: loop body
LE: loop exit
PB: predicated region body
PF: predicated region fallthrough
CT: control target
= control target key end

     0   :  { %v1789_v27 = vmov 1983009808   ;;  %v170_v29 = vlaneseq  ;;  %vm205_vm0 = vcmask 261120   ;;  %vm1791_vm1 = vmmov 0   ;;  %s2779_s1 = inlined_call_operand.vmem [shape: f32[800,25], index: 1, kind: input, shape index: {}]   ;;  %s2780_s0 = inlined_call_operand.vmem [shape: f32[2,2,800], index: 0, kind: input, shape index: {}]   ;;  %s2781_s3 = inlined_call_operand.vmem [shape: f32[25,25], index: 3, kind: input, shape index: {}]   ;;  %s2782_s2 = inlined_call_operand.vmem [shape: f32[1,25], index: 2, kind: input, shape index: {}]   ;;  %s2783_s5 = inlined_call_operand.vmem [shape: f32[25,10], index: 5, kind: input, shape index: {}]   ;;  %s2784_s4 = inlined_call_operand.vmem [shape: f32[1,25], index: 4, kind: input, shape index: {}]   ;;  %s2785_s9 = inlined_call_operand.vmem [shape: f32[10,1], index: 9, kind: input, shape index: {}]   ;;  %s2786_s6 = inlined_call_operand.vmem [shape: f32[1,10], index: 6, kind: input, shape index: {}]   ;;  %s2787_s7 = inlined_call_operand.vmem [shape: f32[1,10], index: 7, kind: input, shape index: {}]   ;;  %s2788_s8 = inlined_call_operand.vmem [shape: f32[1,10], index: 8, kind: input, shape index: {}]   ;;  %s2789_s14 = inlined_call_operand.vmem [shape: f32[2,2,10], index: 14, kind: output, shape index: {0}]   ;;  %s2790_s10 = inlined_call_operand.vmem [shape: f32[10,1], index: 10, kind: input, shape index: {}]   ;;  %s2791_s11 = inlined_call_operand.<no memory space> [shape: f32[1,1], index: 11, kind: input, shape index: {}]   ;;  %s2792_s12 = inlined_call_operand.<no memory space> [shape: f32[1,1], index: 12, kind: input, shape index: {}]   ;;  %s2793_s13 = inlined_call_operand.<no memory space> [shape: f32[1,1], index: 13, kind: input, shape index: {}]   ;;  %s2794_s15 = inlined_call_operand.vmem [shape: f32[2,1], index: 15, kind: output, shape index: {1}]  }
   0x1   :  { %v1875_v0 = vld [vmem:[%s2779_s1 + $0xf8] sm:$0xff]  ;;  %v1885_v2 = vld [vmem:[%s2779_s1 + $0xf0] sm:$0xff]  ;;  %v1908_v6 = vld [vmem:[%s2779_s1 + $0xe8] sm:$0xff]  ;;  %v168_v28 = vunpack.c.l.s4 %v1789_v27  ;;  %vm503_vm2 = vcmask 1040384   ;;  %vm499_vm3 = vcmask 203776   ;;  %vm1211_vm4 = vcmask 1041408  }
   0x2   :  { %v1880_v1 = vld [vmem:[%s2779_s1 + $0x78] sm:$0xff]  ;;  %1446 = vmatprep.subr.mxu0 %v1875_v0  ;;  %v1896_v4 = vld [vmem:[%s2779_s1 + $0x70] sm:$0xff]  ;;  %v1920_v8 = vld [vmem:[%s2779_s1 + $0x68] sm:$0xff]  ;;  %v171_v39 = vshrl.u32 %v170_v29, 7  ;;  %vm664_vm5 = vcmask 74752   ;;  %vm1207_vm6 = vcmask 80896  }
   0x3   :  { %v1891_v3 = vld [vmem:[%s2779_s1 + $0x1f8] sm:$0xff]  ;;  %1447 = vmatpush3.msra.mxu0 %v1880_v1  ;;  %v1913_v7 = vld [vmem:[%s2779_s1 + $0x1f0] sm:$0xff]  ;;  %v1930_v10 = vld [vmem:[%s2779_s1 + $0x1e8] sm:$0xff]  ;;  %v169_v38 = vunpack.c.0.s8 %v168_v28  ;;  %vm1369_vm7 = vcmask 1024  }
   0x4   :  { %v1901_v5 = vld [vmem:[%s2779_s1 + $0x178] sm:$0xff]  ;;  %1481 = vmatprep.subr.mxu1 %v1891_v3  ;;  %1448 = vmatprep.subr.mxu0 %v1885_v2  ;;  %v1925_v9 = vld [vmem:[%s2779_s1 + $0x170] sm:$0xff]  ;;  %v1937_v11 = vld [vmem:[%s2779_s1 + $0xe0] sm:$0xff] }
   0x5   :  { %1482 = vmatpush3.msra.mxu1 %v1901_v5  ;;  %1449 = vmatpush3.msra.mxu0 %v1896_v4  ;;  %v1942_v12 = vld [vmem:[%s2779_s1 + $0x168] sm:$0xff]  ;;  %v1949_v13 = vld [vmem:[%s2779_s1 + $0x60] sm:$0xff]  ;;  %v1961_v15 = vld [vmem:[%s2779_s1 + $0xd8] sm:$0xff]  ;;  %v2124_v48 = vsub.s32 %v169_v38, %v171_v39 }
   0x6   :  { %1483 = vmatprep.subr.mxu1 %v1913_v7  ;;  %1450 = vmatprep.subr.mxu0 %v1908_v6  ;;  %v1954_v14 = vld [vmem:[%s2779_s1 + $0x1e0] sm:$0xff]  ;;  %v1973_v17 = vld [vmem:[%s2779_s1 + $0x58] sm:$0xff]  ;;  %v1985_v19 = vld [vmem:[%s2779_s1 + $0xd0] sm:$0xff] }
   0x7   :  { %1484 = vmatpush3.msra.mxu1 %v1925_v9  ;;  %1451 = vmatpush3.msra.mxu0 %v1920_v8  ;;  %v1966_v16 = vld [vmem:[%s2779_s1 + $0x160] sm:$0xff]  ;;  %v1978_v18 = vld [vmem:[%s2779_s1 + $0x1d8] sm:$0xff]  ;;  %v1997_v21 = vld [vmem:[%s2779_s1 + $0x50] sm:$0xff] }
   0x8   :  { %1485 = vmatprep.subr.mxu1 %v1930_v10  ;;  %1452 = vmatprep.subr.mxu0 %v1937_v11  ;;  %v1990_v20 = vld [vmem:[%s2779_s1 + $0x158] sm:$0xff]  ;;  %v2002_v22 = vld [vmem:[%s2779_s1 + $0x1d0] sm:$0xff]  ;;  %v2009_v23 = vld [vmem:[%s2779_s1 + $0xc8] sm:$0xff] }
   0x9   :  { %1486 = vmatpush3.msra.mxu1 %v1942_v12  ;;  %1453 = vmatpush3.msra.mxu0 %v1949_v13  ;;  %v2014_v24 = vld [vmem:[%s2779_s1 + $0x150] sm:$0xff]  ;;  %v2021_v25 = vld [vmem:[%s2779_s1 + $0x48] sm:$0xff]  ;;  %v2033_v30 = vld [vmem:[%s2779_s1 + $0xc0] sm:$0xff] }
   0xa   :  { %1487 = vmatprep.subr.mxu1 %v1954_v14  ;;  %1454 = vmatprep.subr.mxu0 %v1961_v15  ;;  %v2026_v26 = vld [vmem:[%s2779_s1 + $0x1c8] sm:$0xff]  ;;  %v2045_v32 = vld [vmem:[%s2779_s1 + $0x40] sm:$0xff]  ;;  %v2057_v34 = vld [vmem:[%s2779_s1 + $0xb8] sm:$0xff] }
   0xb   :  { %1488 = vmatpush3.msra.mxu1 %v1966_v16  ;;  %1455 = vmatpush3.msra.mxu0 %v1973_v17  ;;  %v2038_v31 = vld [vmem:[%s2779_s1 + $0x148] sm:$0xff]  ;;  %v2050_v33 = vld [vmem:[%s2779_s1 + $0x1c0] sm:$0xff]  ;;  %v2069_v36 = vld [vmem:[%s2779_s1 + $0x38] sm:$0xff] }
   0xc   :  { %1489 = vmatprep.subr.mxu1 %v1978_v18  ;;  %1456 = vmatprep.subr.mxu0 %v1985_v19  ;;  %v2062_v35 = vld [vmem:[%s2779_s1 + $0x140] sm:$0xff]  ;;  %v2074_v37 = vld [vmem:[%s2779_s1 + $0x1b8] sm:$0xff]  ;;  %v2081_v40 = vld [vmem:[%s2779_s1 + $0xb0] sm:$0xff] }
   0xd   :  { %1490 = vmatpush3.msra.mxu1 %v1990_v20  ;;  %1457 = vmatpush3.msra.mxu0 %v1997_v21  ;;  %2836 = vst [vmem:[#allocation5_spill] sm:$0xff] %v2081_v40  ;;  %v2086_v41 = vld [vmem:[%s2779_s1 + $0x138] sm:$0xff]  ;;  %v2093_v42 = vld [vmem:[%s2779_s1 + $0x30] sm:$0xff]  ;;  %v2105_v44 = vld [vmem:[%s2779_s1 + $0xa8] sm:$0xff] }
   0xe   :  { %1491 = vmatprep.subr.mxu1 %v2002_v22  ;;  %1458 = vmatprep.subr.mxu0 %v2009_v23  ;;  %2837 = vst [vmem:[#allocation6_spill] sm:$0xff] %v2093_v42  ;;  %v2098_v43 = vld [vmem:[%s2779_s1 + $0x1b0] sm:$0xff]  ;;  %2838 = vst [vmem:[#allocation7_spill] sm:$0xff] %v2105_v44  ;;  %v2117_v46 = vld [vmem:[%s2779_s1 + $0x28] sm:$0xff] }
   0xf   :  { %1492 = vmatpush3.msra.mxu1 %v2014_v24  ;;  %1459 = vmatpush3.msra.mxu0 %v2021_v25  ;;  %v2110_v45 = vld [vmem:[%s2779_s1 + $0x130] sm:$0xff]  ;;  %2839 = vst [vmem:[#allocation8_spill] sm:$0xff] %v2117_v46  ;;  %v2122_v47 = vld [vmem:[%s2779_s1 + $0x1a8] sm:$0xff]  ;;  %v2131_v49 = vld [vmem:[%s2779_s1 + $0xa0] sm:$0xff] }
  0x10   :  { %1493 = vmatprep.subr.mxu1 %v2026_v26  ;;  %1460 = vmatprep.subr.mxu0 %v2033_v30  ;;  %2840 = vst [vmem:[#allocation9_spill] sm:$0xff] %v2131_v49  ;;  %v2136_v50 = vld [vmem:[%s2779_s1 + $0x128] sm:$0xff]  ;;  %v55_v51 = vld [vmem:[%s2780_s0] sm:$0xff]  ;;  %v2158_v54 = vld [vmem:[%s2779_s1 + $0x98] sm:$0xff] }
  0x11   :  { %1494 = vmatpush3.msra.mxu1 %v2038_v31  ;;  %1461 = vmatpush3.msra.mxu0 %v2045_v32  ;;  %v2146_v52 = vld [vmem:[%s2779_s1 + $0x20] sm:$0xff]  ;;  %2842 = vst [vmem:[#allocation11_spill] sm:$0xff] %v2158_v54  ;;  %v2170_v56 = vld [vmem:[%s2779_s1 + $0x18] sm:$0xff]  ;;  %v173_v58 = vrot.slane %v55_v51, %v2124_v48  ;;  %v166_v59 = vcombine.high %v55_v51, %v55_v51  ;;  %v2183_v60 = vld [vmem:[%s2779_s1 + $0x90] sm:$0xff] }
  0x12   :  { %1495 = vmatprep.subr.mxu1 %v2050_v33  ;;  %1462 = vmatprep.subr.mxu0 %v2057_v34  ;;  %2841 = vst [vmem:[#allocation10_spill] sm:$0xff] %v2146_v52  ;;  %v2151_v53 = vld [vmem:[%s2779_s1 + $0x1a0] sm:$0xff]  ;;  %2843 = vst [vmem:[#allocation12_spill] sm:$0xff] %v2170_v56  ;;  %v2175_v57 = vld [vmem:[%s2779_s1 + $0x198] sm:$0xff] }
  0x13   :  { %1496 = vmatpush3.msra.mxu1 %v2062_v35  ;;  %1463 = vmatpush3.msra.mxu0 %v2069_v36  ;;  %v2163_v55 = vld [vmem:[%s2779_s1 + $0x120] sm:$0xff]  ;;  %2844 = vst [vmem:[#allocation13_spill] sm:$0xff] %v2183_v60  ;;  %v2188_v61 = vld [vmem:[%s2779_s1 + $0x118] sm:$0xff]  ;;  %v2195_v62 = vld [vmem:[%s2779_s1 + $0x10] sm:$0xff]  ;;  %v181_v39 = vcombine.high %v173_v58, %v173_v58  ;;  %v180_v51 = vrot.slane %v166_v59, %v2124_v48 }
  0x14   :  { %1497 = vmatprep.subr.mxu1 %v2074_v37  ;;  %1464 = vmatprep.subr.mxu0 %v2081_v40  ;;  %2845 = vst [vmem:[#allocation14_spill] sm:$0xff] %v2195_v62  ;;  %v2200_v63 = vld [vmem:[%s2779_s1 + $0x190] sm:$0xff]  ;;  %v2207_v27 = vld [vmem:[%s2779_s1 + $0x88] sm:$0xff] }
  0x15   :  { %1498 = vmatpush3.msra.mxu1 %v2086_v41  ;;  %1465 = vmatpush3.msra.mxu0 %v2093_v42  ;;  %2846 = vst [vmem:[#allocation15_spill] sm:$0xff] %v2207_v27  ;;  %v2212_v28 = vld [vmem:[%s2779_s1 + $0x110] sm:$0xff]  ;;  %v2219_v29 = vld [vmem:[%s2779_s1 + $0x8] sm:$0xff]  ;;  %v2339_v42 = vld [vmem:[%s2779_s1 + $0x258] sm:$0xff] }
  0x16   :  { %1499 = vmatprep.subr.mxu1 %v2098_v43  ;;  %1466 = vmatprep.subr.mxu0 %v2105_v44  ;;  %2847 = vst [vmem:[#allocation16_spill] sm:$0xff] %v2219_v29  ;;  %v2224_v38 = vld [vmem:[%s2779_s1 + $0x188] sm:$0xff]  ;;  %v2810_v44 = vmov 0.0   ;;  %2860 = vst [vmem:[#allocation28_spill] sm:$0xff] %v2339_v42  ;;  %v2350_v40 = vld [vmem:[%s2779_s1 + $0x2d0] sm:$0xff] }
  0x17   :  { %1500 = vmatpush3.msra.mxu1 %v2110_v45  ;;  %1467 = vmatpush3.msra.mxu0 %v2117_v46  ;;  %v2244_v59 = vld [vmem:[%s2779_s1 + $0x108] sm:$0xff]  ;;  %v2299_v46 = vld [vmem:[%s2779_s1 + $0x318] sm:$0xff] }
  0x18   :  { %1501 = vmatprep.subr.mxu1 %v2122_v47  ;;  %1468 = vmatprep.subr.mxu0 %v2131_v49  ;;  %v2288_v49 = vld [vmem:[%s2779_s1 + $0x270] sm:$0xff] }
  0x19   :  { %1502 = vmatpush3.msra.mxu1 %v2136_v50  ;;  %1469 = vmatpush3.msra.mxu0 %v2146_v52  ;;  %v2278_v52 = vld [vmem:[%s2779_s1 + $0x2f0] sm:$0xff]  ;;  %2853 = vst [vmem:[#allocation22_spill] sm:$0xff] %v2288_v49 }
  0x1a   :  { %1503 = vmatprep.subr.mxu1 %v2151_v53  ;;  %1470 = vmatprep.subr.mxu0 %v2158_v54  ;;  %v2262_v54 = vld [vmem:[%s2779_s1 + $0x100] sm:$0xff]  ;;  %2852 = vst [vmem:[#allocation21_spill] sm:$0xff] %v2278_v52 }
  0x1b   :  { %1504 = vmatpush3.msra.mxu1 %v2163_v55  ;;  %1471 = vmatpush3.msra.mxu0 %v2170_v56  ;;  %v2239_v56 = vld [vmem:[%s2779_s1] sm:$0xff] }
  0x1c   :  { %1505 = vmatprep.subr.mxu1 %v2175_v57  ;;  %1472 = vmatprep.subr.mxu0 %v2183_v60  ;;  %v2232_v60 = vld [vmem:[%s2779_s1 + $0x80] sm:$0xff]  ;;  %2849 = vst [vmem:[#allocation18_spill] sm:$0xff] %v2239_v56 }
  0x1d   :  { %1506 = vmatpush3.msra.mxu1 %v2188_v61  ;;  %1473 = vmatpush3.msra.mxu0 %v2195_v62  ;;  %2848 = vst [vmem:[#allocation17_spill] sm:$0xff] %v2232_v60  ;;  %v2257_v62 = vld [vmem:[%s2779_s1 + $0x2f8] sm:$0xff] }
  0x1e   :  { %1507 = vmatprep.subr.mxu1 %v2200_v63  ;;  %1474 = vmatprep.subr.mxu0 %v2207_v27  ;;  %v2251_v27 = vld [vmem:[%s2779_s1 + $0x180] sm:$0xff]  ;;  %2850 = vst [vmem:[#allocation19_spill] sm:$0xff] %v2257_v62 }
  0x1f   :  { %1508 = vmatpush3.msra.mxu1 %v2212_v28  ;;  %1475 = vmatpush3.msra.mxu0 %v2219_v29  ;;  %v182_v29 = vcombine.high %v180_v51, %v180_v51 }
  0x20   :  { %1509 = vmatprep.subr.mxu1 %v2224_v38  ;;  %1476 = vmatprep.subr.mxu0 %v2232_v60  ;;  %v2269_v60 = vld [vmem:[%s2779_s1 + $0x278] sm:$0xff] }
  0x21   :  { %272 = vmatprep.mubr.f32.mxu0 %v181_v39  ;;  %1477 = vmatpush3.msra.mxu0 %v2239_v56  ;;  %2851 = vst [vmem:[#allocation20_spill] sm:$0xff] %v2269_v60  ;;  %v56_v39 = vld [vmem:[%s2780_s0 + $0x8] sm:$0x3f] }
  0x22   :  { %1510 = vmatpush3.msra.mxu1 %v2244_v59  ;;  %273 = vmatmul.mubr.f32.vlgmr.msra.gmra.mxu0 %v173_v58  ;;  %v2281_v56 = vrot.slane %v56_v39, %v2124_v48  ;;  %v2294_v58 = vld [vmem:[%s2779_s1 + $0x2e8] sm:$0xff] }
  0x23   :  { %1511 = vmatprep.subr.mxu1 %v2251_v27  ;;  %1516 = vmatprep.subr.mxu0 %v2257_v62  ;;  %2854 = vst [vmem:[#allocation23_spill] sm:$0xff] %v2294_v58  ;;  %v2305_v62 = vld [vmem:[%s2779_s1 + $0x268] sm:$0xff] }
  0x24   :  { %1512 = vmatpush3.msra.mxu1 %v2262_v54  ;;  %342 = vmatprep.mubr.f32.mxu1 %v182_v29  ;;  %2855 = vst [vmem:[#allocation24_spill] sm:$0xff] %v2305_v62  ;;  %v198_v29 = vcombine.high %v2281_v56, %v2281_v56 }
  0x25   :  { %1517 = vmatpush3.msra.mxu0 %v2269_v60  ;;  %343 = vmatmul.mubr.f32.vlgmr.msra.gmra.mxu1 %v180_v51  ;;  %v2313_v60 = vld [vmem:[%s2779_s1 + $0x2e0] sm:$0xff] }
  0x26   :  { %1518 = vmatprep.subr.mxu0 %v2278_v52  ;;  %2856 = vst [vmem:[#allocation25_spill] sm:$0xff] %v2313_v60  ;;  %1692 = vmatprep.subr.mxu1 %v2810_v44  ;;  %v2320_v51 = vld [vmem:[%s2779_s1 + $0x260] sm:$0xff]  ;;  %v2332_v44 = vld [vmem:[%s2779_s1 + $0x2d8] sm:$0xff]  ;;  %v183_v52 = vcombine.high %v56_v39, %v56_v39  ;;  %v2357_v39 = vld [vmem:[%s2779_s1 + $0x250] sm:$0xff] }
  0x27   :  { %1519 = vmatpush3.msra.mxu0 %v2288_v49  ;;  %2857 = vst [vmem:[#allocation26_spill] sm:$0xff] %v2320_v51  ;;  %1693 = vmatpush3.msra.mxu1 %v2299_v46  ;;  %v2326_v49 = vld [vmem:[%s2779_s1 + $0x310] sm:$0xff]  ;;  %2858 = vst [vmem:[#allocation27_spill] sm:$0xff] %v2332_v44 }
  0x28   :  { %1520 = vmatprep.subr.mxu0 %v2294_v58  ;;  %v2859_v58 = vmov 0.0   ;;  %412 = vmatprep.mubr.f32.mxu0 %v198_v29  ;;  %2861 = vst [vmem:[#allocation29_spill] sm:$0xff] %v2357_v39  ;;  %v2363_v29 = vld [vmem:[%s2779_s1 + $0x300] sm:$0xff] }
  0x29   :  { %1521 = vmatpush3.msra.mxu0 %v2305_v62  ;;  %1694 = vmatprep.subr.mxu1 %v2859_v58  ;;  %v2344_v62 = vld [vmem:[%s2779_s1 + $0x308] sm:$0xff] }
  0x2a   :  { %1522 = vmatprep.subr.mxu0 %v2313_v60  ;;  %1695 = vmatpush3.msra.mxu1 %v2326_v49  ;;  %v2377_v60 = vld [vmem:[%s2779_s1 + $0x248] sm:$0xff] }
  0x2b   :  { %1523 = vmatpush3.msra.mxu0 %v2320_v51  ;;  %1696 = vmatprep.subr.mxu1 %v2859_v58  ;;  %v2369_v51 = vld [vmem:[%s2779_s1 + $0x2c8] sm:$0xff]  ;;  %2863 = vst [vmem:[#allocation31_spill] sm:$0xff] %v2377_v60 }
  0x2c   :  { %1524 = vmatprep.subr.mxu0 %v2332_v44  ;;  %2862 = vst [vmem:[#allocation30_spill] sm:$0xff] %v2369_v51  ;;  %v197_v44 = vrot.slane %v183_v52, %v2124_v48  ;;  %1697 = vmatpush3.msra.mxu1 %v2344_v62  ;;  %v2391_v52 = vld [vmem:[%s2779_s1 + $0x240] sm:$0xff] }
  0x2d   :  { %1525 = vmatpush3.msra.mxu0 %v2339_v42  ;;  %1698 = vmatprep.subr.mxu1 %v2859_v58  ;;  %v2384_v42 = vld [vmem:[%s2779_s1 + $0x2c0] sm:$0xff]  ;;  %2865 = vst [vmem:[#allocation33_spill] sm:$0xff] %v2391_v52 }
  0x2e   :  { %1526 = vmatprep.subr.mxu0 %v2350_v40  ;;  %2864 = vst [vmem:[#allocation32_spill] sm:$0xff] %v2384_v42  ;;  %1699 = vmatpush3.msra.mxu1 %v2363_v29 }
  0x2f   :  { %1527 = vmatpush3.msra.mxu0 %v2357_v39  ;;  %1700 = vmatprep.mubr.msk.f32.mxu1 %vm1791_vm1, %v2859_v58  ;;  %v2399_v39 = vld [vmem:[%s2779_s1 + $0x2b8] sm:$0xff] }
  0x30   :  { %1528 = vmatprep.subr.mxu0 %v2369_v51  ;;  %2866 = vst [vmem:[#allocation34_spill] sm:$0xff] %v2399_v39  ;;  %1701 = vmatmul.mubr.msk.f32.vlgmr.msra.gmra.mxu1 %vm205_vm0, %v197_v44  ;;  %v2406_v51 = vld [vmem:[%s2779_s1 + $0x238] sm:$0xff]  ;;  %v2421_v44 = vld [vmem:[%s2779_s1 + $0x230] sm:$0xff] }
  0x31   :  { %1529 = vmatpush3.msra.mxu0 %v2377_v60  ;;  %2867 = vst [vmem:[#allocation35_spill] sm:$0xff] %v2406_v51  ;;  %1703 = vmatprep.subr.mxu1 %v2859_v58  ;;  %v2413_v60 = vld [vmem:[%s2779_s1 + $0x2b0] sm:$0xff]  ;;  %2869 = vst [vmem:[#allocation37_spill] sm:$0xff] %v2421_v44 }
  0x32   :  { %1530 = vmatprep.subr.mxu0 %v2384_v42  ;;  %2868 = vst [vmem:[#allocation36_spill] sm:$0xff] %v2413_v60  ;;  %1711 = vmatprep.mubr.msk.f32.mxu1 %vm1791_vm1, %v2859_v58  ;;  %v2433_v42 = vld [vmem:[%s2779_s1 + $0x228] sm:$0xff] }
  0x33   :  { %1531 = vmatpush3.msra.mxu0 %v2391_v52  ;;  %v2427_v52 = vld [vmem:[%s2779_s1 + $0x2a8] sm:$0xff]  ;;  %2871 = vst [vmem:[#allocation39_spill] sm:$0xff] %v2433_v42 }
  0x34   :  { %1532 = vmatprep.subr.mxu0 %v2399_v39  ;;  %2870 = vst [vmem:[#allocation38_spill] sm:$0xff] %v2427_v52  ;;  %v2439_v39 = vld [vmem:[%s2779_s1 + $0x2a0] sm:$0xff] }
  0x35   :  { %1533 = vmatpush3.msra.mxu0 %v2406_v51  ;;  %2872 = vst [vmem:[#allocation40_spill] sm:$0xff] %v2439_v39  ;;  %v2445_v51 = vld [vmem:[%s2779_s1 + $0x220] sm:$0xff] }
  0x36   :  { %1534 = vmatprep.subr.mxu0 %v2413_v60  ;;  %2873 = vst [vmem:[#allocation41_spill] sm:$0xff] %v2445_v51  ;;  %v2451_v60 = vld [vmem:[%s2779_s1 + $0x298] sm:$0xff] }
  0x37   :  { %1535 = vmatpush3.msra.mxu0 %v2421_v44  ;;  %2874 = vst [vmem:[#allocation42_spill] sm:$0xff] %v2451_v60  ;;  %v2457_v44 = vld [vmem:[%s2779_s1 + $0x218] sm:$0xff] }
  0x38   :  { %1536 = vmatprep.subr.mxu0 %v2427_v52  ;;  %2875 = vst [vmem:[#allocation43_spill] sm:$0xff] %v2457_v44  ;;  %v2463_v52 = vld [vmem:[%s2779_s1 + $0x290] sm:$0xff] }
  0x39   :  { %1537 = vmatpush3.msra.mxu0 %v2433_v42  ;;  %v2469_v42 = vld [vmem:[%s2779_s1 + $0x210] sm:$0xff] }
  0x3a   :  { %1538 = vmatprep.subr.mxu0 %v2439_v39  ;;  %v2475_v39 = vld [vmem:[%s2779_s1 + $0x288] sm:$0xff] }
  0x3b   :  { %1539 = vmatpush3.msra.mxu0 %v2445_v51  ;;  %v2481_v51 = vld [vmem:[%s2779_s1 + $0x208] sm:$0xff] }
  0x3c   :  { %1540 = vmatprep.subr.mxu0 %v2451_v60  ;;  %v2487_v60 = vld [vmem:[%s2779_s1 + $0x280] sm:$0xff] }
  0x3d   :  { %1541 = vmatpush3.msra.mxu0 %v2457_v44  ;;  %v2493_v44 = vld [vmem:[%s2779_s1 + $0x200] sm:$0xff] }
  0x3e   :  { %1542 = vmatprep.subr.mxu0 %v2463_v52 }
  0x3f   :  { %1543 = vmatpush3.msra.mxu0 %v2469_v42 }
  0x40   :  { %1544 = vmatprep.subr.mxu0 %v2475_v39 }
  0x41   :  { %1545 = vmatpush3.msra.mxu0 %v2481_v51 }
  0x42   :  { %1546 = vmatprep.subr.mxu0 %v2487_v60 }
  0x43   :  { %1547 = vmatpush3.msra.mxu0 %v2493_v44 }
  0x44   :  { %413 = vmatmul.mubr.f32.vlgmr.msra.gmra.mxu0 %v2281_v56  ;;  %1601 = vmatprep.subr.mxu0 %v1891_v3  ;;  %v2535_v3 = vld [vmem:[%s2781_s3 + $0x18] sm:$0x1] }
  0x45   :  { %1602 = vmatpush3.msra.mxu0 %v1901_v5  ;;  %1704 = vmatpush3.msk.msra.mxu1 %vm503_vm2, %v2535_v3  ;;  %v2543_v5 = vld [vmem:[%s2781_s3 + $0x10] sm:$0xff] }
  0x46   :  { %1603 = vmatprep.subr.mxu0 %v1913_v7  ;;  %1705 = vmatprep.subr.mxu1 %v2859_v58  ;;  %v489_v7 = vld [vmem:[%s2781_s3 + $0x8] sm:$0xff] }
  0x47   :  { %1604 = vmatpush3.msra.mxu0 %v1925_v9  ;;  %1706 = vmatpush3.msra.mxu1 %v2543_v5  ;;  %v488_v9 = vld [vmem:[%s2781_s3] sm:$0xff] }
  0x48   :  { %1605 = vmatprep.subr.mxu0 %v1930_v10  ;;  %1707 = vmatprep.subr.mxu1 %v2859_v58 }
  0x49   :  { %1606 = vmatpush3.msra.mxu0 %v1942_v12  ;;  %1708 = vmatpush3.msra.mxu1 %v489_v7 }
  0x4a   :  { %1607 = vmatprep.subr.mxu0 %v1954_v14  ;;  %1709 = vmatprep.subr.mxu1 %v2859_v58 }
  0x4b   :  { %1608 = vmatpush3.msra.mxu0 %v1966_v16  ;;  %1710 = vmatpush3.msra.mxu1 %v488_v9 }
  0x4c   :  { %1609 = vmatprep.subr.mxu0 %v1978_v18  ;;  %1714 = vmatprep.subr.mxu1 %v2859_v58 }
  0x4d   :  { %1610 = vmatpush3.msra.mxu0 %v1990_v20 }
  0x4e   :  { %1611 = vmatprep.subr.mxu0 %v2002_v22 }
  0x4f   :  { %1612 = vmatpush3.msra.mxu0 %v2014_v24  ;;  %v2558_v24 = vld [vmem:[%s2782_s2] ss:$0 sm:$0xff] }
  0x50   :  { %1613 = vmatprep.subr.mxu0 %v2026_v26 }
  0x51   :  { %1614 = vmatpush3.msra.mxu0 %v2038_v31 }
  0x52   :  { %1615 = vmatprep.subr.mxu0 %v2050_v33 }
  0x53   :  { %1616 = vmatpush3.msra.mxu0 %v2062_v35 }
  0x54   :  { %1617 = vmatprep.subr.mxu0 %v2074_v37 }
  0x55   :  { %1618 = vmatpush3.msra.mxu0 %v2086_v41 }
  0x56   :  { %1619 = vmatprep.subr.mxu0 %v2098_v43 }
  0x57   :  { %1620 = vmatpush3.msra.mxu0 %v2110_v45 }
  0x58   :  { %1621 = vmatprep.subr.mxu0 %v2122_v47  ;;  %v2564_v47 = vld [vmem:[%s2783_s5 + $0x18] sm:$0x1] }
  0x59   :  { %1622 = vmatpush3.msra.mxu0 %v2136_v50  ;;  %v2570_v50 = vld [vmem:[%s2783_s5 + $0x10] sm:$0xff] }
  0x5a   :  { %1623 = vmatprep.subr.mxu0 %v2151_v53  ;;  %v2580_v53 = vld [vmem:[%s2783_s5 + $0x8] sm:$0xff] }
  0x5b   :  { %1624 = vmatpush3.msra.mxu0 %v2163_v55  ;;  %v1431_v55 = vld [vmem:[%s2780_s0 + $0xe] sm:$0xff] }
  0x5c   :  { %1625 = vmatprep.subr.mxu0 %v2175_v57  ;;  %v709_v56 = vcombine.high %v1431_v55, %v1431_v55 }
  0x5d   :  { %1626 = vmatpush3.msra.mxu0 %v2188_v61 }
  0x5e   :  { %1627 = vmatprep.subr.mxu0 %v2200_v63  ;;  %v723_v57 = vrot.slane %v709_v56, %v2124_v48  ;;  %v2914_v56 = vld [vmem:[#allocation43_spill] sm:$0xff] }
  0x5f   :  { %1628 = vmatpush3.msra.mxu0 %v2212_v28 }
  0x60   :  { %1629 = vmatprep.subr.mxu0 %v2224_v38  ;;  %v725_v61 = vcombine.high %v723_v57, %v723_v57 }
  0x61   :  { %1630 = vmatpush3.msra.mxu0 %v2244_v59 }
  0x62   :  { %1631 = vmatprep.subr.mxu0 %v2251_v27  ;;  %884 = vmatprep.mubr.f32.mxu0 %v725_v61 }
  0x63   :  { %1632 = vmatpush3.msra.mxu0 %v2262_v54  ;;  %v2589_v54 = vld [vmem:[%s2783_s5] sm:$0xff] }
  0x64   :  { %1725 = vmatprep.subr.mxu0 %v2859_v58  ;;  %885 = vmatmul.mubr.f32.vlgmr.msra.gmra.mxu0 %v723_v57 }
  0x65   :  { %1726 = vmatpush3.msra.mxu0 %v2299_v46  ;;  %1733 = vmatprep.mubr.msk.f32.mxu0 %vm1791_vm1, %v2859_v58 }
  0x66   :  { %1727 = vmatprep.subr.mxu0 %v2859_v58 }
  0x67   :  { %1728 = vmatpush3.msra.mxu0 %v2326_v49  ;;  %v716_v49 = vrot.slane %v1431_v55, %v2124_v48  ;;  %v2913_v55 = vld [vmem:[#allocation42_spill] sm:$0xff] }
  0x68   :  { %1729 = vmatprep.subr.mxu0 %v2859_v58 }
  0x69   :  { %1730 = vmatpush3.msra.mxu0 %v2344_v62  ;;  %v2625_v62 = vld [vmem:[%s2784_s4] ss:$0 sm:$0xff]  ;;  %v724_v28 = vcombine.high %v716_v49, %v716_v49 }
  0x6a   :  { %1731 = vmatprep.subr.mxu0 %v2859_v58 }
  0x6b   :  { %1732 = vmatpush3.msra.mxu0 %v2363_v29  ;;  %v2891_v29 = vld [vmem:[#allocation20_spill] sm:$0xff] }
  0x6c   :  { %1736 = vmatprep.subr.mxu0 %v2859_v58 }
  0xe2   :  { %v1478_v18 = vpop.f32.mrf.mxu0 }
  0xe4   :  { %v1479_v20 = vpop.f32.mrf.mxu0 }
  0xe5   :  { %v1513_v10 = vpop.f32.mrf.mxu1  ;;  %v1480_v22 = vadd.f32 %v1479_v20, %v1478_v18  ;;  %v2901_v18 = vld [vmem:[#allocation30_spill] sm:$0xff]  ;;  %v2902_v20 = vld [vmem:[#allocation31_spill] sm:$0xff] }
  0xe7   :  { %v1514_v12 = vpop.f32.mrf.mxu1  ;;  %v275_v26 = vadd.f32 %v1480_v22, %v2558_v24  ;;  %v2903_v22 = vld [vmem:[#allocation32_spill] sm:$0xff] }
  0xe8   :  { %v1515_v31 = vadd.f32 %v1514_v12, %v1513_v10  ;;  %v2897_v10 = vld [vmem:[#allocation26_spill] sm:$0xff]  ;;  %v2898_v12 = vld [vmem:[#allocation27_spill] sm:$0xff] }
  0xea   :  { %v345_v37 = vadd.f32 %v1515_v31, %v275_v26  ;;  %v2904_v26 = vld [vmem:[#allocation33_spill] sm:$0xff]  ;;  %v2905_v31 = vld [vmem:[#allocation34_spill] sm:$0xff] }
  0xf0   :  { %v484_v14 = vpop.f32.mrf.mxu1 }
  0xf2   :  { %v1702_v16 = vpop.f32.mrf.mxu1 }
  0xf3   :  { %v2900_v16 = vld [vmem:[#allocation29_spill] sm:$0xff] }
 0x104   :  { %v1548_v33 = vpop.f32.mrf.mxu0 }
 0x106   :  { %v1549_v35 = vpop.f32.mrf.mxu0 }
 0x107   :  { %v1550_v41 = vadd.f32 %v1549_v35, %v1548_v33  ;;  %v2906_v33 = vld [vmem:[#allocation35_spill] sm:$0xff]  ;;  %v2907_v35 = vld [vmem:[#allocation36_spill] sm:$0xff] }
 0x109   :  { %v415_v43 = vadd.f32 %v1550_v41, %v345_v37  ;;  %v2908_v37 = vld [vmem:[#allocation37_spill] sm:$0xff]  ;;  %v2909_v41 = vld [vmem:[#allocation38_spill] sm:$0xff] }
 0x10b   :  { %v485_v45 = vadd.f32 %v484_v14, %v415_v43  ;;  %v2899_v14 = vld [vmem:[#allocation28_spill] sm:$0xff] }
 0x10c   :  { %v2911_v43 = vld [vmem:[#allocation40_spill] sm:$0xff] }
 0x10d   :  { %1712 = vmatmul.mubr.msk.f32.vlgmr.msra.gmra.mxu1 %vm499_vm3, %v485_v45  ;;  %v2912_v45 = vld [vmem:[#allocation41_spill] sm:$0xff] }
 0x10e   :  { %1715 = vmatpush3.msk.msra.mxu1 %vm503_vm2, %v2564_v47  ;;  %1722 = vmatprep.mubr.msk.f32.mxu1 %vm1791_vm1, %v2859_v58 }
 0x10f   :  { %1716 = vmatprep.subr.mxu1 %v2859_v58 }
 0x110   :  { %1717 = vmatpush3.msra.mxu1 %v2570_v50 }
 0x111   :  { %1718 = vmatprep.subr.mxu1 %v2859_v58 }
 0x112   :  { %1719 = vmatpush3.msra.mxu1 %v2580_v53 }
 0x113   :  { %1720 = vmatprep.subr.mxu1 %v2859_v58 }
 0x114   :  { %1721 = vmatpush3.msra.mxu1 %v2589_v54 }
 0x115   :  { %1566 = vmatprep.subr.mxu1 %v1875_v0  ;;  %v1432_v0 = vld [vmem:[%s2780_s0 + $0x16] sm:$0x3f] }
 0x116   :  { %v726_v46 = vcombine.high %v1432_v0, %v1432_v0 }
 0x118   :  { %v740_v63 = vrot.slane %v726_v46, %v2124_v48 }
 0x11a   :  { %1734 = vmatmul.mubr.msk.f32.vlgmr.msra.gmra.mxu0 %vm205_vm0, %v740_v63 }
 0x11b   :  { %1737 = vmatpush3.msk.msra.mxu0 %vm503_vm2, %v2535_v3  ;;  %1744 = vmatprep.mubr.msk.f32.mxu0 %vm1791_vm1, %v2859_v58  ;;  %v2893_v3 = vld [vmem:[#allocation22_spill] sm:$0xff] }
 0x11c   :  { %1738 = vmatprep.subr.mxu0 %v2859_v58 }
 0x11d   :  { %1739 = vmatpush3.msra.mxu0 %v2543_v5  ;;  %v2894_v5 = vld [vmem:[#allocation23_spill] sm:$0xff] }
 0x11e   :  { %1740 = vmatprep.subr.mxu0 %v2859_v58 }
 0x11f   :  { %1741 = vmatpush3.msra.mxu0 %v489_v7  ;;  %v2895_v7 = vld [vmem:[#allocation24_spill] sm:$0xff] }
 0x120   :  { %1742 = vmatprep.subr.mxu0 %v2859_v58 }
 0x121   :  { %1743 = vmatpush3.msra.mxu0 %v488_v9  ;;  %v2896_v9 = vld [vmem:[#allocation25_spill] sm:$0xff] }
 0x122   :  { %1747 = vmatprep.subr.mxu0 %v2859_v58 }
 0x124   :  { %v1633_v57 = vpop.f32.mrf.mxu0 }
 0x126   :  { %v1634_v61 = vpop.f32.mrf.mxu0 }
 0x1cd   :  { %v573_v27 = vpop.f32.mrf.mxu1 }
 0x1ce   :  { %v574_v38 = vadd.f32 %v2625_v62, %v573_v27 }
 0x1cf   :  { %v1713_v59 = vpop.f32.mrf.mxu1 }
 0x1d0   :  { %1723 = vmatmul.mubr.msk.f32.vlgmr.msra.gmra.mxu1 %vm499_vm3, %v574_v38 }
 0x1d1   :  { %1567 = vmatpush3.msra.mxu1 %v1880_v1  ;;  %814 = vmatprep.mubr.f32.mxu1 %v724_v28  ;;  %v2876_v1 = vld [vmem:[#allocation5_spill] sm:$0xff] }
 0x1d2   :  { %1568 = vmatprep.subr.mxu1 %v1885_v2  ;;  %v2877_v2 = vld [vmem:[#allocation6_spill] sm:$0xff] }
 0x1d3   :  { %1569 = vmatpush3.msra.mxu1 %v1896_v4  ;;  %v2878_v4 = vld [vmem:[#allocation7_spill] sm:$0xff] }
 0x1d4   :  { %1570 = vmatprep.subr.mxu1 %v1908_v6  ;;  %v2879_v6 = vld [vmem:[#allocation8_spill] sm:$0xff] }
 0x1d5   :  { %1571 = vmatpush3.msra.mxu1 %v1920_v8  ;;  %v2880_v8 = vld [vmem:[#allocation9_spill] sm:$0xff] }
 0x1d6   :  { %1572 = vmatprep.subr.mxu1 %v1937_v11  ;;  %v2881_v11 = vld [vmem:[#allocation10_spill] sm:$0xff] }
 0x1d7   :  { %1573 = vmatpush3.msra.mxu1 %v1949_v13  ;;  %v2882_v13 = vld [vmem:[#allocation11_spill] sm:$0xff] }
 0x1d8   :  { %1574 = vmatprep.subr.mxu1 %v1961_v15  ;;  %v2883_v15 = vld [vmem:[#allocation12_spill] sm:$0xff] }
 0x1d9   :  { %1575 = vmatpush3.msra.mxu1 %v1973_v17  ;;  %v733_v17 = vrot.slane %v1432_v0, %v2124_v48  ;;  %v2892_v48 = vld [vmem:[#allocation21_spill] sm:$0xff]  ;;  %v1635_v0 = vadd.f32 %v1634_v61, %v1633_v57 }
 0x1da   :  { %1576 = vmatprep.subr.mxu1 %v1985_v19  ;;  %v2884_v19 = vld [vmem:[#allocation13_spill] sm:$0xff] }
 0x1db   :  { %1577 = vmatpush3.msra.mxu1 %v1997_v21  ;;  %v2885_v21 = vld [vmem:[#allocation14_spill] sm:$0xff] }
 0x1dc   :  { %1578 = vmatprep.subr.mxu1 %v2009_v23  ;;  %v2886_v23 = vld [vmem:[#allocation15_spill] sm:$0xff] }
 0x1dd   :  { %1579 = vmatpush3.msra.mxu1 %v2021_v25  ;;  %v2887_v25 = vld [vmem:[#allocation16_spill] sm:$0xff] }
 0x1de   :  { %1580 = vmatprep.subr.mxu1 %v2033_v30  ;;  %v741_v30 = vcombine.high %v733_v17, %v733_v17 }
 0x1df   :  { %1581 = vmatpush3.msra.mxu1 %v2045_v32  ;;  %v2888_v32 = vld [vmem:[#allocation17_spill] sm:$0xff] }
 0x1e0   :  { %1582 = vmatprep.subr.mxu1 %v2057_v34  ;;  %v2889_v34 = vld [vmem:[#allocation18_spill] sm:$0xff] }
 0x1e1   :  { %1583 = vmatpush3.msra.mxu1 %v2069_v36  ;;  %v2890_v36 = vld [vmem:[#allocation19_spill] sm:$0xff] }
 0x1e2   :  { %1584 = vmatprep.subr.mxu1 %v2876_v1 }
 0x1e3   :  { %1585 = vmatpush3.msra.mxu1 %v2877_v2 }
 0x1e4   :  { %1586 = vmatprep.subr.mxu1 %v2878_v4 }
 0x1e5   :  { %1587 = vmatpush3.msra.mxu1 %v2879_v6 }
 0x1e6   :  { %1588 = vmatprep.subr.mxu1 %v2880_v8 }
 0x1e7   :  { %1589 = vmatpush3.msra.mxu1 %v2881_v11 }
 0x1e8   :  { %1590 = vmatprep.subr.mxu1 %v2882_v13 }
 0x1e9   :  { %1591 = vmatpush3.msra.mxu1 %v2883_v15 }
 0x1ea   :  { %1592 = vmatprep.subr.mxu1 %v2884_v19 }
 0x1eb   :  { %1593 = vmatpush3.msra.mxu1 %v2885_v21 }
 0x1ec   :  { %1594 = vmatprep.subr.mxu1 %v2886_v23 }
 0x1ed   :  { %1595 = vmatpush3.msra.mxu1 %v2887_v25 }
 0x1ee   :  { %1596 = vmatprep.subr.mxu1 %v2888_v32 }
 0x1ef   :  { %1597 = vmatpush3.msra.mxu1 %v2889_v34  ;;  %v2715_v34 = vld [vmem:[%s2787_s7] ss:$0 sm:$0xff] }
 0x1f0   :  { %815 = vmatmul.mubr.f32.vlgmr.msra.gmra.mxu1 %v716_v49  ;;  %1636 = vmatprep.subr.mxu1 %v2890_v36 }
 0x1f1   :  { %1637 = vmatpush3.msra.mxu1 %v2891_v29  ;;  %954 = vmatprep.mubr.f32.mxu1 %v741_v30 }
 0x1f2   :  { %1638 = vmatprep.subr.mxu1 %v2892_v48  ;;  %v2720_v48 = vld [vmem:[%s2788_s8] ss:$0 sm:$0xff] }
 0x1f3   :  { %1639 = vmatpush3.msra.mxu1 %v2893_v3 }
 0x1f4   :  { %1640 = vmatprep.subr.mxu1 %v2894_v5 }
 0x1f5   :  { %1641 = vmatpush3.msra.mxu1 %v2895_v7 }
 0x1f6   :  { %1642 = vmatprep.subr.mxu1 %v2896_v9 }
 0x1f7   :  { %1643 = vmatpush3.msra.mxu1 %v2897_v10 }
 0x1f8   :  { %1644 = vmatprep.subr.mxu1 %v2898_v12 }
 0x1f9   :  { %1645 = vmatpush3.msra.mxu1 %v2899_v14 }
 0x1fa   :  { %1646 = vmatprep.subr.mxu1 %v2350_v40  ;;  %v2910_v40 = vld [vmem:[#allocation39_spill] sm:$0xff] }
 0x1fb   :  { %1647 = vmatpush3.msra.mxu1 %v2900_v16 }
 0x1fc   :  { %1648 = vmatprep.subr.mxu1 %v2901_v18 }
 0x1fd   :  { %1649 = vmatpush3.msra.mxu1 %v2902_v20 }
 0x1fe   :  { %1650 = vmatprep.subr.mxu1 %v2903_v22 }
 0x1ff   :  { %1651 = vmatpush3.msra.mxu1 %v2904_v26 }
 0x200   :  { %1652 = vmatprep.subr.mxu1 %v2905_v31 }
 0x201   :  { %1653 = vmatpush3.msra.mxu1 %v2906_v33 }
 0x202   :  { %1654 = vmatprep.subr.mxu1 %v2907_v35 }
 0x203   :  { %1655 = vmatpush3.msra.mxu1 %v2908_v37  ;;  %v25_v37 = vstv %s2793_s13 }
 0x204   :  { %1656 = vmatprep.subr.mxu1 %v2909_v41  ;;  %26 = vst [vmem:[#allocation4] sm:$0x1] %v25_v37 }
 0x205   :  { %1657 = vmatpush3.msra.mxu1 %v2910_v40 }
 0x206   :  { %1658 = vmatprep.subr.mxu1 %v2911_v43 }
 0x207   :  { %1659 = vmatpush3.msra.mxu1 %v2912_v45 }
 0x208   :  { %1660 = vmatprep.subr.mxu1 %v2913_v55 }
 0x209   :  { %1661 = vmatpush3.msra.mxu1 %v2914_v56 }
 0x20a   :  { %1662 = vmatprep.subr.mxu1 %v2463_v52  ;;  %v2707_v52 = vld [vmem:[%s2786_s6] ss:$0 sm:$0xff] }
 0x20b   :  { %1663 = vmatpush3.msra.mxu1 %v2469_v42  ;;  %v1204_v42 = vld [vmem:[%s2785_s9 + $0x8] sm:$0x3] }
 0x20c   :  { %1664 = vmatprep.subr.mxu1 %v2475_v39 }
 0x20d   :  { %1665 = vmatpush3.msra.mxu1 %v2481_v51  ;;  %v1026_v51 = vpop.f32.mrf.mxu0 }
 0x20e   :  { %1666 = vmatprep.subr.mxu1 %v2487_v60  ;;  %v1203_v60 = vld [vmem:[%s2785_s9] sm:$0xff] }
 0x20f   :  { %1667 = vmatpush3.msra.mxu1 %v2493_v44  ;;  %v1735_v39 = vpop.f32.mrf.mxu0 }
 0x210   :  { %955 = vmatmul.mubr.f32.vlgmr.msra.gmra.mxu1 %v733_v17  ;;  %1765 = vmatprep.subr.mxu1 %v2859_v58 }
 0x211   :  { %1769 = vmatprep.mubr.msk.f32.mxu1 %vm1791_vm1, %v2859_v58  ;;  %1766 = vmatpush3.msk.msra.mxu1 %vm1211_vm4, %v1204_v42 }
 0x212   :  { %1767 = vmatprep.subr.mxu1 %v2859_v58 }
 0x213   :  { %1768 = vmatpush3.msra.mxu1 %v1203_v60 }
 0x290   :  { %v660_v44 = vpop.f32.mrf.mxu1 }
 0x291   :  { %v661_v46 = vadd.f32 %v2707_v52, %v660_v44 }
 0x292   :  { %v1724_v63 = vpop.f32.mrf.mxu1 }
 0x293   :  { %v665_v49 = vsel %vm664_vm5, %v661_v46, 0.0 }
 0x294   :  { %v666_v27 = vrot.slane %v665_v49, 4 }
 0x296   :  { %v667_v28 = vadd.f32 %v666_v27, %v665_v49 }
 0x298   :  { %v668_v38 = vrot.slane %v667_v28, 2 }
 0x29a   :  { %v669_v59 = vadd.f32 %v668_v38, %v667_v28 }
 0x29c   :  { %v670_v1 = vrot.slane %v669_v59, 1 }
 0x29e   :  { %v671_v2 = vadd.f32 %v670_v1, %v669_v59 }
 0x2a0   :  { %v673_v4 = vmul.f32 0.5, %v671_v2 }
 0x2a2   :  { %v674_v6 = vsub.f32 %v661_v46, %v673_v4 }
 0x2a4   :  { %v675_v8 = vmul.f32 %v674_v6, %v674_v6 }
 0x2a6   :  { %v676_v11 = vsel %vm664_vm5, %v675_v8, 0.0 }
 0x2a7   :  { %v677_v13 = vrot.slane %v676_v11, 4 }
 0x2a9   :  { %v678_v15 = vadd.f32 %v677_v13, %v676_v11 }
 0x2ab   :  { %v679_v17 = vrot.slane %v678_v15, 2 }
 0x2ad   :  { %v680_v19 = vadd.f32 %v679_v17, %v678_v15 }
 0x2af   :  { %v681_v21 = vrot.slane %v680_v19, 1 }
 0x2b0   :  { %v1598_v36 = vpop.f32.mrf.mxu1 }
 0x2b1   :  { %v682_v23 = vadd.f32 %v681_v21, %v680_v19 }
 0x2b2   :  { %v1599_v5 = vpop.f32.mrf.mxu1 }
 0x2b3   :  { %v683_v25 = vmul.f32 0.5, %v682_v23  ;;  %v1600_v10 = vadd.f32 %v1599_v5, %v1598_v36 }
 0x2b5   :  { %v684_v30 = vadd.f32 1e-05, %v683_v25  ;;  %v817_v12 = vadd.f32 %v1600_v10, %v2558_v24 }
 0x2b7   :  { %1779 = vrsqrt.f32 %v684_v30  ;;  %v887_v18 = vadd.f32 %v1635_v0, %v817_v12 }
 0x2c4   :  { %v1780_v32 = vpop.eup %1779 }
 0x2c5   :  { %v686_v29 = vmul.f32 %v1780_v32, %v674_v6 }
 0x2c7   :  { %v694_v3 = vmul.f32 %v2715_v34, %v686_v29 }
 0x2c9   :  { %v702_v7 = vadd.f32 %v2720_v48, %v694_v3 }
 0x2cb   :  { %v703_v9 = vmax.f32 %v702_v7, 0.0 }
 0x2cd   :  { %1200 = vst.msk [vmem:[%s2789_s14] sm:$0x3] %vm664_vm5, %v703_v9  ;;  %1770 = vmatmul.mubr.msk.f32.vlgmr.msra.gmra.mxu1 %vm1207_vm6, %v703_v9 }
 0x2d0   :  { %v1668_v14 = vpop.f32.mrf.mxu1 }
 0x2d2   :  { %v1669_v16 = vpop.f32.mrf.mxu1 }
 0x2d3   :  { %v1670_v20 = vadd.f32 %v1669_v16, %v1668_v14 }
 0x2d5   :  { %v957_v22 = vadd.f32 %v1670_v20, %v887_v18 }
 0x2d7   :  { %v1027_v26 = vadd.f32 %v1026_v51, %v957_v22 }
 0x2d9   :  { %1745 = vmatmul.mubr.msk.f32.vlgmr.msra.gmra.mxu0 %vm499_vm3, %v1027_v26 }
 0x2da   :  { %1748 = vmatpush3.msk.msra.mxu0 %vm503_vm2, %v2564_v47  ;;  %1755 = vmatprep.mubr.msk.f32.mxu0 %vm1791_vm1, %v2859_v58 }
 0x2db   :  { %1749 = vmatprep.subr.mxu0 %v2859_v58 }
 0x2dc   :  { %1750 = vmatpush3.msra.mxu0 %v2570_v50  ;;  %v1206_v50 = vld [vmem:[%s2790_s10 + $0x8] sm:$0x3] }
 0x2dd   :  { %1751 = vmatprep.subr.mxu0 %v2859_v58 }
 0x2de   :  { %1752 = vmatpush3.msra.mxu0 %v2580_v53  ;;  %v1205_v53 = vld [vmem:[%s2790_s10] sm:$0xff] }
 0x2df   :  { %1753 = vmatprep.subr.mxu0 %v2859_v58 }
 0x2e0   :  { %1754 = vmatpush3.msra.mxu0 %v2589_v54  ;;  %v21_v54 = vstv %s2791_s11 }
 0x2e1   :  { %1758 = vmatprep.subr.mxu0 %v2859_v58  ;;  %22 = vst [vmem:[#allocation2] sm:$0x1] %v21_v54 }
 0x2e8   :  { %v1443_v11 = vld [vmem:[#allocation2] ss:$0 sm:$0xff] }
 0x38d   :  { %v1357_v24 = vpop.f32.mrf.mxu1 }
 0x38f   :  { %v1771_v31 = vpop.f32.mrf.mxu1 }
 0x399   :  { %v1099_v47 = vpop.f32.mrf.mxu0 }
 0x39a   :  { %v1100_v33 = vadd.f32 %v2625_v62, %v1099_v47  ;;  %v23_v62 = vstv %s2792_s12 }
 0x39b   :  { %v1746_v35 = vpop.f32.mrf.mxu0  ;;  %24 = vst [vmem:[#allocation3] sm:$0x1] %v23_v62 }
 0x39c   :  { %1756 = vmatmul.mubr.msk.f32.vlgmr.msra.gmra.mxu0 %vm499_vm3, %v1100_v33 }
 0x39d   :  { %1762 = vmatprep.mubr.msk.f32.mxu0 %vm1791_vm1, %v2859_v58  ;;  %1759 = vmatpush3.msk.msra.mxu0 %vm1211_vm4, %v1206_v50 }
 0x39e   :  { %1760 = vmatprep.subr.mxu0 %v2859_v58 }
 0x39f   :  { %1761 = vmatpush3.msra.mxu0 %v1205_v53 }
 0x3a2   :  { %v1444_v22 = vld [vmem:[#allocation3] ss:$0 sm:$0xff] }
 0x45c   :  { %v1172_v58 = vpop.f32.mrf.mxu0 }
 0x45d   :  { %v1173_v41 = vadd.f32 %v2707_v52, %v1172_v58 }
 0x45e   :  { %v1757_v40 = vpop.f32.mrf.mxu0 }
 0x45f   :  { %v1176_v43 = vsel %vm664_vm5, %v1173_v41, 0.0 }
 0x460   :  { %v1177_v45 = vrot.slane %v1176_v43, 4 }
 0x462   :  { %v1178_v55 = vadd.f32 %v1177_v45, %v1176_v43 }
 0x464   :  { %v1179_v56 = vrot.slane %v1178_v55, 2 }
 0x466   :  { %v1180_v57 = vadd.f32 %v1179_v56, %v1178_v55 }
 0x468   :  { %v1181_v61 = vrot.slane %v1180_v57, 1 }
 0x46a   :  { %v1182_v0 = vadd.f32 %v1181_v61, %v1180_v57 }
 0x46c   :  { %v1183_v42 = vmul.f32 0.5, %v1182_v0 }
 0x46e   :  { %v1184_v60 = vsub.f32 %v1173_v41, %v1183_v42 }
 0x470   :  { %v1185_v51 = vmul.f32 %v1184_v60, %v1184_v60 }
 0x472   :  { %v1186_v39 = vsel %vm664_vm5, %v1185_v51, 0.0 }
 0x473   :  { %v1187_v44 = vrot.slane %v1186_v39, 4 }
 0x475   :  { %v1188_v46 = vadd.f32 %v1187_v44, %v1186_v39 }
 0x477   :  { %v1189_v63 = vrot.slane %v1188_v46, 2 }
 0x479   :  { %v1190_v49 = vadd.f32 %v1189_v63, %v1188_v46 }
 0x47b   :  { %v1191_v27 = vrot.slane %v1190_v49, 1 }
 0x47d   :  { %v1192_v52 = vadd.f32 %v1191_v27, %v1190_v49 }
 0x47f   :  { %v1193_v28 = vmul.f32 0.5, %v1192_v52 }
 0x481   :  { %v1194_v38 = vadd.f32 1e-05, %v1193_v28 }
 0x483   :  { %1781 = vrsqrt.f32 %v1194_v38 }
 0x490   :  { %v1782_v59 = vpop.eup %1781 }
 0x491   :  { %v1196_v1 = vmul.f32 %v1782_v59, %v1184_v60 }
 0x493   :  { %v1197_v2 = vmul.f32 %v2715_v34, %v1196_v1 }
 0x495   :  { %v1198_v4 = vadd.f32 %v2720_v48, %v1197_v2 }
 0x497   :  { %v1199_v6 = vmax.f32 %v1198_v4, 0.0 }
 0x499   :  { %1438 = vst.msk [vmem:[%s2789_s14 + $0x2] sm:$0x3] %vm664_vm5, %v1199_v6  ;;  %1763 = vmatmul.mubr.msk.f32.vlgmr.msra.gmra.mxu0 %vm1207_vm6, %v1199_v6 }
 0x559   :  { %v1281_v8 = vpop.f32.mrf.mxu0 }
 0x55a   :  { %v1358_v13 = vadd.f32 %v1357_v24, %v1281_v8  ;;  %v1445_v24 = vld [vmem:[#allocation4] ss:$0 sm:$0xff] }
 0x55b   :  { %v1764_v15 = vpop.f32.mrf.mxu0 }
 0x55c   :  { %v1368_v17 = vadd.f32 %v1443_v11, %v1358_v13 }
 0x55e   :  { %v1370_v19 = vsel %vm1369_vm7, %v1368_v17, 0.0 }
 0x55f   :  { %v1371_v21 = vrot.slane %v1370_v19, 4 }
 0x561   :  { %v1372_v23 = vadd.f32 %v1371_v21, %v1370_v19 }
 0x563   :  { %v1373_v25 = vrot.slane %v1372_v23, 2 }
 0x565   :  { %v1374_v30 = vadd.f32 %v1373_v25, %v1372_v23 }
 0x567   :  { %v1375_v32 = vrot.slane %v1374_v30, 1 }
 0x569   :  { %v1376_v34 = vadd.f32 %v1375_v32, %v1374_v30 }
 0x56b   :  { %v1377_v36 = vmul.f32 0.5, %v1376_v34 }
 0x56d   :  { %v1378_v29 = vsub.f32 %v1368_v17, %v1377_v36 }
 0x56f   :  { %v1379_v48 = vmul.f32 %v1378_v29, %v1378_v29 }
 0x571   :  { %v1380_v3 = vsel %vm1369_vm7, %v1379_v48, 0.0 }
 0x572   :  { %v1381_v5 = vrot.slane %v1380_v3, 4 }
 0x574   :  { %v1382_v7 = vadd.f32 %v1381_v5, %v1380_v3 }
 0x576   :  { %v1383_v9 = vrot.slane %v1382_v7, 2 }
 0x578   :  { %v1384_v10 = vadd.f32 %v1383_v9, %v1382_v7 }
 0x57a   :  { %v1385_v12 = vrot.slane %v1384_v10, 1 }
 0x57c   :  { %v1386_v14 = vadd.f32 %v1385_v12, %v1384_v10 }
 0x57e   :  { %v1387_v16 = vmul.f32 0.5, %v1386_v14 }
 0x580   :  { %v1388_v18 = vadd.f32 1e-05, %v1387_v16 }
 0x582   :  { %1783 = vrsqrt.f32 %v1388_v18 }
 0x58f   :  { %v1784_v20 = vpop.eup %1783 }
 0x590   :  { %v1390_v26 = vmul.f32 %v1784_v20, %v1378_v29 }
 0x592   :  { %v1398_v31 = vmul.f32 %v1444_v22, %v1390_v26 }
 0x594   :  { %v1406_v47 = vadd.f32 %v1445_v24, %v1398_v31 }
 0x596   :  { %v1407_v33 = vsub.f32 0.0, %v1406_v47 }
 0x598   :  { %v1408_v35 = vmul.f32 1.442695, %v1407_v33 }
 0x59a   :  { %1785 = vpow2.f32 %v1408_v35 }
 0x5a7   :  { %v1786_v50 = vpop.eup %1785 }
 0x5a8   :  { %v1410_v53 = vadd.f32 1.0, %v1786_v50 }
 0x5aa   :  { %1787 = vrcp.f32 %v1410_v53 }
 0x5b7   :  { %v1788_v54 = vpop.eup %1787 }
 0x5b8   :  { %1412 = vst.msk [vmem:[%s2794_s15] sm:$0x3] %vm1369_vm7, %v1788_v54 }

</bundles_post_ra>
